<compile_context>
chip_gen: v7x
topology: tpu7x:2x2x1
jax: 0.10.0
libtpu: 0.0.40
codegen_flags: <defaults>
</compile_context>

<pallas_src>
import jax
import jax.numpy as jnp
from jax.experimental import pallas as pl
from jax.experimental.pallas import tpu as pltpu

IN_DIM = 512
HID_DIM = 4096
OUT_DIM = 10
OUT_PAD = 128          # lane-dense padded output width


def _head_kernel(x_ref, w1_ref, b1_ref, w2_ref, b2_ref, o_ref):
    # First linear (bf16 MXU matmul, f32 accumulation) + bias + ReLU.
    h = jnp.dot(x_ref[...], w1_ref[...], preferred_element_type=jnp.float32)
    h = jnp.maximum(h + b1_ref[...], 0.0)
    # Second linear straight into the (lane-padded) output + bias + sigmoid.
    z = jnp.dot(h.astype(jnp.bfloat16), w2_ref[...],
                preferred_element_type=jnp.float32)
    o_ref[...] = jax.nn.sigmoid(z + b2_ref[...])


def prepare_params(w1, b1, w2, b2):
    """One-time weight preparation (hoisted out of the forward path):
    f32->bf16 cast of W1/W2 and zero-padding of W2/b2 out to 128 lanes."""
    w1_bf = w1.astype(jnp.bfloat16)                                   # (512, 4096)
    b1_2d = b1.reshape(1, HID_DIM).astype(jnp.float32)                # (1, 4096)
    w2_pad = (
        jnp.zeros((HID_DIM, OUT_PAD), jnp.bfloat16)
        .at[:, :OUT_DIM]
        .set(w2.astype(jnp.bfloat16))
    )                                                                 # (4096, 128)
    b2_pad = (
        jnp.zeros((1, OUT_PAD), jnp.float32)
        .at[0, :OUT_DIM]
        .set(b2.astype(jnp.float32))
    )                                                                 # (1, 128)
    return w1_bf, b1_2d, w2_pad, b2_pad


@jax.jit
def classification_head_forward(x, w1_bf, b1_2d, w2_pad, b2_pad):
    """x: (B, 512) f32, prepared params from prepare_params() -> (B, 10) f32."""
    B = x.shape[0]

    # Pad batch to a sublane multiple; pick a batch tile (<=256 rows).
    B_pad = max(8, ((B + 7) // 8) * 8)
    if B_pad <= 256:
        tile_b = B_pad
    else:
        tile_b = 128
        B_pad = ((B_pad + 127) // 128) * 128

    x_bf = x.astype(jnp.bfloat16)
    if B_pad != B:
        x_bf = jnp.pad(x_bf, ((0, B_pad - B), (0, 0)))

    grid = (B_pad // tile_b,)

    out = pl.pallas_call(
        _head_kernel,
        out_shape=jax.ShapeDtypeStruct((B_pad, OUT_PAD), jnp.float32),
        grid=grid,
        in_specs=[
            pl.BlockSpec((tile_b, IN_DIM), lambda b: (b, 0)),     # x tile
            pl.BlockSpec((IN_DIM, HID_DIM), lambda b: (0, 0)),    # W1 (resident)
            pl.BlockSpec((1, HID_DIM), lambda b: (0, 0)),         # b1 (resident)
            pl.BlockSpec((HID_DIM, OUT_PAD), lambda b: (0, 0)),   # W2 (resident)
            pl.BlockSpec((1, OUT_PAD), lambda b: (0, 0)),         # b2 (resident)
        ],
        out_specs=pl.BlockSpec((tile_b, OUT_PAD), lambda b: (b, 0)),
        compiler_params=pltpu.CompilerParams(
            dimension_semantics=("parallel",),
            vmem_limit_bytes=32 << 20,
        ),
    )(x_bf, w1_bf, b1_2d, w2_pad, b2_pad)

    return out[:B, :OUT_DIM]


def _init_params(key):
    """Deterministic synthetic init (shapes match nn.Linear(512,4096)/(4096,10))."""
    k1, k2, k3, k4 = jax.random.split(key, 4)
    w1 = jax.random.normal(k1, (IN_DIM, HID_DIM), jnp.float32) * (1.0 / IN_DIM**0.5)
    b1 = jax.random.normal(k2, (HID_DIM,), jnp.float32) * 0.01
    w2 = jax.random.normal(k3, (HID_DIM, OUT_DIM), jnp.float32) * (1.0 / HID_DIM**0.5)
    b2 = jax.random.normal(k4, (OUT_DIM,), jnp.float32) * 0.01
    return w1, b1, w2, b2


def _reference_f32(x, w1, b1, w2, b2):
    h = jnp.maximum(x @ w1 + b1, 0.0)
    return jax.nn.sigmoid(h @ w2 + b2)


def _reference_bf16(x, w1, b1, w2, b2):
    """Reference using the same bf16 weight/activation quantization as the kernel."""
    xb = x.astype(jnp.bfloat16)
    w1b = w1.astype(jnp.bfloat16)
    w2b = w2.astype(jnp.bfloat16)
    h = jnp.dot(xb, w1b, preferred_element_type=jnp.float32) + b1
    h = jnp.maximum(h, 0.0)
    z = jnp.dot(h.astype(jnp.bfloat16), w2b, preferred_element_type=jnp.float32) + b2
    return jax.nn.sigmoid(z)


if __name__ == "__main__":
    key = jax.random.PRNGKey(0)
    kx, kp = jax.random.split(key)

    w1, b1, w2, b2 = _init_params(kp)
    params = prepare_params(w1, b1, w2, b2)   # one-time weight cast/pad

    # Main check: B = 8.
    B = 8
    x = jax.random.normal(kx, (B, IN_DIM), jnp.float32)
    out = classification_head_forward(x, *params)
    out = jax.block_until_ready(out)
    assert out.shape == (B, OUT_DIM)

    # Exact-structure check against a bf16-matched JAX reference.
    ref_bf16 = _reference_bf16(x, w1, b1, w2, b2)
    assert jnp.allclose(out, ref_bf16, atol=1e-4, rtol=1e-4), "mismatch vs bf16 reference"

    # Loose sanity check against the full-f32 reference (bf16 quantization noise).
    ref_f32 = _reference_f32(x, w1, b1, w2, b2)
    assert jnp.allclose(out, ref_f32, atol=2e-2, rtol=2e-2), "mismatch vs f32 reference"

    # Extra check: batch not a multiple of 8 (exercises the padding/slice path).
    B2 = 5
    x2 = jax.random.normal(jax.random.PRNGKey(1), (B2, IN_DIM), jnp.float32)
    out2 = jax.block_until_ready(classification_head_forward(x2, *params))
    assert out2.shape == (B2, OUT_DIM)
    ref2 = _reference_bf16(x2, w1, b1, w2, b2)
    assert jnp.allclose(out2, ref2, atol=1e-4, rtol=1e-4), "mismatch (padded batch)"

    print("KERNEL_OK")
</pallas_src>

<mosaic_0001>
module attributes {stable_mosaic.version = 11 : i64} {
  func.func @_head_kernel(%arg0: i32, %arg1: memref<8x512xbf16, #tpu.memory_space<vmem>>, %arg2: memref<512x4096xbf16, #tpu.memory_space<vmem>>, %arg3: memref<1x4096xf32, #tpu.memory_space<vmem>>, %arg4: memref<4096x128xbf16, #tpu.memory_space<vmem>>, %arg5: memref<1x128xf32, #tpu.memory_space<vmem>>, %arg6: memref<8x128xf32, #tpu.memory_space<vmem>>) attributes {dimension_semantics = [#tpu.dimension_semantics<parallel>], iteration_bounds = array<i64: 1>, scalar_prefetch = 0 : i64, scratch_operands = 0 : i64, tpu.core_type = #tpu.core_type<tc>, window_params = [{transform_indices = @transform_0, window_bounds = array<i64: 8, 512>}, {pipeline_mode = #tpu.pipeline_mode<synchronous>, transform_indices = @transform_1, window_bounds = array<i64: 512, 4096>}, {pipeline_mode = #tpu.pipeline_mode<synchronous>, transform_indices = @transform_2, window_bounds = array<i64: 1, 4096>}, {pipeline_mode = #tpu.pipeline_mode<synchronous>, transform_indices = @transform_3, window_bounds = array<i64: 4096, 128>}, {pipeline_mode = #tpu.pipeline_mode<synchronous>, transform_indices = @transform_4, window_bounds = array<i64: 1, 128>}, {transform_indices = @transform_5, window_bounds = array<i64: 8, 128>}]} {
    %c0 = arith.constant 0 : index
    %c0_0 = arith.constant 0 : index
    %0 = vector.load %arg1[%c0, %c0_0] : memref<8x512xbf16, #tpu.memory_space<vmem>>, vector<8x512xbf16>
    %c0_1 = arith.constant 0 : index
    %c0_2 = arith.constant 0 : index
    %1 = vector.load %arg2[%c0_1, %c0_2] : memref<512x4096xbf16, #tpu.memory_space<vmem>>, vector<512x4096xbf16>
    %cst = arith.constant dense<0.000000e+00> : vector<8x4096xf32>
    %2 = tpu.matmul %0, %1, %cst {dimension_numbers = #tpu.dot_dimension_numbers<[1], [0], [0], [1], [0, 0, 1, 1], [], []>} : vector<8x512xbf16>, vector<512x4096xbf16>, vector<8x4096xf32> -> vector<8x4096xf32>
    %c0_3 = arith.constant 0 : index
    %c0_4 = arith.constant 0 : index
    %3 = vector.load %arg3[%c0_3, %c0_4] : memref<1x4096xf32, #tpu.memory_space<vmem>>, vector<1x4096xf32>
    %4 = vector.broadcast %3 : vector<1x4096xf32> to vector<8x4096xf32>
    %5 = arith.addf %2, %4 : vector<8x4096xf32>
    %cst_5 = arith.constant 0.000000e+00 : f32
    %6 = vector.broadcast %cst_5 : f32 to vector<8x4096xf32>
    %7 = arith.maximumf %5, %6 : vector<8x4096xf32>
    %8 = arith.truncf %7 : vector<8x4096xf32> to vector<8x4096xbf16>
    %c0_6 = arith.constant 0 : index
    %c0_7 = arith.constant 0 : index
    %9 = vector.load %arg4[%c0_6, %c0_7] : memref<4096x128xbf16, #tpu.memory_space<vmem>>, vector<4096x128xbf16>
    %cst_8 = arith.constant dense<0.000000e+00> : vector<8x128xf32>
    %10 = tpu.matmul %8, %9, %cst_8 {dimension_numbers = #tpu.dot_dimension_numbers<[1], [0], [0], [1], [0, 0, 1, 1], [], []>} : vector<8x4096xbf16>, vector<4096x128xbf16>, vector<8x128xf32> -> vector<8x128xf32>
    %c0_9 = arith.constant 0 : index
    %c0_10 = arith.constant 0 : index
    %11 = vector.load %arg5[%c0_9, %c0_10] : memref<1x128xf32, #tpu.memory_space<vmem>>, vector<1x128xf32>
    %12 = vector.broadcast %11 : vector<1x128xf32> to vector<8x128xf32>
    %13 = arith.addf %10, %12 : vector<8x128xf32>
    %14 = arith.negf %13 : vector<8x128xf32>
    %15 = math.exp %14 : vector<8x128xf32>
    %cst_11 = arith.constant 1.000000e+00 : f32
    %16 = vector.broadcast %cst_11 : f32 to vector<8x128xf32>
    %17 = arith.addf %16, %15 : vector<8x128xf32>
    %18 = arith.divf %16, %17 : vector<8x128xf32>
    %c0_12 = arith.constant 0 : index
    %c0_13 = arith.constant 0 : index
    %19 = vector.load %arg6[%c0_12, %c0_13] : memref<8x128xf32, #tpu.memory_space<vmem>>, vector<8x128xf32>
    tpu.vector_store %arg6[%c0_12, %c0_13], %18 {strides = array<i32>} : memref<8x128xf32, #tpu.memory_space<vmem>>, vector<8x128xf32>,
    return
  }
  func.func @transform_0(%arg0: i32) -> (i32, i32) {
    %c0_i32 = arith.constant 0 : i32
    %c0_i32_0 = arith.constant 0 : i32
    return %arg0, %c0_i32 : i32, i32
  }
  func.func @transform_1(%arg0: i32) -> (i32, i32) {
    %c0_i32 = arith.constant 0 : i32
    %c0_i32_0 = arith.constant 0 : i32
    %c0_i32_1 = arith.constant 0 : i32
    return %c0_i32, %c0_i32_0 : i32, i32
  }
  func.func @transform_2(%arg0: i32) -> (i32, i32) {
    %c0_i32 = arith.constant 0 : i32
    %c0_i32_0 = arith.constant 0 : i32
    %c0_i32_1 = arith.constant 0 : i32
    return %c0_i32, %c0_i32_0 : i32, i32
  }
  func.func @transform_3(%arg0: i32) -> (i32, i32) {
    %c0_i32 = arith.constant 0 : i32
    %c0_i32_0 = arith.constant 0 : i32
    %c0_i32_1 = arith.constant 0 : i32
    return %c0_i32, %c0_i32_0 : i32, i32
  }
  func.func @transform_4(%arg0: i32) -> (i32, i32) {
    %c0_i32 = arith.constant 0 : i32
    %c0_i32_0 = arith.constant 0 : i32
    %c0_i32_1 = arith.constant 0 : i32
    return %c0_i32, %c0_i32_0 : i32, i32
  }
  func.func @transform_5(%arg0: i32) -> (i32, i32) {
    %c0_i32 = arith.constant 0 : i32
    %c0_i32_0 = arith.constant 0 : i32
    return %arg0, %c0_i32 : i32, i32
  }
}

</mosaic_0001>

<bundles_post_ra>
// kernel: classification_head_forward.1
= control target key start
LH: loop header
LB: loop body
LE: loop exit
PB: predicated region body
PF: predicated region fallthrough
CT: control target
= control target key end

     0   :  { %10 = vsyncpa [#allocation3], 0  ;;  %s13005_s0 = inlined_call_operand.vmem [shape: bf16[8,512], index: 0, kind: input, shape index: {}]   ;;  %s13006_s1 = inlined_call_operand.hbm [shape: bf16[512,4096], index: 1, kind: input, shape index: {}]   ;;  %s13007_s2 = inlined_call_operand.hbm [shape: f32[1,4096], index: 2, kind: input, shape index: {}]   ;;  %s13008_s3 = inlined_call_operand.hbm [shape: bf16[4096,128], index: 3, kind: input, shape index: {}]   ;;  %s13009_s4 = inlined_call_operand.hbm [shape: f32[1,128], index: 4, kind: input, shape index: {}]   ;;  %s13010_s5 = inlined_call_operand.hbm [shape: f32[8,128], index: 5, kind: output, shape index: {}]  }
   0x1   :  { %11 = vsyncpa [#allocation6], 0 }
   0x2   :  { %12 = vsyncpa [#allocation9], 0 }
   0x3   :  { %13 = vsyncpa [#allocation4], 0  ;;  %s12621_s18 = smov [#allocation5]   ;;  %s12622_s20 = smov [#allocation2]  }
   0x4   :  { %s34_s19 = sshll.u32 %s12621_s18, 4  ;;  %s21_s21 = sshll.u32 %s12622_s20, 4  ;;  %s35_s19 = int_to_ptr.vmem [resolvable:$true] %s34_s19  ;;  %s12660_s21 = int_to_ptr.vmem [resolvable:$true] %s21_s21 }
   0x5   :  { %s12503_s24 = scalar_lea.hbm %s13007_s2, 512 }
   0x6   :  { %p12504_p0 = scmp.ne.s32.totalorder %s13007_s2, %s12503_s24  ;;  %p12507_p1 = scmp.lt.u32.totalorder %s12503_s24, %s13007_s2 }
   0x8   :  { %p12509_p2 = pnand %p12507_p1, %p12504_p0 }
   0xa   :  { %12512 = shalt.err (!%p12509_p2)
}
   0xb   :  { %s12513_s29 = scalar_lea.vmem %s35_s19, 512  ;;  %p12518_p4 = scmp.lt.s32.totalorder %s35_s19, %s35_s19 }
   0xc   :  { %p12514_p3 = scmp.ne.s32.totalorder %s35_s19, %s12513_s29  ;;  %p12519_p5 = scmp.lt.s32.totalorder %s12513_s29, %s12513_s29 }
   0xe   :  { %p12520_p6 = por %p12519_p5, %p12518_p4 }
  0x10   :  { %p12521_p7 = pnand %p12520_p6, %p12514_p3 }
  0x12   :  { %12524 = shalt.err (!%p12521_p7)
}
  0x13   :  { %37 = dma.hbm_to_vmem [thread:$0]  %s13007_s2, 512, %s35_s19, [#allocation6]  }
  0x14   :  { %s12525_s9 = scalar_lea.hbm %s13006_s1, 131072 }
  0x15   :  { %p12526_p8 = scmp.ne.s32.totalorder %s13006_s1, %s12525_s9  ;;  %p12529_p9 = scmp.lt.u32.totalorder %s12525_s9, %s13006_s1 }
  0x17   :  { %p12531_p10 = pnand %p12529_p9, %p12526_p8 }
  0x19   :  { %12534 = shalt.err (!%p12531_p10)
}
  0x1a   :  { %s12535_s14 = scalar_lea.vmem %s12660_s21, 131072  ;;  %p12540_p12 = scmp.lt.s32.totalorder %s12660_s21, %s12660_s21 }
  0x1b   :  { %p12536_p11 = scmp.ne.s32.totalorder %s12660_s21, %s12535_s14  ;;  %p12541_p13 = scmp.lt.s32.totalorder %s12535_s14, %s12535_s14 }
  0x1d   :  { %p12542_p0 = por %p12541_p13, %p12540_p12 }
  0x1f   :  { %p12543_p1 = pnand %p12542_p0, %p12536_p11 }
  0x21   :  { %12546 = shalt.err (!%p12543_p1)
}
  0x22   :  { %s12623_s2 = smov 2048   ;;  %s12624_s15 = smov 128  }
  0x23   :  { %27 = dma.hbm_to_vmem [thread:$0]  %s13006_s1, 131072, %s12660_s21, [#allocation3], %s12623_s2, %s12623_s2, %s12624_s15  }
  0x24   :  { %s12625_s18 = smov [#allocation7]   ;;  %s12547_s23 = scalar_lea.hbm %s13008_s3, 32768 }
  0x25   :  { %s43_s19 = sshll.u32 %s12625_s18, 4  ;;  %p12548_p2 = scmp.ne.s32.totalorder %s13008_s3, %s12547_s23  ;;  %s44_s19 = int_to_ptr.vmem [resolvable:$true] %s43_s19 }
  0x26   :  { %p12551_p3 = scmp.lt.u32.totalorder %s12547_s23, %s13008_s3 }
  0x28   :  { %p12553_p4 = pnand %p12551_p3, %p12548_p2 }
  0x2a   :  { %12556 = shalt.err (!%p12553_p4)
}
  0x2b   :  { %s12557_s28 = scalar_lea.vmem %s44_s19, 32768  ;;  %p12562_p6 = scmp.lt.s32.totalorder %s44_s19, %s44_s19 }
  0x2c   :  { %p12558_p5 = scmp.ne.s32.totalorder %s44_s19, %s12557_s28  ;;  %p12563_p7 = scmp.lt.s32.totalorder %s12557_s28, %s12557_s28 }
  0x2e   :  { %p12564_p8 = por %p12563_p7, %p12562_p6 }
  0x30   :  { %p12565_p9 = pnand %p12564_p8, %p12558_p5 }
  0x32   :  { %12568 = shalt.err (!%p12565_p9)
}
  0x33   :  { %s12626_s1 = smov 64   ;;  %s12627_s21 = smov 4  }
  0x34   :  { %49 = dma.hbm_to_vmem [thread:$0]  %s13008_s3, 32768, %s44_s19, [#allocation6], %s12626_s1, %s12626_s1, %s12627_s21  }
  0x35   :  { %s12628_s6 = smov [#allocation8]   ;;  %s12569_s10 = scalar_lea.hbm %s13009_s4, 16 }
  0x36   :  { %s56_s7 = sshll.u32 %s12628_s6, 4  ;;  %p12570_p10 = scmp.ne.s32.totalorder %s13009_s4, %s12569_s10  ;;  %s57_s7 = int_to_ptr.vmem [resolvable:$true] %s56_s7 }
  0x37   :  { %p12573_p11 = scmp.lt.u32.totalorder %s12569_s10, %s13009_s4 }
  0x39   :  { %p12575_p12 = pnand %p12573_p11, %p12570_p10 }
  0x3b   :  { %12578 = shalt.err (!%p12575_p12)
}
  0x3c   :  { %s12579_s2 = scalar_lea.vmem %s57_s7, 16  ;;  %s12583_s3 = scalar_lea.vmem %s57_s7, 32 }
  0x3d   :  { %p12580_p13 = scmp.ne.s32.totalorder %s57_s7, %s12579_s2  ;;  %p12584_p0 = scmp.lt.s32.totalorder %s57_s7, %s57_s7 }
  0x3e   :  { %p12585_p1 = scmp.lt.s32.totalorder %s12583_s3, %s12579_s2 }
  0x40   :  { %p12586_p2 = por %p12585_p1, %p12584_p0 }
  0x42   :  { %p12587_p3 = pnand %p12586_p2, %p12580_p13 }
  0x44   :  { %12590 = shalt.err (!%p12587_p3)
}
  0x45   :  { %59 = dma.hbm_to_vmem [thread:$0]  %s13009_s4, 16, %s57_s7, [#allocation9]  }
  0x46   :  { %12613 = dma.done.wait [#allocation3], 131072  }
  0x47   :  { %12614 = vsyncadd [#allocation3], 4294836224 }
  0x48   :  { %12615 = dma.done.wait [#allocation6], 33280  }
  0x49   :  { %12616 = vsyncadd [#allocation6], 4294934016 }
  0x4a   :  { %12617 = dma.done.wait [#allocation9], 16  }
  0x4b   :  { %12618 = vsyncadd [#allocation9], 4294967280  ;;  %v75_v0 = vld [vmem:[#allocation2] sm:$0xff]  ;;  %v76_v2 = vld [vmem:[#allocation2 + $0x8] sm:$0xff] }
  0x4c   :  { %v91_v1 = vld [vmem:[#allocation2 + $0x80] sm:$0xff]  ;;  %v92_v4 = vld [vmem:[#allocation2 + $0x88] sm:$0xff]  ;;  %v12718_v53 = vld [vmem:[%s13005_s0] sm:$0xff] }
  0x4d   :  { %v10501_v3 = vcombine.high %v75_v0, %v91_v1  ;;  %v10500_v5 = vcombine.low %v75_v0, %v91_v1  ;;  %v107_v6 = vld [vmem:[#allocation2 + $0x100] sm:$0xff]  ;;  %v10503_v8 = vcombine.high %v76_v2, %v92_v4  ;;  %v10502_v9 = vcombine.low %v76_v2, %v92_v4  ;;  %v108_v11 = vld [vmem:[#allocation2 + $0x108] sm:$0xff] }
  0x4e   :  { %v123_v7 = vld [vmem:[#allocation2 + $0x180] sm:$0xff]  ;;  %v124_v12 = vld [vmem:[#allocation2 + $0x188] sm:$0xff]  ;;  %v12722_v57 = vcombine.high %v12718_v53, %v12718_v53 }
  0x4f   :  { %v10533_v10 = vcombine.high %v107_v6, %v123_v7  ;;  %v139_v13 = vld [vmem:[#allocation2 + $0x200] sm:$0xff]  ;;  %6401 = vmatprep.subr.bf16.mxu0 %v10501_v3  ;;  %v10535_v14 = vcombine.high %v108_v11, %v124_v12  ;;  %v140_v16 = vld [vmem:[#allocation2 + $0x208] sm:$0xff]  ;;  %6483 = vmatprep.subr.bf16.mxu1 %v10503_v8  ;;  %v10532_v18 = vcombine.low %v107_v6, %v123_v7 }
  0x50   :  { %v155_v15 = vld [vmem:[#allocation2 + $0x280] sm:$0xff]  ;;  %v156_v17 = vld [vmem:[#allocation2 + $0x288] sm:$0xff]  ;;  %6402 = vmatpush1.bf16.msra.mxu0 %v10500_v5  ;;  %6484 = vmatpush1.bf16.msra.mxu1 %v10502_v9  ;;  %v10534_v19 = vcombine.low %v108_v11, %v124_v12 }
  0x51   :  { %6403 = vmatprep.subr.bf16.mxu0 %v10533_v10  ;;  %v10565_v20 = vcombine.high %v139_v13, %v155_v15  ;;  %6485 = vmatprep.subr.bf16.mxu1 %v10535_v14  ;;  %v10567_v21 = vcombine.high %v140_v16, %v156_v17  ;;  %v171_v22 = vld [vmem:[#allocation2 + $0x300] sm:$0xff]  ;;  %v172_v24 = vld [vmem:[#allocation2 + $0x308] sm:$0xff]  ;;  %v10564_v26 = vcombine.low %v139_v13, %v155_v15 }
  0x52   :  { %v187_v23 = vld [vmem:[#allocation2 + $0x380] sm:$0xff]  ;;  %v188_v25 = vld [vmem:[#allocation2 + $0x388] sm:$0xff]  ;;  %v10566_v27 = vcombine.low %v140_v16, %v156_v17  ;;  %6433 = vmatprep.mubr.bf16.mxu0 %v12722_v57  ;;  %6515 = vmatprep.mubr.bf16.mxu1 %v12722_v57 }
  0x53   :  { %v10597_v28 = vcombine.high %v171_v22, %v187_v23  ;;  %v10599_v29 = vcombine.high %v172_v24, %v188_v25  ;;  %v203_v30 = vld [vmem:[#allocation2 + $0x400] sm:$0xff]  ;;  %v204_v32 = vld [vmem:[#allocation2 + $0x408] sm:$0xff]  ;;  %v10596_v34 = vcombine.low %v171_v22, %v187_v23  ;;  %v10598_v35 = vcombine.low %v172_v24, %v188_v25 }
  0x54   :  { %6404 = vmatpush1.bf16.msra.mxu0 %v10532_v18  ;;  %6486 = vmatpush1.bf16.msra.mxu1 %v10534_v19  ;;  %v219_v31 = vld [vmem:[#allocation2 + $0x480] sm:$0xff]  ;;  %v220_v33 = vld [vmem:[#allocation2 + $0x488] sm:$0xff] }
  0x55   :  { %6405 = vmatprep.subr.bf16.mxu0 %v10565_v20  ;;  %6487 = vmatprep.subr.bf16.mxu1 %v10567_v21  ;;  %v10629_v36 = vcombine.high %v203_v30, %v219_v31  ;;  %v10631_v37 = vcombine.high %v204_v32, %v220_v33  ;;  %v235_v38 = vld [vmem:[#allocation2 + $0x500] sm:$0xff]  ;;  %v236_v40 = vld [vmem:[#allocation2 + $0x508] sm:$0xff]  ;;  %v10628_v42 = vcombine.low %v203_v30, %v219_v31 }
  0x56   :  { %v251_v39 = vld [vmem:[#allocation2 + $0x580] sm:$0xff]  ;;  %v252_v41 = vld [vmem:[#allocation2 + $0x588] sm:$0xff]  ;;  %v10630_v43 = vcombine.low %v204_v32, %v220_v33 }
  0x57   :  { %v10661_v44 = vcombine.high %v235_v38, %v251_v39  ;;  %v10663_v45 = vcombine.high %v236_v40, %v252_v41  ;;  %v267_v46 = vld [vmem:[#allocation2 + $0x600] sm:$0xff]  ;;  %v268_v48 = vld [vmem:[#allocation2 + $0x608] sm:$0xff]  ;;  %v10660_v50 = vcombine.low %v235_v38, %v251_v39  ;;  %v10662_v51 = vcombine.low %v236_v40, %v252_v41 }
  0x58   :  { %6406 = vmatpush1.bf16.msra.mxu0 %v10564_v26  ;;  %6488 = vmatpush1.bf16.msra.mxu1 %v10566_v27  ;;  %v283_v47 = vld [vmem:[#allocation2 + $0x680] sm:$0xff]  ;;  %v284_v49 = vld [vmem:[#allocation2 + $0x688] sm:$0xff] }
  0x59   :  { %6407 = vmatprep.subr.bf16.mxu0 %v10597_v28  ;;  %6489 = vmatprep.subr.bf16.mxu1 %v10599_v29  ;;  %v10693_v52 = vcombine.high %v267_v46, %v283_v47  ;;  %v10695_v54 = vcombine.high %v268_v48, %v284_v49  ;;  %v299_v55 = vld [vmem:[#allocation2 + $0x700] sm:$0xff]  ;;  %v300_v58 = vld [vmem:[#allocation2 + $0x708] sm:$0xff]  ;;  %v10692_v60 = vcombine.low %v267_v46, %v283_v47 }
  0x5a   :  { %v315_v56 = vld [vmem:[#allocation2 + $0x780] sm:$0xff]  ;;  %v316_v59 = vld [vmem:[#allocation2 + $0x788] sm:$0xff]  ;;  %v10694_v61 = vcombine.low %v268_v48, %v284_v49 }
  0x5b   :  { %v10725_v62 = vcombine.high %v299_v55, %v315_v56  ;;  %v10727_v63 = vcombine.high %v300_v58, %v316_v59  ;;  %v331_v0 = vld [vmem:[#allocation2 + $0x800] sm:$0xff]  ;;  %v332_v2 = vld [vmem:[#allocation2 + $0x808] sm:$0xff]  ;;  %v10724_v4 = vcombine.low %v299_v55, %v315_v56  ;;  %v10726_v5 = vcombine.low %v300_v58, %v316_v59 }
  0x5c   :  { %6408 = vmatpush1.bf16.msra.mxu0 %v10596_v34  ;;  %6490 = vmatpush1.bf16.msra.mxu1 %v10598_v35  ;;  %v347_v1 = vld [vmem:[#allocation2 + $0x880] sm:$0xff]  ;;  %v348_v3 = vld [vmem:[#allocation2 + $0x888] sm:$0xff] }
  0x5d   :  { %6409 = vmatprep.subr.bf16.mxu0 %v10629_v36  ;;  %6491 = vmatprep.subr.bf16.mxu1 %v10631_v37  ;;  %v10757_v6 = vcombine.high %v331_v0, %v347_v1  ;;  %v10759_v7 = vcombine.high %v332_v2, %v348_v3  ;;  %v363_v8 = vld [vmem:[#allocation2 + $0x900] sm:$0xff]  ;;  %v364_v10 = vld [vmem:[#allocation2 + $0x908] sm:$0xff]  ;;  %v10756_v12 = vcombine.low %v331_v0, %v347_v1 }
  0x5e   :  { %v379_v9 = vld [vmem:[#allocation2 + $0x980] sm:$0xff]  ;;  %v380_v11 = vld [vmem:[#allocation2 + $0x988] sm:$0xff]  ;;  %v10758_v13 = vcombine.low %v332_v2, %v348_v3 }
  0x5f   :  { %v10789_v14 = vcombine.high %v363_v8, %v379_v9  ;;  %v10791_v15 = vcombine.high %v364_v10, %v380_v11  ;;  %v395_v16 = vld [vmem:[#allocation2 + $0xa00] sm:$0xff]  ;;  %v396_v18 = vld [vmem:[#allocation2 + $0xa08] sm:$0xff]  ;;  %v10788_v20 = vcombine.low %v363_v8, %v379_v9  ;;  %v10790_v21 = vcombine.low %v364_v10, %v380_v11 }
  0x60   :  { %6410 = vmatpush1.bf16.msra.mxu0 %v10628_v42  ;;  %6492 = vmatpush1.bf16.msra.mxu1 %v10630_v43  ;;  %v411_v17 = vld [vmem:[#allocation2 + $0xa80] sm:$0xff]  ;;  %v412_v19 = vld [vmem:[#allocation2 + $0xa88] sm:$0xff] }
  0x61   :  { %6411 = vmatprep.subr.bf16.mxu0 %v10661_v44  ;;  %6493 = vmatprep.subr.bf16.mxu1 %v10663_v45  ;;  %v10821_v22 = vcombine.high %v395_v16, %v411_v17  ;;  %v10823_v23 = vcombine.high %v396_v18, %v412_v19  ;;  %v427_v24 = vld [vmem:[#allocation2 + $0xb00] sm:$0xff]  ;;  %v428_v26 = vld [vmem:[#allocation2 + $0xb08] sm:$0xff]  ;;  %v10820_v28 = vcombine.low %v395_v16, %v411_v17 }
  0x62   :  { %v443_v25 = vld [vmem:[#allocation2 + $0xb80] sm:$0xff]  ;;  %v444_v27 = vld [vmem:[#allocation2 + $0xb88] sm:$0xff]  ;;  %v10822_v29 = vcombine.low %v396_v18, %v412_v19 }
  0x63   :  { %v10853_v30 = vcombine.high %v427_v24, %v443_v25  ;;  %v10855_v31 = vcombine.high %v428_v26, %v444_v27  ;;  %v459_v32 = vld [vmem:[#allocation2 + $0xc00] sm:$0xff]  ;;  %v460_v34 = vld [vmem:[#allocation2 + $0xc08] sm:$0xff]  ;;  %v10852_v36 = vcombine.low %v427_v24, %v443_v25  ;;  %v10854_v37 = vcombine.low %v428_v26, %v444_v27 }
  0x64   :  { %6412 = vmatpush1.bf16.msra.mxu0 %v10660_v50  ;;  %6494 = vmatpush1.bf16.msra.mxu1 %v10662_v51  ;;  %v475_v33 = vld [vmem:[#allocation2 + $0xc80] sm:$0xff]  ;;  %v476_v35 = vld [vmem:[#allocation2 + $0xc88] sm:$0xff] }
  0x65   :  { %6413 = vmatprep.subr.bf16.mxu0 %v10693_v52  ;;  %6495 = vmatprep.subr.bf16.mxu1 %v10695_v54  ;;  %v10885_v38 = vcombine.high %v459_v32, %v475_v33  ;;  %v10887_v39 = vcombine.high %v460_v34, %v476_v35  ;;  %v491_v40 = vld [vmem:[#allocation2 + $0xd00] sm:$0xff]  ;;  %v492_v42 = vld [vmem:[#allocation2 + $0xd08] sm:$0xff]  ;;  %v10884_v44 = vcombine.low %v459_v32, %v475_v33 }
  0x66   :  { %v507_v41 = vld [vmem:[#allocation2 + $0xd80] sm:$0xff]  ;;  %v508_v43 = vld [vmem:[#allocation2 + $0xd88] sm:$0xff]  ;;  %v10886_v45 = vcombine.low %v460_v34, %v476_v35 }
  0x67   :  { %v10917_v46 = vcombine.high %v491_v40, %v507_v41  ;;  %v10919_v47 = vcombine.high %v492_v42, %v508_v43  ;;  %v523_v48 = vld [vmem:[#allocation2 + $0xe00] sm:$0xff]  ;;  %v524_v50 = vld [vmem:[#allocation2 + $0xe08] sm:$0xff]  ;;  %v10916_v52 = vcombine.low %v491_v40, %v507_v41  ;;  %v10918_v54 = vcombine.low %v492_v42, %v508_v43 }
  0x68   :  { %6414 = vmatpush1.bf16.msra.mxu0 %v10692_v60  ;;  %6496 = vmatpush1.bf16.msra.mxu1 %v10694_v61  ;;  %v539_v49 = vld [vmem:[#allocation2 + $0xe80] sm:$0xff]  ;;  %v540_v51 = vld [vmem:[#allocation2 + $0xe88] sm:$0xff] }
  0x69   :  { %6415 = vmatprep.subr.bf16.mxu0 %v10725_v62  ;;  %6497 = vmatprep.subr.bf16.mxu1 %v10727_v63  ;;  %v10949_v55 = vcombine.high %v523_v48, %v539_v49  ;;  %v10951_v56 = vcombine.high %v524_v50, %v540_v51  ;;  %v555_v58 = vld [vmem:[#allocation2 + $0xf00] sm:$0xff]  ;;  %v556_v60 = vld [vmem:[#allocation2 + $0xf08] sm:$0xff]  ;;  %v10948_v62 = vcombine.low %v523_v48, %v539_v49 }
  0x6a   :  { %v571_v59 = vld [vmem:[#allocation2 + $0xf80] sm:$0xff]  ;;  %v572_v61 = vld [vmem:[#allocation2 + $0xf88] sm:$0xff]  ;;  %v10950_v63 = vcombine.low %v524_v50, %v540_v51 }
  0x6b   :  { %v10981_v0 = vcombine.high %v555_v58, %v571_v59  ;;  %v10983_v1 = vcombine.high %v556_v60, %v572_v61  ;;  %v587_v2 = vld [vmem:[#allocation2 + $0x1000] sm:$0xff] }
  0x6c   :  { %6416 = vmatpush1.bf16.msra.mxu0 %v10724_v4  ;;  %6498 = vmatpush1.bf16.msra.mxu1 %v10726_v5  ;;  %v603_v3 = vld [vmem:[#allocation2 + $0x1080] sm:$0xff]  ;;  %v588_v4 = vld [vmem:[#allocation2 + $0x1008] sm:$0xff] }
  0x6d   :  { %6417 = vmatprep.subr.bf16.mxu0 %v10757_v6  ;;  %6499 = vmatprep.subr.bf16.mxu1 %v10759_v7  ;;  %v604_v5 = vld [vmem:[#allocation2 + $0x1088] sm:$0xff]  ;;  %v10980_v6 = vcombine.low %v555_v58, %v571_v59  ;;  %v10982_v7 = vcombine.low %v556_v60, %v572_v61  ;;  %v11013_v8 = vcombine.high %v587_v2, %v603_v3  ;;  %v619_v10 = vld [vmem:[#allocation2 + $0x1100] sm:$0xff] }
  0x6e   :  { %v11015_v9 = vcombine.high %v588_v4, %v604_v5  ;;  %v635_v11 = vld [vmem:[#allocation2 + $0x1180] sm:$0xff]  ;;  %v11012_v16 = vcombine.low %v587_v2, %v603_v3  ;;  %v11014_v17 = vcombine.low %v588_v4, %v604_v5 }
  0x6f   :  { %v11045_v18 = vcombine.high %v619_v10, %v635_v11  ;;  %v651_v19 = vld [vmem:[#allocation2 + $0x1200] sm:$0xff]  ;;  %v11044_v24 = vcombine.low %v619_v10, %v635_v11 }
  0x70   :  { %6418 = vmatpush1.bf16.msra.mxu0 %v10756_v12  ;;  %6500 = vmatpush1.bf16.msra.mxu1 %v10758_v13  ;;  %v12728_v12 = vcombine.low %v12718_v53, %v12718_v53  ;;  %v620_v13 = vld [vmem:[#allocation2 + $0x1108] sm:$0xff]  ;;  %v683_v27 = vld [vmem:[#allocation2 + $0x1300] sm:$0xff] }
  0x71   :  { %6419 = vmatprep.subr.bf16.mxu0 %v10789_v14  ;;  %6501 = vmatprep.subr.bf16.mxu1 %v10791_v15  ;;  %v636_v14 = vld [vmem:[#allocation2 + $0x1188] sm:$0xff]  ;;  %v12733_v15 = vld [vmem:[%s13005_s0 + $0x8] sm:$0xff]  ;;  %v715_v35 = vld [vmem:[#allocation2 + $0x1400] sm:$0xff]  ;;  %s12629_s0 = smov [#allocation10]  }
  0x72   :  { %v668_v53 = vld [vmem:[#allocation2 + $0x1288] sm:$0xff]  ;;  %v11046_v25 = vcombine.low %v620_v13, %v636_v14  ;;  %v747_v43 = vld [vmem:[#allocation2 + $0x1500] sm:$0xff]  ;;  %s10485_s20 = sshll.u32 %s12629_s0, 4  ;;  %s10486_s20 = int_to_ptr.vmem [resolvable:$true] %s10485_s20 }
  0x73   :  { %v779_v51 = vld [vmem:[#allocation2 + $0x1600] sm:$0xff]  ;;  %s12591_s22 = scalar_lea.vmem %s10486_s20, 128  ;;  %p12596_p5 = scmp.lt.s32.totalorder %s10486_s20, %s10486_s20 }
  0x74   :  { %6420 = vmatpush1.bf16.msra.mxu0 %v10788_v20  ;;  %6502 = vmatpush1.bf16.msra.mxu1 %v10790_v21  ;;  %v667_v20 = vld [vmem:[#allocation2 + $0x1280] sm:$0xff]  ;;  %v652_v21 = vld [vmem:[#allocation2 + $0x1208] sm:$0xff]  ;;  %p12592_p4 = scmp.ne.s32.totalorder %s10486_s20, %s12591_s22  ;;  %p12597_p6 = scmp.lt.s32.totalorder %s12591_s22, %s12591_s22 }
  0x75   :  { %6421 = vmatprep.subr.bf16.mxu0 %v10821_v22  ;;  %6503 = vmatprep.subr.bf16.mxu1 %v10823_v23  ;;  %v11047_v22 = vcombine.high %v620_v13, %v636_v14  ;;  %v12737_v23 = vcombine.high %v12733_v15, %v12733_v15  ;;  %v11077_v26 = vcombine.high %v651_v19, %v667_v20  ;;  %v811_v61 = vld [vmem:[#allocation2 + $0x1700] sm:$0xff] }
  0x76   :  { %v11076_v32 = vcombine.low %v651_v19, %v667_v20  ;;  %v11078_v33 = vcombine.low %v652_v21, %v668_v53  ;;  %v843_v5 = vld [vmem:[#allocation2 + $0x1800] sm:$0xff]  ;;  %v892_v19 = vld [vmem:[#allocation2 + $0x1988] sm:$0xff]  ;;  %p12598_p7 = por %p12597_p6, %p12596_p5 }
  0x77   :  { %v875_v14 = vld [vmem:[#allocation2 + $0x1900] sm:$0xff] }
  0x78   :  { %6422 = vmatpush1.bf16.msra.mxu0 %v10820_v28  ;;  %6504 = vmatpush1.bf16.msra.mxu1 %v10822_v29  ;;  %v699_v28 = vld [vmem:[#allocation2 + $0x1380] sm:$0xff]  ;;  %v684_v29 = vld [vmem:[#allocation2 + $0x1308] sm:$0xff]  ;;  %p12599_p8 = pnand %p12598_p7, %p12592_p4 }
  0x79   :  { %6423 = vmatprep.subr.bf16.mxu0 %v10853_v30  ;;  %6505 = vmatprep.subr.bf16.mxu1 %v10855_v31  ;;  %v11079_v30 = vcombine.high %v652_v21, %v668_v53  ;;  %v700_v31 = vld [vmem:[#allocation2 + $0x1388] sm:$0xff]  ;;  %v11109_v34 = vcombine.high %v683_v27, %v699_v28  ;;  %v11108_v40 = vcombine.low %v683_v27, %v699_v28  ;;  %v907_v53 = vld [vmem:[#allocation2 + $0x1a00] sm:$0xff] }
  0x7a   :  { %v11110_v41 = vcombine.low %v684_v29, %v700_v31  ;;  %v924_v27 = vld [vmem:[#allocation2 + $0x1a88] sm:$0xff] }
  0x7c   :  { %6424 = vmatpush1.bf16.msra.mxu0 %v10852_v36  ;;  %6506 = vmatpush1.bf16.msra.mxu1 %v10854_v37  ;;  %v731_v36 = vld [vmem:[#allocation2 + $0x1480] sm:$0xff]  ;;  %v716_v37 = vld [vmem:[#allocation2 + $0x1408] sm:$0xff] }
  0x7d   :  { %6425 = vmatprep.subr.bf16.mxu0 %v10885_v38  ;;  %6507 = vmatprep.subr.bf16.mxu1 %v10887_v39  ;;  %v11111_v38 = vcombine.high %v684_v29, %v700_v31  ;;  %v732_v39 = vld [vmem:[#allocation2 + $0x1488] sm:$0xff]  ;;  %v11141_v42 = vcombine.high %v715_v35, %v731_v36  ;;  %v11140_v48 = vcombine.low %v715_v35, %v731_v36  ;;  %v939_v31 = vld [vmem:[#allocation2 + $0x1b00] sm:$0xff] }
  0x7e   :  { %v11142_v49 = vcombine.low %v716_v37, %v732_v39  ;;  %v956_v35 = vld [vmem:[#allocation2 + $0x1b88] sm:$0xff] }
  0x80   :  { %6426 = vmatpush1.bf16.msra.mxu0 %v10884_v44  ;;  %6508 = vmatpush1.bf16.msra.mxu1 %v10886_v45  ;;  %v763_v44 = vld [vmem:[#allocation2 + $0x1580] sm:$0xff]  ;;  %v748_v45 = vld [vmem:[#allocation2 + $0x1508] sm:$0xff] }
  0x81   :  { %6427 = vmatprep.subr.bf16.mxu0 %v10917_v46  ;;  %6509 = vmatprep.subr.bf16.mxu1 %v10919_v47  ;;  %v11143_v46 = vcombine.high %v716_v37, %v732_v39  ;;  %v764_v47 = vld [vmem:[#allocation2 + $0x1588] sm:$0xff]  ;;  %v11173_v50 = vcombine.high %v747_v43, %v763_v44  ;;  %v11172_v58 = vcombine.low %v747_v43, %v763_v44  ;;  %v971_v39 = vld [vmem:[#allocation2 + $0x1c00] sm:$0xff] }
  0x82   :  { %v11174_v59 = vcombine.low %v748_v45, %v764_v47  ;;  %v988_v43 = vld [vmem:[#allocation2 + $0x1c88] sm:$0xff] }
  0x84   :  { %6428 = vmatpush1.bf16.msra.mxu0 %v10916_v52  ;;  %6510 = vmatpush1.bf16.msra.mxu1 %v10918_v54  ;;  %v795_v52 = vld [vmem:[#allocation2 + $0x1680] sm:$0xff]  ;;  %v780_v54 = vld [vmem:[#allocation2 + $0x1608] sm:$0xff] }
  0x85   :  { %6429 = vmatprep.subr.bf16.mxu0 %v10949_v55  ;;  %6511 = vmatprep.subr.bf16.mxu1 %v10951_v56  ;;  %v11175_v55 = vcombine.high %v748_v45, %v764_v47  ;;  %v796_v56 = vld [vmem:[#allocation2 + $0x1688] sm:$0xff]  ;;  %v11205_v60 = vcombine.high %v779_v51, %v795_v52  ;;  %v11204_v2 = vcombine.low %v779_v51, %v795_v52  ;;  %v1003_v47 = vld [vmem:[#allocation2 + $0x1d00] sm:$0xff] }
  0x86   :  { %v11206_v3 = vcombine.low %v780_v54, %v796_v56  ;;  %v1020_v51 = vld [vmem:[#allocation2 + $0x1d88] sm:$0xff] }
  0x88   :  { %6430 = vmatpush1.bf16.msra.mxu0 %v10948_v62  ;;  %6512 = vmatpush1.bf16.msra.mxu1 %v10950_v63  ;;  %v827_v62 = vld [vmem:[#allocation2 + $0x1780] sm:$0xff]  ;;  %v812_v63 = vld [vmem:[#allocation2 + $0x1708] sm:$0xff] }
  0x89   :  { %6431 = vmatprep.subr.bf16.mxu0 %v10981_v0  ;;  %6513 = vmatprep.subr.bf16.mxu1 %v10983_v1  ;;  %v11207_v0 = vcombine.high %v780_v54, %v796_v56  ;;  %v828_v1 = vld [vmem:[#allocation2 + $0x1788] sm:$0xff]  ;;  %v11237_v4 = vcombine.high %v811_v61, %v827_v62  ;;  %v11236_v10 = vcombine.low %v811_v61, %v827_v62  ;;  %v1035_v56 = vld [vmem:[#allocation2 + $0x1e00] sm:$0xff] }
  0x8a   :  { %v11238_v11 = vcombine.low %v812_v63, %v828_v1  ;;  %v1052_v61 = vld [vmem:[#allocation2 + $0x1e88] sm:$0xff] }
  0x8c   :  { %6432 = vmatpush1.bf16.msra.mxu0 %v10980_v6  ;;  %6514 = vmatpush1.bf16.msra.mxu1 %v10982_v7  ;;  %v859_v6 = vld [vmem:[#allocation2 + $0x1880] sm:$0xff]  ;;  %v844_v7 = vld [vmem:[#allocation2 + $0x1808] sm:$0xff] }
  0x8d   :  { %6442 = vmatprep.subr.bf16.mxu0 %v11013_v8  ;;  %6524 = vmatprep.subr.bf16.mxu1 %v11015_v9  ;;  %v11239_v8 = vcombine.high %v812_v63, %v828_v1  ;;  %v860_v9 = vld [vmem:[#allocation2 + $0x1888] sm:$0xff]  ;;  %v11269_v13 = vcombine.high %v843_v5, %v859_v6  ;;  %v11268_v20 = vcombine.low %v843_v5, %v859_v6  ;;  %v1067_v1 = vld [vmem:[#allocation2 + $0x1f00] sm:$0xff] }
  0x8e   :  { %v11270_v21 = vcombine.low %v844_v7, %v860_v9  ;;  %v1084_v5 = vld [vmem:[#allocation2 + $0x1f88] sm:$0xff] }
  0x8f   :  { %6434 = vmatmul.mubr.bf16.vlgmr.msra.gmra.mrb[0].mxu0 %v12728_v12  ;;  %6516 = vmatmul.mubr.bf16.vlgmr.msra.gmra.mrb[0].mxu1 %v12728_v12 }
  0x90   :  { %6443 = vmatpush1.bf16.msra.mxu0 %v11012_v16  ;;  %6525 = vmatpush1.bf16.msra.mxu1 %v11014_v17  ;;  %v891_v16 = vld [vmem:[#allocation2 + $0x1980] sm:$0xff]  ;;  %v876_v17 = vld [vmem:[#allocation2 + $0x1908] sm:$0xff] }
  0x91   :  { %6444 = vmatprep.subr.bf16.mxu0 %v11045_v18  ;;  %6526 = vmatprep.subr.bf16.mxu1 %v11047_v22  ;;  %v11271_v18 = vcombine.high %v844_v7, %v860_v9  ;;  %v11301_v22 = vcombine.high %v875_v14, %v891_v16  ;;  %v11300_v28 = vcombine.low %v875_v14, %v891_v16  ;;  %v77_v9 = vld [vmem:[#allocation2 + $0x10] sm:$0xff]  ;;  %v94_v14 = vld [vmem:[#allocation2 + $0x98] sm:$0xff] }
  0x92   :  { %6474 = vmatprep.mubr.bf16.mxu0 %v12737_v23  ;;  %6556 = vmatprep.mubr.bf16.mxu1 %v12737_v23  ;;  %v11302_v29 = vcombine.low %v876_v17, %v892_v19 }
  0x94   :  { %6445 = vmatpush1.bf16.msra.mxu0 %v11044_v24  ;;  %6527 = vmatpush1.bf16.msra.mxu1 %v11046_v25  ;;  %v923_v24 = vld [vmem:[#allocation2 + $0x1a80] sm:$0xff]  ;;  %v908_v25 = vld [vmem:[#allocation2 + $0x1a08] sm:$0xff] }
  0x95   :  { %6446 = vmatprep.subr.bf16.mxu0 %v11077_v26  ;;  %6528 = vmatprep.subr.bf16.mxu1 %v11079_v30  ;;  %v11303_v26 = vcombine.high %v876_v17, %v892_v19  ;;  %v11333_v30 = vcombine.high %v907_v53, %v923_v24  ;;  %v11332_v36 = vcombine.low %v907_v53, %v923_v24  ;;  %v109_v19 = vld [vmem:[#allocation2 + $0x110] sm:$0xff]  ;;  %v126_v53 = vld [vmem:[#allocation2 + $0x198] sm:$0xff] }
  0x96   :  { %v11334_v37 = vcombine.low %v908_v25, %v924_v27  ;;  %v12745_v24 = vcombine.low %v12733_v15, %v12733_v15 }
  0x98   :  { %6447 = vmatpush1.bf16.msra.mxu0 %v11076_v32  ;;  %6529 = vmatpush1.bf16.msra.mxu1 %v11078_v33  ;;  %v955_v32 = vld [vmem:[#allocation2 + $0x1b80] sm:$0xff]  ;;  %v940_v33 = vld [vmem:[#allocation2 + $0x1b08] sm:$0xff] }
  0x99   :  { %6448 = vmatprep.subr.bf16.mxu0 %v11109_v34  ;;  %6530 = vmatprep.subr.bf16.mxu1 %v11111_v38  ;;  %v11335_v34 = vcombine.high %v908_v25, %v924_v27  ;;  %v11365_v38 = vcombine.high %v939_v31, %v955_v32  ;;  %v11364_v44 = vcombine.low %v939_v31, %v955_v32  ;;  %v158_v32 = vld [vmem:[#allocation2 + $0x298] sm:$0xff] }
  0x9a   :  { %v11366_v45 = vcombine.low %v940_v33, %v956_v35 }
  0x9c   :  { %6449 = vmatpush1.bf16.msra.mxu0 %v11108_v40  ;;  %6531 = vmatpush1.bf16.msra.mxu1 %v11110_v41  ;;  %v987_v40 = vld [vmem:[#allocation2 + $0x1c80] sm:$0xff]  ;;  %v972_v41 = vld [vmem:[#allocation2 + $0x1c08] sm:$0xff] }
  0x9d   :  { %6450 = vmatprep.subr.bf16.mxu0 %v11141_v42  ;;  %6532 = vmatprep.subr.bf16.mxu1 %v11143_v46  ;;  %v11367_v42 = vcombine.high %v940_v33, %v956_v35  ;;  %v11397_v46 = vcombine.high %v971_v39, %v987_v40  ;;  %v11396_v52 = vcombine.low %v971_v39, %v987_v40  ;;  %v173_v35 = vld [vmem:[#allocation2 + $0x310] sm:$0xff]  ;;  %v190_v39 = vld [vmem:[#allocation2 + $0x398] sm:$0xff] }
  0x9e   :  { %v11398_v54 = vcombine.low %v972_v41, %v988_v43 }
  0xa0   :  { %6451 = vmatpush1.bf16.msra.mxu0 %v11140_v48  ;;  %6533 = vmatpush1.bf16.msra.mxu1 %v11142_v49  ;;  %v1019_v48 = vld [vmem:[#allocation2 + $0x1d80] sm:$0xff]  ;;  %v1004_v49 = vld [vmem:[#allocation2 + $0x1d08] sm:$0xff] }
  0xa1   :  { %6452 = vmatprep.subr.bf16.mxu0 %v11173_v50  ;;  %6534 = vmatprep.subr.bf16.mxu1 %v11175_v55  ;;  %v11399_v50 = vcombine.high %v972_v41, %v988_v43  ;;  %v11429_v55 = vcombine.high %v1003_v47, %v1019_v48  ;;  %v11428_v62 = vcombine.low %v1003_v47, %v1019_v48  ;;  %v205_v43 = vld [vmem:[#allocation2 + $0x410] sm:$0xff]  ;;  %v222_v47 = vld [vmem:[#allocation2 + $0x498] sm:$0xff] }
  0xa2   :  { %v11430_v63 = vcombine.low %v1004_v49, %v1020_v51 }
  0xa4   :  { %6453 = vmatpush1.bf16.msra.mxu0 %v11172_v58  ;;  %6535 = vmatpush1.bf16.msra.mxu1 %v11174_v59  ;;  %v1051_v58 = vld [vmem:[#allocation2 + $0x1e80] sm:$0xff]  ;;  %v1036_v59 = vld [vmem:[#allocation2 + $0x1e08] sm:$0xff] }
  0xa5   :  { %6454 = vmatprep.subr.bf16.mxu0 %v11205_v60  ;;  %6536 = vmatprep.subr.bf16.mxu1 %v11207_v0  ;;  %v11431_v60 = vcombine.high %v1004_v49, %v1020_v51  ;;  %v11461_v0 = vcombine.high %v1035_v56, %v1051_v58  ;;  %v11460_v6 = vcombine.low %v1035_v56, %v1051_v58  ;;  %v237_v51 = vld [vmem:[#allocation2 + $0x510] sm:$0xff]  ;;  %v254_v56 = vld [vmem:[#allocation2 + $0x598] sm:$0xff] }
  0xa6   :  { %v11462_v7 = vcombine.low %v1036_v59, %v1052_v61 }
  0xa8   :  { %6455 = vmatpush1.bf16.msra.mxu0 %v11204_v2  ;;  %6537 = vmatpush1.bf16.msra.mxu1 %v11206_v3  ;;  %v1083_v2 = vld [vmem:[#allocation2 + $0x1f80] sm:$0xff]  ;;  %v1068_v3 = vld [vmem:[#allocation2 + $0x1f08] sm:$0xff] }
  0xa9   :  { %6456 = vmatprep.subr.bf16.mxu0 %v11237_v4  ;;  %6538 = vmatprep.subr.bf16.mxu1 %v11239_v8  ;;  %v11463_v4 = vcombine.high %v1036_v59, %v1052_v61  ;;  %v11493_v8 = vcombine.high %v1067_v1, %v1083_v2  ;;  %v11492_v16 = vcombine.low %v1067_v1, %v1083_v2  ;;  %v269_v61 = vld [vmem:[#allocation2 + $0x610] sm:$0xff]  ;;  %v286_v1 = vld [vmem:[#allocation2 + $0x698] sm:$0xff] }
  0xaa   :  { %v11494_v17 = vcombine.low %v1068_v3, %v1084_v5 }
  0xac   :  { %6457 = vmatpush1.bf16.msra.mxu0 %v11236_v10  ;;  %6539 = vmatpush1.bf16.msra.mxu1 %v11238_v11  ;;  %v93_v10 = vld [vmem:[#allocation2 + $0x90] sm:$0xff]  ;;  %v78_v11 = vld [vmem:[#allocation2 + $0x18] sm:$0xff] }
  0xad   :  { %6458 = vmatprep.subr.bf16.mxu0 %v11269_v13  ;;  %6540 = vmatprep.subr.bf16.mxu1 %v11271_v18  ;;  %v11495_v13 = vcombine.high %v1068_v3, %v1084_v5  ;;  %v10505_v18 = vcombine.high %v77_v9, %v93_v10  ;;  %v10504_v25 = vcombine.low %v77_v9, %v93_v10  ;;  %v301_v5 = vld [vmem:[#allocation2 + $0x710] sm:$0xff]  ;;  %v318_v9 = vld [vmem:[#allocation2 + $0x798] sm:$0xff] }
  0xb0   :  { %6459 = vmatpush1.bf16.msra.mxu0 %v11268_v20  ;;  %6541 = vmatpush1.bf16.msra.mxu1 %v11270_v21  ;;  %v125_v20 = vld [vmem:[#allocation2 + $0x190] sm:$0xff]  ;;  %v110_v21 = vld [vmem:[#allocation2 + $0x118] sm:$0xff] }
  0xb1   :  { %6460 = vmatprep.subr.bf16.mxu0 %v11301_v22  ;;  %6542 = vmatprep.subr.bf16.mxu1 %v11303_v26  ;;  %v10507_v22 = vcombine.high %v78_v11, %v94_v14  ;;  %v10506_v26 = vcombine.low %v78_v11, %v94_v14  ;;  %v10537_v27 = vcombine.high %v109_v19, %v125_v20  ;;  %v333_v14 = vld [vmem:[#allocation2 + $0x810] sm:$0xff] }
  0xb2   :  { %v10539_v31 = vcombine.high %v110_v21, %v126_v53  ;;  %v10536_v33 = vcombine.low %v109_v19, %v125_v20  ;;  %v10538_v15 = vcombine.low %v110_v21, %v126_v53  ;;  %v350_v19 = vld [vmem:[#allocation2 + $0x898] sm:$0xff]  ;;  %v365_v53 = vld [vmem:[#allocation2 + $0x910] sm:$0xff] }
  0xb4   :  { %6461 = vmatpush1.bf16.msra.mxu0 %v11300_v28  ;;  %6543 = vmatpush1.bf16.msra.mxu1 %v11302_v29  ;;  %v141_v28 = vld [vmem:[#allocation2 + $0x210] sm:$0xff] }
  0xb5   :  { %6462 = vmatprep.subr.bf16.mxu0 %v11333_v30  ;;  %6544 = vmatprep.subr.bf16.mxu1 %v11335_v34  ;;  %v157_v29 = vld [vmem:[#allocation2 + $0x290] sm:$0xff]  ;;  %v142_v30 = vld [vmem:[#allocation2 + $0x218] sm:$0xff] }
  0xb6   :  { %v10569_v34 = vcombine.high %v141_v28, %v157_v29  ;;  %v10568_v40 = vcombine.low %v141_v28, %v157_v29  ;;  %v10570_v41 = vcombine.low %v142_v30, %v158_v32  ;;  %v382_v28 = vld [vmem:[#allocation2 + $0x998] sm:$0xff] }
  0xb8   :  { %6463 = vmatpush1.bf16.msra.mxu0 %v11332_v36  ;;  %6545 = vmatpush1.bf16.msra.mxu1 %v11334_v37  ;;  %v189_v36 = vld [vmem:[#allocation2 + $0x390] sm:$0xff]  ;;  %v174_v37 = vld [vmem:[#allocation2 + $0x318] sm:$0xff] }
  0xb9   :  { %6464 = vmatprep.subr.bf16.mxu0 %v11365_v38  ;;  %6546 = vmatprep.subr.bf16.mxu1 %v11367_v42  ;;  %v10571_v38 = vcombine.high %v142_v30, %v158_v32  ;;  %v10601_v42 = vcombine.high %v173_v35, %v189_v36  ;;  %v10600_v48 = vcombine.low %v173_v35, %v189_v36  ;;  %v397_v32 = vld [vmem:[#allocation2 + $0xa10] sm:$0xff]  ;;  %v414_v35 = vld [vmem:[#allocation2 + $0xa98] sm:$0xff] }
  0xba   :  { %v10602_v49 = vcombine.low %v174_v37, %v190_v39 }
  0xbc   :  { %6465 = vmatpush1.bf16.msra.mxu0 %v11364_v44  ;;  %6547 = vmatpush1.bf16.msra.mxu1 %v11366_v45  ;;  %v221_v44 = vld [vmem:[#allocation2 + $0x490] sm:$0xff]  ;;  %v206_v45 = vld [vmem:[#allocation2 + $0x418] sm:$0xff] }
  0xbd   :  { %6466 = vmatprep.subr.bf16.mxu0 %v11397_v46  ;;  %6548 = vmatprep.subr.bf16.mxu1 %v11399_v50  ;;  %v10603_v46 = vcombine.high %v174_v37, %v190_v39  ;;  %v10633_v50 = vcombine.high %v205_v43, %v221_v44  ;;  %v10632_v58 = vcombine.low %v205_v43, %v221_v44  ;;  %v429_v39 = vld [vmem:[#allocation2 + $0xb10] sm:$0xff]  ;;  %v446_v43 = vld [vmem:[#allocation2 + $0xb98] sm:$0xff] }
  0xbe   :  { %v10634_v59 = vcombine.low %v206_v45, %v222_v47 }
  0xc0   :  { %6467 = vmatpush1.bf16.msra.mxu0 %v11396_v52  ;;  %6549 = vmatpush1.bf16.msra.mxu1 %v11398_v54  ;;  %v253_v52 = vld [vmem:[#allocation2 + $0x590] sm:$0xff]  ;;  %v238_v54 = vld [vmem:[#allocation2 + $0x518] sm:$0xff] }
  0xc1   :  { %6468 = vmatprep.subr.bf16.mxu0 %v11429_v55  ;;  %6550 = vmatprep.subr.bf16.mxu1 %v11431_v60  ;;  %v10635_v55 = vcombine.high %v206_v45, %v222_v47  ;;  %v10665_v60 = vcombine.high %v237_v51, %v253_v52  ;;  %v10664_v2 = vcombine.low %v237_v51, %v253_v52  ;;  %v461_v47 = vld [vmem:[#allocation2 + $0xc10] sm:$0xff]  ;;  %v478_v51 = vld [vmem:[#allocation2 + $0xc98] sm:$0xff] }
  0xc2   :  { %v10666_v3 = vcombine.low %v238_v54, %v254_v56 }
  0xc4   :  { %6469 = vmatpush1.bf16.msra.mxu0 %v11428_v62  ;;  %6551 = vmatpush1.bf16.msra.mxu1 %v11430_v63  ;;  %v285_v62 = vld [vmem:[#allocation2 + $0x690] sm:$0xff]  ;;  %v270_v63 = vld [vmem:[#allocation2 + $0x618] sm:$0xff] }
  0xc5   :  { %6470 = vmatprep.subr.bf16.mxu0 %v11461_v0  ;;  %6552 = vmatprep.subr.bf16.mxu1 %v11463_v4  ;;  %v10667_v0 = vcombine.high %v238_v54, %v254_v56  ;;  %v10697_v4 = vcombine.high %v269_v61, %v285_v62  ;;  %v10696_v10 = vcombine.low %v269_v61, %v285_v62  ;;  %v493_v56 = vld [vmem:[#allocation2 + $0xd10] sm:$0xff]  ;;  %v510_v61 = vld [vmem:[#allocation2 + $0xd98] sm:$0xff] }
  0xc6   :  { %v10698_v11 = vcombine.low %v270_v63, %v286_v1 }
  0xc8   :  { %6471 = vmatpush1.bf16.msra.mxu0 %v11460_v6  ;;  %6553 = vmatpush1.bf16.msra.mxu1 %v11462_v7  ;;  %v317_v6 = vld [vmem:[#allocation2 + $0x790] sm:$0xff]  ;;  %v302_v7 = vld [vmem:[#allocation2 + $0x718] sm:$0xff] }
  0xc9   :  { %6472 = vmatprep.subr.bf16.mxu0 %v11493_v8  ;;  %6554 = vmatprep.subr.bf16.mxu1 %v11495_v13  ;;  %v10699_v8 = vcombine.high %v270_v63, %v286_v1  ;;  %v10729_v13 = vcombine.high %v301_v5, %v317_v6  ;;  %v10728_v20 = vcombine.low %v301_v5, %v317_v6  ;;  %v525_v1 = vld [vmem:[#allocation2 + $0xe10] sm:$0xff]  ;;  %v542_v5 = vld [vmem:[#allocation2 + $0xe98] sm:$0xff] }
  0xca   :  { %v10730_v21 = vcombine.low %v302_v7, %v318_v9 }
  0xcc   :  { %6473 = vmatpush1.bf16.msra.mxu0 %v11492_v16  ;;  %6555 = vmatpush1.bf16.msra.mxu1 %v11494_v17  ;;  %v349_v16 = vld [vmem:[#allocation2 + $0x890] sm:$0xff]  ;;  %v334_v17 = vld [vmem:[#allocation2 + $0x818] sm:$0xff] }
  0xcd   :  { %6565 = vmatprep.subr.bf16.mxu0 %v10505_v18  ;;  %6647 = vmatprep.subr.bf16.mxu1 %v10507_v22  ;;  %v10731_v18 = vcombine.high %v302_v7, %v318_v9  ;;  %v10761_v22 = vcombine.high %v333_v14, %v349_v16  ;;  %v10760_v29 = vcombine.low %v333_v14, %v349_v16  ;;  %v557_v9 = vld [vmem:[#allocation2 + $0xf10] sm:$0xff]  ;;  %v574_v14 = vld [vmem:[#allocation2 + $0xf98] sm:$0xff] }
  0xce   :  { %v10762_v30 = vcombine.low %v334_v17, %v350_v19 }
  0xcf   :  { %6475 = vmatmul.mubr.bf16.vlgmr.msra.gmra.mrb[0].mxu0 %v12745_v24  ;;  %6557 = vmatmul.mubr.bf16.vlgmr.msra.gmra.mrb[0].mxu1 %v12745_v24 }
  0xd0   :  { %6566 = vmatpush1.bf16.msra.mxu0 %v10504_v25  ;;  %6648 = vmatpush1.bf16.msra.mxu1 %v10506_v26  ;;  %v381_v25 = vld [vmem:[#allocation2 + $0x990] sm:$0xff]  ;;  %v366_v26 = vld [vmem:[#allocation2 + $0x918] sm:$0xff] }
  0xd1   :  { %6567 = vmatprep.subr.bf16.mxu0 %v10537_v27  ;;  %6649 = vmatprep.subr.bf16.mxu1 %v10539_v31  ;;  %v10763_v27 = vcombine.high %v334_v17, %v350_v19  ;;  %v10793_v31 = vcombine.high %v365_v53, %v381_v25  ;;  %v10792_v36 = vcombine.low %v365_v53, %v381_v25  ;;  %v589_v19 = vld [vmem:[#allocation2 + $0x1010] sm:$0xff]  ;;  %v606_v53 = vld [vmem:[#allocation2 + $0x1098] sm:$0xff] }
  0xd2   :  { %6597 = vmatprep.mubr.bf16.mxu0 %v12722_v57  ;;  %6679 = vmatprep.mubr.bf16.mxu1 %v12722_v57  ;;  %v10794_v37 = vcombine.low %v366_v26, %v382_v28 }
  0xd4   :  { %6568 = vmatpush1.bf16.msra.mxu0 %v10536_v33  ;;  %6650 = vmatpush1.bf16.msra.mxu1 %v10538_v15  ;;  %v413_v33 = vld [vmem:[#allocation2 + $0xa90] sm:$0xff]  ;;  %v398_v15 = vld [vmem:[#allocation2 + $0xa18] sm:$0xff] }
  0xd5   :  { %6569 = vmatprep.subr.bf16.mxu0 %v10569_v34  ;;  %6651 = vmatprep.subr.bf16.mxu1 %v10571_v38  ;;  %v10795_v34 = vcombine.high %v366_v26, %v382_v28  ;;  %v10825_v38 = vcombine.high %v397_v32, %v413_v33  ;;  %v10824_v44 = vcombine.low %v397_v32, %v413_v33  ;;  %v621_v28 = vld [vmem:[#allocation2 + $0x1110] sm:$0xff]  ;;  %v638_v32 = vld [vmem:[#allocation2 + $0x1198] sm:$0xff] }
  0xd6   :  { %v10826_v45 = vcombine.low %v398_v15, %v414_v35 }
  0xd8   :  { %6570 = vmatpush1.bf16.msra.mxu0 %v10568_v40  ;;  %6652 = vmatpush1.bf16.msra.mxu1 %v10570_v41  ;;  %v445_v40 = vld [vmem:[#allocation2 + $0xb90] sm:$0xff]  ;;  %v430_v41 = vld [vmem:[#allocation2 + $0xb18] sm:$0xff] }
  0xd9   :  { %6571 = vmatprep.subr.bf16.mxu0 %v10601_v42  ;;  %6653 = vmatprep.subr.bf16.mxu1 %v10603_v46  ;;  %v10827_v42 = vcombine.high %v398_v15, %v414_v35  ;;  %v10857_v46 = vcombine.high %v429_v39, %v445_v40  ;;  %v10856_v52 = vcombine.low %v429_v39, %v445_v40  ;;  %v653_v35 = vld [vmem:[#allocation2 + $0x1210] sm:$0xff]  ;;  %v670_v39 = vld [vmem:[#allocation2 + $0x1298] sm:$0xff] }
  0xda   :  { %v10858_v54 = vcombine.low %v430_v41, %v446_v43 }
  0xdc   :  { %6572 = vmatpush1.bf16.msra.mxu0 %v10600_v48  ;;  %6654 = vmatpush1.bf16.msra.mxu1 %v10602_v49  ;;  %v477_v48 = vld [vmem:[#allocation2 + $0xc90] sm:$0xff]  ;;  %v462_v49 = vld [vmem:[#allocation2 + $0xc18] sm:$0xff] }
  0xdd   :  { %6573 = vmatprep.subr.bf16.mxu0 %v10633_v50  ;;  %6655 = vmatprep.subr.bf16.mxu1 %v10635_v55  ;;  %v10859_v50 = vcombine.high %v430_v41, %v446_v43  ;;  %v10889_v55 = vcombine.high %v461_v47, %v477_v48  ;;  %v10888_v62 = vcombine.low %v461_v47, %v477_v48  ;;  %v685_v43 = vld [vmem:[#allocation2 + $0x1310] sm:$0xff]  ;;  %v702_v47 = vld [vmem:[#allocation2 + $0x1398] sm:$0xff] }
  0xde   :  { %v10890_v63 = vcombine.low %v462_v49, %v478_v51 }
  0xe0   :  { %6574 = vmatpush1.bf16.msra.mxu0 %v10632_v58  ;;  %6656 = vmatpush1.bf16.msra.mxu1 %v10634_v59  ;;  %v509_v58 = vld [vmem:[#allocation2 + $0xd90] sm:$0xff]  ;;  %v494_v59 = vld [vmem:[#allocation2 + $0xd18] sm:$0xff] }
  0xe1   :  { %6575 = vmatprep.subr.bf16.mxu0 %v10665_v60  ;;  %6657 = vmatprep.subr.bf16.mxu1 %v10667_v0  ;;  %v10891_v60 = vcombine.high %v462_v49, %v478_v51  ;;  %v10921_v0 = vcombine.high %v493_v56, %v509_v58  ;;  %v10920_v6 = vcombine.low %v493_v56, %v509_v58  ;;  %v717_v51 = vld [vmem:[#allocation2 + $0x1410] sm:$0xff]  ;;  %v734_v56 = vld [vmem:[#allocation2 + $0x1498] sm:$0xff] }
  0xe2   :  { %v10922_v7 = vcombine.low %v494_v59, %v510_v61 }
  0xe4   :  { %6576 = vmatpush1.bf16.msra.mxu0 %v10664_v2  ;;  %6658 = vmatpush1.bf16.msra.mxu1 %v10666_v3  ;;  %v541_v2 = vld [vmem:[#allocation2 + $0xe90] sm:$0xff]  ;;  %v526_v3 = vld [vmem:[#allocation2 + $0xe18] sm:$0xff] }
  0xe5   :  { %6577 = vmatprep.subr.bf16.mxu0 %v10697_v4  ;;  %6659 = vmatprep.subr.bf16.mxu1 %v10699_v8  ;;  %v10923_v4 = vcombine.high %v494_v59, %v510_v61  ;;  %v10953_v8 = vcombine.high %v525_v1, %v541_v2  ;;  %v10952_v16 = vcombine.low %v525_v1, %v541_v2  ;;  %v749_v61 = vld [vmem:[#allocation2 + $0x1510] sm:$0xff]  ;;  %v766_v1 = vld [vmem:[#allocation2 + $0x1598] sm:$0xff] }
  0xe6   :  { %v10954_v17 = vcombine.low %v526_v3, %v542_v5 }
  0xe8   :  { %6578 = vmatpush1.bf16.msra.mxu0 %v10696_v10  ;;  %6660 = vmatpush1.bf16.msra.mxu1 %v10698_v11  ;;  %v573_v10 = vld [vmem:[#allocation2 + $0xf90] sm:$0xff]  ;;  %v558_v11 = vld [vmem:[#allocation2 + $0xf18] sm:$0xff] }
  0xe9   :  { %6579 = vmatprep.subr.bf16.mxu0 %v10729_v13  ;;  %6661 = vmatprep.subr.bf16.mxu1 %v10731_v18  ;;  %v10955_v13 = vcombine.high %v526_v3, %v542_v5  ;;  %v10985_v18 = vcombine.high %v557_v9, %v573_v10  ;;  %v10984_v25 = vcombine.low %v557_v9, %v573_v10  ;;  %v781_v5 = vld [vmem:[#allocation2 + $0x1610] sm:$0xff]  ;;  %v798_v9 = vld [vmem:[#allocation2 + $0x1698] sm:$0xff] }
  0xea   :  { %v10986_v26 = vcombine.low %v558_v11, %v574_v14 }
  0xec   :  { %6580 = vmatpush1.bf16.msra.mxu0 %v10728_v20  ;;  %6662 = vmatpush1.bf16.msra.mxu1 %v10730_v21  ;;  %v605_v20 = vld [vmem:[#allocation2 + $0x1090] sm:$0xff]  ;;  %v590_v21 = vld [vmem:[#allocation2 + $0x1018] sm:$0xff] }
  0xed   :  { %6581 = vmatprep.subr.bf16.mxu0 %v10761_v22  ;;  %6663 = vmatprep.subr.bf16.mxu1 %v10763_v27  ;;  %v10987_v22 = vcombine.high %v558_v11, %v574_v14  ;;  %v11017_v27 = vcombine.high %v589_v19, %v605_v20  ;;  %v11016_v33 = vcombine.low %v589_v19, %v605_v20  ;;  %v813_v14 = vld [vmem:[#allocation2 + $0x1710] sm:$0xff]  ;;  %v830_v19 = vld [vmem:[#allocation2 + $0x1798] sm:$0xff] }
  0xee   :  { %v11018_v15 = vcombine.low %v590_v21, %v606_v53 }
  0xf0   :  { %6582 = vmatpush1.bf16.msra.mxu0 %v10760_v29  ;;  %6664 = vmatpush1.bf16.msra.mxu1 %v10762_v30  ;;  %v637_v29 = vld [vmem:[#allocation2 + $0x1190] sm:$0xff]  ;;  %v622_v30 = vld [vmem:[#allocation2 + $0x1118] sm:$0xff] }
  0xf1   :  { %6583 = vmatprep.subr.bf16.mxu0 %v10793_v31  ;;  %6665 = vmatprep.subr.bf16.mxu1 %v10795_v34  ;;  %v11019_v31 = vcombine.high %v590_v21, %v606_v53  ;;  %v11049_v34 = vcombine.high %v621_v28, %v637_v29  ;;  %v11048_v40 = vcombine.low %v621_v28, %v637_v29  ;;  %v845_v53 = vld [vmem:[#allocation2 + $0x1810] sm:$0xff]  ;;  %v862_v28 = vld [vmem:[#allocation2 + $0x1898] sm:$0xff] }
  0xf2   :  { %v11050_v41 = vcombine.low %v622_v30, %v638_v32 }
  0xf4   :  { %6584 = vmatpush1.bf16.msra.mxu0 %v10792_v36  ;;  %6666 = vmatpush1.bf16.msra.mxu1 %v10794_v37  ;;  %v669_v36 = vld [vmem:[#allocation2 + $0x1290] sm:$0xff]  ;;  %v654_v37 = vld [vmem:[#allocation2 + $0x1218] sm:$0xff] }
  0xf5   :  { %6585 = vmatprep.subr.bf16.mxu0 %v10825_v38  ;;  %6667 = vmatprep.subr.bf16.mxu1 %v10827_v42  ;;  %v11051_v38 = vcombine.high %v622_v30, %v638_v32  ;;  %v11081_v42 = vcombine.high %v653_v35, %v669_v36  ;;  %v11080_v48 = vcombine.low %v653_v35, %v669_v36  ;;  %v877_v32 = vld [vmem:[#allocation2 + $0x1910] sm:$0xff]  ;;  %v894_v35 = vld [vmem:[#allocation2 + $0x1998] sm:$0xff] }
  0xf6   :  { %v11082_v49 = vcombine.low %v654_v37, %v670_v39 }
  0xf8   :  { %6586 = vmatpush1.bf16.msra.mxu0 %v10824_v44  ;;  %6668 = vmatpush1.bf16.msra.mxu1 %v10826_v45  ;;  %v701_v44 = vld [vmem:[#allocation2 + $0x1390] sm:$0xff]  ;;  %v686_v45 = vld [vmem:[#allocation2 + $0x1318] sm:$0xff] }
  0xf9   :  { %6587 = vmatprep.subr.bf16.mxu0 %v10857_v46  ;;  %6669 = vmatprep.subr.bf16.mxu1 %v10859_v50  ;;  %v11083_v46 = vcombine.high %v654_v37, %v670_v39  ;;  %v11113_v50 = vcombine.high %v685_v43, %v701_v44  ;;  %v11112_v58 = vcombine.low %v685_v43, %v701_v44  ;;  %v909_v39 = vld [vmem:[#allocation2 + $0x1a10] sm:$0xff]  ;;  %v926_v43 = vld [vmem:[#allocation2 + $0x1a98] sm:$0xff] }
  0xfa   :  { %v11114_v59 = vcombine.low %v686_v45, %v702_v47 }
  0xfc   :  { %6588 = vmatpush1.bf16.msra.mxu0 %v10856_v52  ;;  %6670 = vmatpush1.bf16.msra.mxu1 %v10858_v54  ;;  %v733_v52 = vld [vmem:[#allocation2 + $0x1490] sm:$0xff]  ;;  %v718_v54 = vld [vmem:[#allocation2 + $0x1418] sm:$0xff] }
  0xfd   :  { %6589 = vmatprep.subr.bf16.mxu0 %v10889_v55  ;;  %6671 = vmatprep.subr.bf16.mxu1 %v10891_v60  ;;  %v11115_v55 = vcombine.high %v686_v45, %v702_v47  ;;  %v11145_v60 = vcombine.high %v717_v51, %v733_v52  ;;  %v11144_v2 = vcombine.low %v717_v51, %v733_v52  ;;  %v941_v47 = vld [vmem:[#allocation2 + $0x1b10] sm:$0xff]  ;;  %v958_v51 = vld [vmem:[#allocation2 + $0x1b98] sm:$0xff] }
  0xfe   :  { %v11146_v3 = vcombine.low %v718_v54, %v734_v56 }
 0x100   :  { %6590 = vmatpush1.bf16.msra.mxu0 %v10888_v62  ;;  %6672 = vmatpush1.bf16.msra.mxu1 %v10890_v63  ;;  %v765_v62 = vld [vmem:[#allocation2 + $0x1590] sm:$0xff]  ;;  %v750_v63 = vld [vmem:[#allocation2 + $0x1518] sm:$0xff] }
 0x101   :  { %6591 = vmatprep.subr.bf16.mxu0 %v10921_v0  ;;  %6673 = vmatprep.subr.bf16.mxu1 %v10923_v4  ;;  %v11147_v0 = vcombine.high %v718_v54, %v734_v56  ;;  %v11177_v4 = vcombine.high %v749_v61, %v765_v62  ;;  %v11176_v10 = vcombine.low %v749_v61, %v765_v62  ;;  %v973_v56 = vld [vmem:[#allocation2 + $0x1c10] sm:$0xff]  ;;  %v990_v61 = vld [vmem:[#allocation2 + $0x1c98] sm:$0xff] }
 0x102   :  { %v11178_v11 = vcombine.low %v750_v63, %v766_v1 }
 0x104   :  { %6592 = vmatpush1.bf16.msra.mxu0 %v10920_v6  ;;  %6674 = vmatpush1.bf16.msra.mxu1 %v10922_v7  ;;  %v797_v6 = vld [vmem:[#allocation2 + $0x1690] sm:$0xff]  ;;  %v782_v7 = vld [vmem:[#allocation2 + $0x1618] sm:$0xff] }
 0x105   :  { %6593 = vmatprep.subr.bf16.mxu0 %v10953_v8  ;;  %6675 = vmatprep.subr.bf16.mxu1 %v10955_v13  ;;  %v11179_v8 = vcombine.high %v750_v63, %v766_v1  ;;  %v11209_v13 = vcombine.high %v781_v5, %v797_v6  ;;  %v11208_v20 = vcombine.low %v781_v5, %v797_v6  ;;  %v1005_v1 = vld [vmem:[#allocation2 + $0x1d10] sm:$0xff]  ;;  %v1022_v5 = vld [vmem:[#allocation2 + $0x1d98] sm:$0xff] }
 0x106   :  { %v11210_v21 = vcombine.low %v782_v7, %v798_v9 }
 0x108   :  { %6594 = vmatpush1.bf16.msra.mxu0 %v10952_v16  ;;  %6676 = vmatpush1.bf16.msra.mxu1 %v10954_v17  ;;  %v829_v16 = vld [vmem:[#allocation2 + $0x1790] sm:$0xff]  ;;  %v11211_v17 = vcombine.high %v782_v7, %v798_v9 }
 0x109   :  { %6595 = vmatprep.subr.bf16.mxu0 %v10985_v18  ;;  %6677 = vmatprep.subr.bf16.mxu1 %v10987_v22  ;;  %v814_v18 = vld [vmem:[#allocation2 + $0x1718] sm:$0xff]  ;;  %v11241_v22 = vcombine.high %v813_v14, %v829_v16  ;;  %v11240_v29 = vcombine.low %v813_v14, %v829_v16  ;;  %v1037_v9 = vld [vmem:[#allocation2 + $0x1e10] sm:$0xff] }
 0x10a   :  { %v11242_v30 = vcombine.low %v814_v18, %v830_v19  ;;  %v1054_v14 = vld [vmem:[#allocation2 + $0x1e98] sm:$0xff] }
 0x10c   :  { %6596 = vmatpush1.bf16.msra.mxu0 %v10984_v25  ;;  %6678 = vmatpush1.bf16.msra.mxu1 %v10986_v26  ;;  %v861_v25 = vld [vmem:[#allocation2 + $0x1890] sm:$0xff]  ;;  %v846_v26 = vld [vmem:[#allocation2 + $0x1818] sm:$0xff] }
 0x10d   :  { %6606 = vmatprep.subr.bf16.mxu0 %v11017_v27  ;;  %6688 = vmatprep.subr.bf16.mxu1 %v11019_v31  ;;  %v11243_v27 = vcombine.high %v814_v18, %v830_v19  ;;  %v11273_v31 = vcombine.high %v845_v53, %v861_v25  ;;  %v11272_v36 = vcombine.low %v845_v53, %v861_v25  ;;  %v1069_v19 = vld [vmem:[#allocation2 + $0x1f10] sm:$0xff]  ;;  %v1086_v53 = vld [vmem:[#allocation2 + $0x1f98] sm:$0xff] }
 0x10e   :  { %v11274_v37 = vcombine.low %v846_v26, %v862_v28 }
 0x10f   :  { %6598 = vmatmul.mubr.bf16.vlgmr.msra.gmra.mrb[4].mxu0 %v12728_v12  ;;  %6680 = vmatmul.mubr.bf16.vlgmr.msra.gmra.mrb[4].mxu1 %v12728_v12 }
 0x110   :  { %6607 = vmatpush1.bf16.msra.mxu0 %v11016_v33  ;;  %6689 = vmatpush1.bf16.msra.mxu1 %v11018_v15  ;;  %v893_v33 = vld [vmem:[#allocation2 + $0x1990] sm:$0xff]  ;;  %v878_v15 = vld [vmem:[#allocation2 + $0x1918] sm:$0xff] }
 0x111   :  { %6608 = vmatprep.subr.bf16.mxu0 %v11049_v34  ;;  %6690 = vmatprep.subr.bf16.mxu1 %v11051_v38  ;;  %v11275_v34 = vcombine.high %v846_v26, %v862_v28  ;;  %v11305_v38 = vcombine.high %v877_v32, %v893_v33  ;;  %v11304_v44 = vcombine.low %v877_v32, %v893_v33  ;;  %v79_v28 = vld [vmem:[#allocation2 + $0x20] sm:$0xff]  ;;  %v96_v32 = vld [vmem:[#allocation2 + $0xa8] sm:$0xff] }
 0x112   :  { %6638 = vmatprep.mubr.bf16.mxu0 %v12737_v23  ;;  %6720 = vmatprep.mubr.bf16.mxu1 %v12737_v23  ;;  %v11306_v45 = vcombine.low %v878_v15, %v894_v35 }
 0x114   :  { %6609 = vmatpush1.bf16.msra.mxu0 %v11048_v40  ;;  %6691 = vmatpush1.bf16.msra.mxu1 %v11050_v41  ;;  %v925_v40 = vld [vmem:[#allocation2 + $0x1a90] sm:$0xff]  ;;  %v910_v41 = vld [vmem:[#allocation2 + $0x1a18] sm:$0xff] }
 0x115   :  { %6610 = vmatprep.subr.bf16.mxu0 %v11081_v42  ;;  %6692 = vmatprep.subr.bf16.mxu1 %v11083_v46  ;;  %v11307_v42 = vcombine.high %v878_v15, %v894_v35  ;;  %v11337_v46 = vcombine.high %v909_v39, %v925_v40  ;;  %v11336_v52 = vcombine.low %v909_v39, %v925_v40  ;;  %v111_v35 = vld [vmem:[#allocation2 + $0x120] sm:$0xff]  ;;  %v128_v39 = vld [vmem:[#allocation2 + $0x1a8] sm:$0xff] }
 0x116   :  { %v11338_v54 = vcombine.low %v910_v41, %v926_v43 }
 0x118   :  { %6611 = vmatpush1.bf16.msra.mxu0 %v11080_v48  ;;  %6693 = vmatpush1.bf16.msra.mxu1 %v11082_v49  ;;  %v957_v48 = vld [vmem:[#allocation2 + $0x1b90] sm:$0xff]  ;;  %v942_v49 = vld [vmem:[#allocation2 + $0x1b18] sm:$0xff] }
 0x119   :  { %6612 = vmatprep.subr.bf16.mxu0 %v11113_v50  ;;  %6694 = vmatprep.subr.bf16.mxu1 %v11115_v55  ;;  %v11339_v50 = vcombine.high %v910_v41, %v926_v43  ;;  %v11369_v55 = vcombine.high %v941_v47, %v957_v48  ;;  %v11368_v62 = vcombine.low %v941_v47, %v957_v48  ;;  %v143_v43 = vld [vmem:[#allocation2 + $0x220] sm:$0xff]  ;;  %v160_v47 = vld [vmem:[#allocation2 + $0x2a8] sm:$0xff] }
 0x11a   :  { %v11370_v63 = vcombine.low %v942_v49, %v958_v51 }
 0x11c   :  { %6613 = vmatpush1.bf16.msra.mxu0 %v11112_v58  ;;  %6695 = vmatpush1.bf16.msra.mxu1 %v11114_v59  ;;  %v989_v58 = vld [vmem:[#allocation2 + $0x1c90] sm:$0xff]  ;;  %v974_v59 = vld [vmem:[#allocation2 + $0x1c18] sm:$0xff] }
 0x11d   :  { %6614 = vmatprep.subr.bf16.mxu0 %v11145_v60  ;;  %6696 = vmatprep.subr.bf16.mxu1 %v11147_v0  ;;  %v11371_v60 = vcombine.high %v942_v49, %v958_v51  ;;  %v11401_v0 = vcombine.high %v973_v56, %v989_v58  ;;  %v11400_v6 = vcombine.low %v973_v56, %v989_v58  ;;  %v175_v51 = vld [vmem:[#allocation2 + $0x320] sm:$0xff]  ;;  %v192_v56 = vld [vmem:[#allocation2 + $0x3a8] sm:$0xff] }
 0x11e   :  { %v11402_v7 = vcombine.low %v974_v59, %v990_v61 }
 0x120   :  { %6615 = vmatpush1.bf16.msra.mxu0 %v11144_v2  ;;  %6697 = vmatpush1.bf16.msra.mxu1 %v11146_v3  ;;  %v1021_v2 = vld [vmem:[#allocation2 + $0x1d90] sm:$0xff]  ;;  %v1006_v3 = vld [vmem:[#allocation2 + $0x1d18] sm:$0xff] }
 0x121   :  { %6616 = vmatprep.subr.bf16.mxu0 %v11177_v4  ;;  %6698 = vmatprep.subr.bf16.mxu1 %v11179_v8  ;;  %v11403_v4 = vcombine.high %v974_v59, %v990_v61  ;;  %v11433_v8 = vcombine.high %v1005_v1, %v1021_v2  ;;  %v11432_v16 = vcombine.low %v1005_v1, %v1021_v2  ;;  %v207_v61 = vld [vmem:[#allocation2 + $0x420] sm:$0xff]  ;;  %v224_v1 = vld [vmem:[#allocation2 + $0x4a8] sm:$0xff] }
 0x124   :  { %6617 = vmatpush1.bf16.msra.mxu0 %v11176_v10  ;;  %6699 = vmatpush1.bf16.msra.mxu1 %v11178_v11  ;;  %v1053_v10 = vld [vmem:[#allocation2 + $0x1e90] sm:$0xff]  ;;  %v1038_v11 = vld [vmem:[#allocation2 + $0x1e18] sm:$0xff] }
 0x125   :  { %6618 = vmatprep.subr.bf16.mxu0 %v11209_v13  ;;  %6700 = vmatprep.subr.bf16.mxu1 %v11211_v17  ;;  %v11435_v13 = vcombine.high %v1006_v3, %v1022_v5  ;;  %v11434_v17 = vcombine.low %v1006_v3, %v1022_v5  ;;  %v11465_v18 = vcombine.high %v1037_v9, %v1053_v10  ;;  %v239_v5 = vld [vmem:[#allocation2 + $0x520] sm:$0xff] }
 0x126   :  { %v11464_v25 = vcombine.low %v1037_v9, %v1053_v10  ;;  %v11466_v26 = vcombine.low %v1038_v11, %v1054_v14  ;;  %v256_v9 = vld [vmem:[#allocation2 + $0x5a8] sm:$0xff] }
 0x128   :  { %6619 = vmatpush1.bf16.msra.mxu0 %v11208_v20  ;;  %6701 = vmatpush1.bf16.msra.mxu1 %v11210_v21  ;;  %v1085_v20 = vld [vmem:[#allocation2 + $0x1f90] sm:$0xff]  ;;  %v1070_v21 = vld [vmem:[#allocation2 + $0x1f18] sm:$0xff] }
 0x129   :  { %6620 = vmatprep.subr.bf16.mxu0 %v11241_v22  ;;  %6702 = vmatprep.subr.bf16.mxu1 %v11243_v27  ;;  %v11467_v22 = vcombine.high %v1038_v11, %v1054_v14  ;;  %v11497_v27 = vcombine.high %v1069_v19, %v1085_v20  ;;  %v11496_v33 = vcombine.low %v1069_v19, %v1085_v20  ;;  %v271_v14 = vld [vmem:[#allocation2 + $0x620] sm:$0xff]  ;;  %v288_v19 = vld [vmem:[#allocation2 + $0x6a8] sm:$0xff] }
 0x12a   :  { %v11498_v15 = vcombine.low %v1070_v21, %v1086_v53 }
 0x12c   :  { %6621 = vmatpush1.bf16.msra.mxu0 %v11240_v29  ;;  %6703 = vmatpush1.bf16.msra.mxu1 %v11242_v30  ;;  %v95_v29 = vld [vmem:[#allocation2 + $0xa0] sm:$0xff]  ;;  %v80_v30 = vld [vmem:[#allocation2 + $0x28] sm:$0xff] }
 0x12d   :  { %6622 = vmatprep.subr.bf16.mxu0 %v11273_v31  ;;  %6704 = vmatprep.subr.bf16.mxu1 %v11275_v34  ;;  %v11499_v31 = vcombine.high %v1070_v21, %v1086_v53  ;;  %v10509_v34 = vcombine.high %v79_v28, %v95_v29  ;;  %v10508_v40 = vcombine.low %v79_v28, %v95_v29  ;;  %v303_v53 = vld [vmem:[#allocation2 + $0x720] sm:$0xff]  ;;  %v320_v28 = vld [vmem:[#allocation2 + $0x7a8] sm:$0xff] }
 0x12e   :  { %v10510_v41 = vcombine.low %v80_v30, %v96_v32 }
 0x130   :  { %6623 = vmatpush1.bf16.msra.mxu0 %v11272_v36  ;;  %6705 = vmatpush1.bf16.msra.mxu1 %v11274_v37  ;;  %v127_v36 = vld [vmem:[#allocation2 + $0x1a0] sm:$0xff]  ;;  %v112_v37 = vld [vmem:[#allocation2 + $0x128] sm:$0xff] }
 0x131   :  { %6624 = vmatprep.subr.bf16.mxu0 %v11305_v38  ;;  %6706 = vmatprep.subr.bf16.mxu1 %v11307_v42  ;;  %v10511_v38 = vcombine.high %v80_v30, %v96_v32  ;;  %v10541_v42 = vcombine.high %v111_v35, %v127_v36  ;;  %v10540_v48 = vcombine.low %v111_v35, %v127_v36  ;;  %v335_v32 = vld [vmem:[#allocation2 + $0x820] sm:$0xff]  ;;  %v352_v35 = vld [vmem:[#allocation2 + $0x8a8] sm:$0xff] }
 0x132   :  { %v10542_v49 = vcombine.low %v112_v37, %v128_v39 }
 0x134   :  { %6625 = vmatpush1.bf16.msra.mxu0 %v11304_v44  ;;  %6707 = vmatpush1.bf16.msra.mxu1 %v11306_v45  ;;  %v159_v44 = vld [vmem:[#allocation2 + $0x2a0] sm:$0xff]  ;;  %v144_v45 = vld [vmem:[#allocation2 + $0x228] sm:$0xff] }
 0x135   :  { %6626 = vmatprep.subr.bf16.mxu0 %v11337_v46  ;;  %6708 = vmatprep.subr.bf16.mxu1 %v11339_v50  ;;  %v10543_v46 = vcombine.high %v112_v37, %v128_v39  ;;  %v10573_v50 = vcombine.high %v143_v43, %v159_v44  ;;  %v10572_v58 = vcombine.low %v143_v43, %v159_v44  ;;  %v367_v39 = vld [vmem:[#allocation2 + $0x920] sm:$0xff]  ;;  %v384_v43 = vld [vmem:[#allocation2 + $0x9a8] sm:$0xff] }
 0x136   :  { %v10574_v59 = vcombine.low %v144_v45, %v160_v47 }
 0x138   :  { %6627 = vmatpush1.bf16.msra.mxu0 %v11336_v52  ;;  %6709 = vmatpush1.bf16.msra.mxu1 %v11338_v54  ;;  %v191_v52 = vld [vmem:[#allocation2 + $0x3a0] sm:$0xff]  ;;  %v176_v54 = vld [vmem:[#allocation2 + $0x328] sm:$0xff] }
 0x139   :  { %6628 = vmatprep.subr.bf16.mxu0 %v11369_v55  ;;  %6710 = vmatprep.subr.bf16.mxu1 %v11371_v60  ;;  %v10575_v55 = vcombine.high %v144_v45, %v160_v47  ;;  %v10605_v60 = vcombine.high %v175_v51, %v191_v52  ;;  %v10604_v2 = vcombine.low %v175_v51, %v191_v52  ;;  %v399_v47 = vld [vmem:[#allocation2 + $0xa20] sm:$0xff]  ;;  %v416_v51 = vld [vmem:[#allocation2 + $0xaa8] sm:$0xff] }
 0x13a   :  { %v10606_v3 = vcombine.low %v176_v54, %v192_v56 }
 0x13c   :  { %6629 = vmatpush1.bf16.msra.mxu0 %v11368_v62  ;;  %6711 = vmatpush1.bf16.msra.mxu1 %v11370_v63  ;;  %v223_v62 = vld [vmem:[#allocation2 + $0x4a0] sm:$0xff]  ;;  %v208_v63 = vld [vmem:[#allocation2 + $0x428] sm:$0xff] }
 0x13d   :  { %6630 = vmatprep.subr.bf16.mxu0 %v11401_v0  ;;  %6712 = vmatprep.subr.bf16.mxu1 %v11403_v4  ;;  %v10607_v0 = vcombine.high %v176_v54, %v192_v56  ;;  %v10637_v4 = vcombine.high %v207_v61, %v223_v62  ;;  %v10636_v10 = vcombine.low %v207_v61, %v223_v62  ;;  %v431_v56 = vld [vmem:[#allocation2 + $0xb20] sm:$0xff]  ;;  %v448_v61 = vld [vmem:[#allocation2 + $0xba8] sm:$0xff] }
 0x13e   :  { %v10638_v11 = vcombine.low %v208_v63, %v224_v1 }
 0x140   :  { %6631 = vmatpush1.bf16.msra.mxu0 %v11400_v6  ;;  %6713 = vmatpush1.bf16.msra.mxu1 %v11402_v7  ;;  %v255_v6 = vld [vmem:[#allocation2 + $0x5a0] sm:$0xff]  ;;  %v240_v7 = vld [vmem:[#allocation2 + $0x528] sm:$0xff] }
 0x141   :  { %6632 = vmatprep.subr.bf16.mxu0 %v11433_v8  ;;  %6714 = vmatprep.subr.bf16.mxu1 %v11435_v13  ;;  %v10639_v8 = vcombine.high %v208_v63, %v224_v1  ;;  %v10669_v13 = vcombine.high %v239_v5, %v255_v6  ;;  %v10668_v20 = vcombine.low %v239_v5, %v255_v6  ;;  %v463_v1 = vld [vmem:[#allocation2 + $0xc20] sm:$0xff]  ;;  %v480_v5 = vld [vmem:[#allocation2 + $0xca8] sm:$0xff] }
 0x142   :  { %v10670_v21 = vcombine.low %v240_v7, %v256_v9 }
 0x144   :  { %6633 = vmatpush1.bf16.msra.mxu0 %v11432_v16  ;;  %6715 = vmatpush1.bf16.msra.mxu1 %v11434_v17  ;;  %v287_v16 = vld [vmem:[#allocation2 + $0x6a0] sm:$0xff]  ;;  %v272_v17 = vld [vmem:[#allocation2 + $0x628] sm:$0xff] }
 0x145   :  { %6634 = vmatprep.subr.bf16.mxu0 %v11465_v18  ;;  %6716 = vmatprep.subr.bf16.mxu1 %v11467_v22  ;;  %v10671_v18 = vcombine.high %v240_v7, %v256_v9  ;;  %v10701_v22 = vcombine.high %v271_v14, %v287_v16  ;;  %v10700_v29 = vcombine.low %v271_v14, %v287_v16  ;;  %v495_v9 = vld [vmem:[#allocation2 + $0xd20] sm:$0xff]  ;;  %v512_v14 = vld [vmem:[#allocation2 + $0xda8] sm:$0xff] }
 0x146   :  { %v10702_v30 = vcombine.low %v272_v17, %v288_v19 }
 0x148   :  { %6635 = vmatpush1.bf16.msra.mxu0 %v11464_v25  ;;  %6717 = vmatpush1.bf16.msra.mxu1 %v11466_v26  ;;  %v319_v25 = vld [vmem:[#allocation2 + $0x7a0] sm:$0xff]  ;;  %v304_v26 = vld [vmem:[#allocation2 + $0x728] sm:$0xff] }
 0x149   :  { %6636 = vmatprep.subr.bf16.mxu0 %v11497_v27  ;;  %6718 = vmatprep.subr.bf16.mxu1 %v11499_v31  ;;  %v10703_v27 = vcombine.high %v272_v17, %v288_v19  ;;  %v10733_v31 = vcombine.high %v303_v53, %v319_v25  ;;  %v10732_v36 = vcombine.low %v303_v53, %v319_v25  ;;  %v527_v19 = vld [vmem:[#allocation2 + $0xe20] sm:$0xff]  ;;  %v544_v53 = vld [vmem:[#allocation2 + $0xea8] sm:$0xff] }
 0x14a   :  { %v10734_v37 = vcombine.low %v304_v26, %v320_v28 }
 0x14c   :  { %6637 = vmatpush1.bf16.msra.mxu0 %v11496_v33  ;;  %6719 = vmatpush1.bf16.msra.mxu1 %v11498_v15  ;;  %v351_v33 = vld [vmem:[#allocation2 + $0x8a0] sm:$0xff]  ;;  %v336_v15 = vld [vmem:[#allocation2 + $0x828] sm:$0xff] }
 0x14d   :  { %6729 = vmatprep.subr.bf16.mxu0 %v10509_v34  ;;  %6811 = vmatprep.subr.bf16.mxu1 %v10511_v38  ;;  %v10735_v34 = vcombine.high %v304_v26, %v320_v28  ;;  %v10765_v38 = vcombine.high %v335_v32, %v351_v33  ;;  %v10764_v44 = vcombine.low %v335_v32, %v351_v33  ;;  %v559_v28 = vld [vmem:[#allocation2 + $0xf20] sm:$0xff]  ;;  %v576_v32 = vld [vmem:[#allocation2 + $0xfa8] sm:$0xff] }
 0x14e   :  { %v10766_v45 = vcombine.low %v336_v15, %v352_v35 }
 0x14f   :  { %6639 = vmatmul.mubr.bf16.vlgmr.msra.gmra.mrb[4].mxu0 %v12745_v24  ;;  %6721 = vmatmul.mubr.bf16.vlgmr.msra.gmra.mrb[4].mxu1 %v12745_v24 }
 0x150   :  { %6730 = vmatpush1.bf16.msra.mxu0 %v10508_v40  ;;  %6812 = vmatpush1.bf16.msra.mxu1 %v10510_v41  ;;  %v383_v40 = vld [vmem:[#allocation2 + $0x9a0] sm:$0xff]  ;;  %v368_v41 = vld [vmem:[#allocation2 + $0x928] sm:$0xff] }
 0x151   :  { %6731 = vmatprep.subr.bf16.mxu0 %v10541_v42  ;;  %6813 = vmatprep.subr.bf16.mxu1 %v10543_v46  ;;  %v10767_v42 = vcombine.high %v336_v15, %v352_v35  ;;  %v10797_v46 = vcombine.high %v367_v39, %v383_v40  ;;  %v10796_v52 = vcombine.low %v367_v39, %v383_v40  ;;  %v591_v35 = vld [vmem:[#allocation2 + $0x1020] sm:$0xff]  ;;  %v608_v39 = vld [vmem:[#allocation2 + $0x10a8] sm:$0xff] }
 0x152   :  { %6761 = vmatprep.mubr.bf16.mxu0 %v12722_v57  ;;  %6843 = vmatprep.mubr.bf16.mxu1 %v12722_v57  ;;  %v10798_v54 = vcombine.low %v368_v41, %v384_v43 }
 0x154   :  { %6732 = vmatpush1.bf16.msra.mxu0 %v10540_v48  ;;  %6814 = vmatpush1.bf16.msra.mxu1 %v10542_v49  ;;  %v415_v48 = vld [vmem:[#allocation2 + $0xaa0] sm:$0xff]  ;;  %v400_v49 = vld [vmem:[#allocation2 + $0xa28] sm:$0xff] }
 0x155   :  { %6733 = vmatprep.subr.bf16.mxu0 %v10573_v50  ;;  %6815 = vmatprep.subr.bf16.mxu1 %v10575_v55  ;;  %v10799_v50 = vcombine.high %v368_v41, %v384_v43  ;;  %v10829_v55 = vcombine.high %v399_v47, %v415_v48  ;;  %v10828_v62 = vcombine.low %v399_v47, %v415_v48  ;;  %v623_v43 = vld [vmem:[#allocation2 + $0x1120] sm:$0xff]  ;;  %v640_v47 = vld [vmem:[#allocation2 + $0x11a8] sm:$0xff] }
 0x156   :  { %v10830_v63 = vcombine.low %v400_v49, %v416_v51 }
 0x158   :  { %6734 = vmatpush1.bf16.msra.mxu0 %v10572_v58  ;;  %6816 = vmatpush1.bf16.msra.mxu1 %v10574_v59  ;;  %v447_v58 = vld [vmem:[#allocation2 + $0xba0] sm:$0xff]  ;;  %v432_v59 = vld [vmem:[#allocation2 + $0xb28] sm:$0xff] }
 0x159   :  { %6735 = vmatprep.subr.bf16.mxu0 %v10605_v60  ;;  %6817 = vmatprep.subr.bf16.mxu1 %v10607_v0  ;;  %v10831_v60 = vcombine.high %v400_v49, %v416_v51  ;;  %v10861_v0 = vcombine.high %v431_v56, %v447_v58  ;;  %v10860_v6 = vcombine.low %v431_v56, %v447_v58  ;;  %v672_v56 = vld [vmem:[#allocation2 + $0x12a8] sm:$0xff] }
 0x15a   :  { %v10862_v7 = vcombine.low %v432_v59, %v448_v61 }
 0x15c   :  { %6736 = vmatpush1.bf16.msra.mxu0 %v10604_v2  ;;  %6818 = vmatpush1.bf16.msra.mxu1 %v10606_v3  ;;  %v479_v2 = vld [vmem:[#allocation2 + $0xca0] sm:$0xff]  ;;  %v464_v3 = vld [vmem:[#allocation2 + $0xc28] sm:$0xff] }
 0x15d   :  { %6737 = vmatprep.subr.bf16.mxu0 %v10637_v4  ;;  %6819 = vmatprep.subr.bf16.mxu1 %v10639_v8  ;;  %v10863_v4 = vcombine.high %v432_v59, %v448_v61  ;;  %v10893_v8 = vcombine.high %v463_v1, %v479_v2  ;;  %v10892_v16 = vcombine.low %v463_v1, %v479_v2  ;;  %v704_v1 = vld [vmem:[#allocation2 + $0x13a8] sm:$0xff] }
 0x15e   :  { %v10894_v17 = vcombine.low %v464_v3, %v480_v5 }
 0x160   :  { %6738 = vmatpush1.bf16.msra.mxu0 %v10636_v10  ;;  %6820 = vmatpush1.bf16.msra.mxu1 %v10638_v11  ;;  %v511_v10 = vld [vmem:[#allocation2 + $0xda0] sm:$0xff]  ;;  %v496_v11 = vld [vmem:[#allocation2 + $0xd28] sm:$0xff] }
 0x161   :  { %6739 = vmatprep.subr.bf16.mxu0 %v10669_v13  ;;  %6821 = vmatprep.subr.bf16.mxu1 %v10671_v18  ;;  %v10895_v13 = vcombine.high %v464_v3, %v480_v5  ;;  %v10925_v18 = vcombine.high %v495_v9, %v511_v10  ;;  %v10924_v25 = vcombine.low %v495_v9, %v511_v10  ;;  %v736_v9 = vld [vmem:[#allocation2 + $0x14a8] sm:$0xff] }
 0x162   :  { %v10926_v26 = vcombine.low %v496_v11, %v512_v14 }
 0x164   :  { %6740 = vmatpush1.bf16.msra.mxu0 %v10668_v20  ;;  %6822 = vmatpush1.bf16.msra.mxu1 %v10670_v21  ;;  %v543_v20 = vld [vmem:[#allocation2 + $0xea0] sm:$0xff]  ;;  %v528_v21 = vld [vmem:[#allocation2 + $0xe28] sm:$0xff] }
 0x165   :  { %6741 = vmatprep.subr.bf16.mxu0 %v10701_v22  ;;  %6823 = vmatprep.subr.bf16.mxu1 %v10703_v27  ;;  %v10927_v22 = vcombine.high %v496_v11, %v512_v14  ;;  %v10957_v27 = vcombine.high %v527_v19, %v543_v20  ;;  %v10956_v33 = vcombine.low %v527_v19, %v543_v20  ;;  %v768_v19 = vld [vmem:[#allocation2 + $0x15a8] sm:$0xff] }
 0x166   :  { %v10958_v15 = vcombine.low %v528_v21, %v544_v53 }
 0x168   :  { %6742 = vmatpush1.bf16.msra.mxu0 %v10700_v29  ;;  %6824 = vmatpush1.bf16.msra.mxu1 %v10702_v30  ;;  %v575_v29 = vld [vmem:[#allocation2 + $0xfa0] sm:$0xff]  ;;  %v560_v30 = vld [vmem:[#allocation2 + $0xf28] sm:$0xff] }
 0x169   :  { %6743 = vmatprep.subr.bf16.mxu0 %v10733_v31  ;;  %6825 = vmatprep.subr.bf16.mxu1 %v10735_v34  ;;  %v10959_v31 = vcombine.high %v528_v21, %v544_v53  ;;  %v10989_v34 = vcombine.high %v559_v28, %v575_v29  ;;  %v10988_v40 = vcombine.low %v559_v28, %v575_v29  ;;  %v800_v28 = vld [vmem:[#allocation2 + $0x16a8] sm:$0xff] }
 0x16a   :  { %v10990_v41 = vcombine.low %v560_v30, %v576_v32 }
 0x16c   :  { %6744 = vmatpush1.bf16.msra.mxu0 %v10732_v36  ;;  %6826 = vmatpush1.bf16.msra.mxu1 %v10734_v37  ;;  %v607_v36 = vld [vmem:[#allocation2 + $0x10a0] sm:$0xff]  ;;  %v592_v37 = vld [vmem:[#allocation2 + $0x1028] sm:$0xff] }
 0x16d   :  { %6745 = vmatprep.subr.bf16.mxu0 %v10765_v38  ;;  %6827 = vmatprep.subr.bf16.mxu1 %v10767_v42  ;;  %v10991_v38 = vcombine.high %v560_v30, %v576_v32  ;;  %v11021_v42 = vcombine.high %v591_v35, %v607_v36  ;;  %v11020_v48 = vcombine.low %v591_v35, %v607_v36 }
 0x16e   :  { %v11022_v49 = vcombine.low %v592_v37, %v608_v39 }
 0x170   :  { %6746 = vmatpush1.bf16.msra.mxu0 %v10764_v44  ;;  %6828 = vmatpush1.bf16.msra.mxu1 %v10766_v45  ;;  %v639_v44 = vld [vmem:[#allocation2 + $0x11a0] sm:$0xff]  ;;  %v624_v45 = vld [vmem:[#allocation2 + $0x1128] sm:$0xff] }
 0x171   :  { %6747 = vmatprep.subr.bf16.mxu0 %v10797_v46  ;;  %6829 = vmatprep.subr.bf16.mxu1 %v10799_v50  ;;  %v11023_v46 = vcombine.high %v592_v37, %v608_v39  ;;  %v11053_v50 = vcombine.high %v623_v43, %v639_v44  ;;  %v11055_v51 = vcombine.high %v624_v45, %v640_v47  ;;  %v816_v37 = vld [vmem:[#allocation2 + $0x1728] sm:$0xff] }
 0x172   :  { %v11052_v58 = vcombine.low %v623_v43, %v639_v44  ;;  %v11054_v59 = vcombine.low %v624_v45, %v640_v47 }
 0x174   :  { %6748 = vmatpush1.bf16.msra.mxu0 %v10796_v52  ;;  %6830 = vmatpush1.bf16.msra.mxu1 %v10798_v54  ;;  %v655_v52 = vld [vmem:[#allocation2 + $0x1220] sm:$0xff] }
 0x175   :  { %6749 = vmatprep.subr.bf16.mxu0 %v10829_v55  ;;  %6831 = vmatprep.subr.bf16.mxu1 %v10831_v60  ;;  %v671_v54 = vld [vmem:[#allocation2 + $0x12a0] sm:$0xff]  ;;  %v656_v55 = vld [vmem:[#allocation2 + $0x1228] sm:$0xff] }
 0x176   :  { %v11085_v60 = vcombine.high %v655_v52, %v671_v54  ;;  %v11087_v61 = vcombine.high %v656_v55, %v672_v56  ;;  %v11084_v2 = vcombine.low %v655_v52, %v671_v54  ;;  %v11086_v3 = vcombine.low %v656_v55, %v672_v56 }
 0x178   :  { %6750 = vmatpush1.bf16.msra.mxu0 %v10828_v62  ;;  %6832 = vmatpush1.bf16.msra.mxu1 %v10830_v63  ;;  %v687_v62 = vld [vmem:[#allocation2 + $0x1320] sm:$0xff] }
 0x179   :  { %6751 = vmatprep.subr.bf16.mxu0 %v10861_v0  ;;  %6833 = vmatprep.subr.bf16.mxu1 %v10863_v4  ;;  %v703_v63 = vld [vmem:[#allocation2 + $0x13a0] sm:$0xff]  ;;  %v688_v0 = vld [vmem:[#allocation2 + $0x1328] sm:$0xff] }
 0x17a   :  { %v11117_v4 = vcombine.high %v687_v62, %v703_v63  ;;  %v11119_v5 = vcombine.high %v688_v0, %v704_v1  ;;  %v11116_v10 = vcombine.low %v687_v62, %v703_v63  ;;  %v11118_v11 = vcombine.low %v688_v0, %v704_v1 }
 0x17c   :  { %6752 = vmatpush1.bf16.msra.mxu0 %v10860_v6  ;;  %6834 = vmatpush1.bf16.msra.mxu1 %v10862_v7  ;;  %v719_v6 = vld [vmem:[#allocation2 + $0x1420] sm:$0xff] }
 0x17d   :  { %6753 = vmatprep.subr.bf16.mxu0 %v10893_v8  ;;  %6835 = vmatprep.subr.bf16.mxu1 %v10895_v13  ;;  %v735_v7 = vld [vmem:[#allocation2 + $0x14a0] sm:$0xff]  ;;  %v720_v8 = vld [vmem:[#allocation2 + $0x1428] sm:$0xff] }
 0x17e   :  { %v11149_v13 = vcombine.high %v719_v6, %v735_v7  ;;  %v11151_v14 = vcombine.high %v720_v8, %v736_v9  ;;  %v11148_v20 = vcombine.low %v719_v6, %v735_v7  ;;  %v11150_v21 = vcombine.low %v720_v8, %v736_v9 }
 0x180   :  { %6754 = vmatpush1.bf16.msra.mxu0 %v10892_v16  ;;  %6836 = vmatpush1.bf16.msra.mxu1 %v10894_v17  ;;  %v751_v16 = vld [vmem:[#allocation2 + $0x1520] sm:$0xff] }
 0x181   :  { %6755 = vmatprep.subr.bf16.mxu0 %v10925_v18  ;;  %6837 = vmatprep.subr.bf16.mxu1 %v10927_v22  ;;  %v767_v17 = vld [vmem:[#allocation2 + $0x15a0] sm:$0xff]  ;;  %v752_v18 = vld [vmem:[#allocation2 + $0x1528] sm:$0xff] }
 0x182   :  { %v11181_v22 = vcombine.high %v751_v16, %v767_v17  ;;  %v11183_v53 = vcombine.high %v752_v18, %v768_v19  ;;  %v11180_v29 = vcombine.low %v751_v16, %v767_v17  ;;  %v11182_v30 = vcombine.low %v752_v18, %v768_v19 }
 0x184   :  { %6756 = vmatpush1.bf16.msra.mxu0 %v10924_v25  ;;  %6838 = vmatpush1.bf16.msra.mxu1 %v10926_v26  ;;  %v783_v25 = vld [vmem:[#allocation2 + $0x1620] sm:$0xff] }
 0x185   :  { %6757 = vmatprep.subr.bf16.mxu0 %v10957_v27  ;;  %6839 = vmatprep.subr.bf16.mxu1 %v10959_v31  ;;  %v799_v26 = vld [vmem:[#allocation2 + $0x16a0] sm:$0xff]  ;;  %v784_v27 = vld [vmem:[#allocation2 + $0x1628] sm:$0xff] }
 0x186   :  { %v11213_v31 = vcombine.high %v783_v25, %v799_v26  ;;  %v11214_v44 = vcombine.low %v784_v27, %v800_v28 }
 0x188   :  { %6758 = vmatpush1.bf16.msra.mxu0 %v10956_v33  ;;  %6840 = vmatpush1.bf16.msra.mxu1 %v10958_v15  ;;  %v11215_v33 = vcombine.high %v784_v27, %v800_v28  ;;  %v815_v15 = vld [vmem:[#allocation2 + $0x1720] sm:$0xff] }
 0x189   :  { %6759 = vmatprep.subr.bf16.mxu0 %v10989_v34  ;;  %6841 = vmatprep.subr.bf16.mxu1 %v10991_v38  ;;  %v831_v34 = vld [vmem:[#allocation2 + $0x17a0] sm:$0xff]  ;;  %v832_v38 = vld [vmem:[#allocation2 + $0x17a8] sm:$0xff] }
 0x18a   :  { %v11245_v45 = vcombine.high %v815_v15, %v831_v34  ;;  %v11247_v47 = vcombine.high %v816_v37, %v832_v38  ;;  %v11244_v52 = vcombine.low %v815_v15, %v831_v34  ;;  %v11246_v54 = vcombine.low %v816_v37, %v832_v38 }
 0x18c   :  { %6760 = vmatpush1.bf16.msra.mxu0 %v10988_v40  ;;  %6842 = vmatpush1.bf16.msra.mxu1 %v10990_v41  ;;  %v11212_v41 = vcombine.low %v783_v25, %v799_v26 }
 0x18d   :  { %6770 = vmatprep.subr.bf16.mxu0 %v11021_v42  ;;  %6852 = vmatprep.subr.bf16.mxu1 %v11023_v46 }
 0x18f   :  { %6762 = vmatmul.mubr.bf16.vlgmr.msra.gmra.mrb[8].mxu0 %v12728_v12  ;;  %6844 = vmatmul.mubr.bf16.vlgmr.msra.gmra.mrb[8].mxu1 %v12728_v12 }
 0x190   :  { %6771 = vmatpush1.bf16.msra.mxu0 %v11020_v48  ;;  %6853 = vmatpush1.bf16.msra.mxu1 %v11022_v49  ;;  %v847_v48 = vld [vmem:[#allocation2 + $0x1820] sm:$0xff] }
 0x191   :  { %6772 = vmatprep.subr.bf16.mxu0 %v11053_v50  ;;  %6854 = vmatprep.subr.bf16.mxu1 %v11055_v51  ;;  %v863_v49 = vld [vmem:[#allocation2 + $0x18a0] sm:$0xff]  ;;  %v848_v50 = vld [vmem:[#allocation2 + $0x1828] sm:$0xff] }
 0x192   :  { %6802 = vmatprep.mubr.bf16.mxu0 %v12737_v23  ;;  %6884 = vmatprep.mubr.bf16.mxu1 %v12737_v23  ;;  %v864_v51 = vld [vmem:[#allocation2 + $0x18a8] sm:$0xff]  ;;  %v11277_v55 = vcombine.high %v847_v48, %v863_v49  ;;  %v11276_v62 = vcombine.low %v847_v48, %v863_v49  ;;  %v1071_v48 = vld [vmem:[#allocation2 + $0x1f20] sm:$0xff] }
 0x193   :  { %v11279_v56 = vcombine.high %v848_v50, %v864_v51  ;;  %v11278_v63 = vcombine.low %v848_v50, %v864_v51  ;;  %v1087_v49 = vld [vmem:[#allocation2 + $0x1fa0] sm:$0xff]  ;;  %v1072_v50 = vld [vmem:[#allocation2 + $0x1f28] sm:$0xff] }
 0x194   :  { %6773 = vmatpush1.bf16.msra.mxu0 %v11052_v58  ;;  %6855 = vmatpush1.bf16.msra.mxu1 %v11054_v59  ;;  %v879_v58 = vld [vmem:[#allocation2 + $0x1920] sm:$0xff]  ;;  %v1088_v51 = vld [vmem:[#allocation2 + $0x1fa8] sm:$0xff] }
 0x195   :  { %6774 = vmatprep.subr.bf16.mxu0 %v11085_v60  ;;  %6856 = vmatprep.subr.bf16.mxu1 %v11087_v61  ;;  %v895_v59 = vld [vmem:[#allocation2 + $0x19a0] sm:$0xff]  ;;  %v880_v60 = vld [vmem:[#allocation2 + $0x1928] sm:$0xff] }
 0x196   :  { %v896_v61 = vld [vmem:[#allocation2 + $0x19a8] sm:$0xff]  ;;  %v11309_v0 = vcombine.high %v879_v58, %v895_v59  ;;  %v11308_v6 = vcombine.low %v879_v58, %v895_v59  ;;  %v81_v58 = vld [vmem:[#allocation2 + $0x30] sm:$0xff] }
 0x197   :  { %v11311_v1 = vcombine.high %v880_v60, %v896_v61  ;;  %v11310_v7 = vcombine.low %v880_v60, %v896_v61  ;;  %v97_v59 = vld [vmem:[#allocation2 + $0xb0] sm:$0xff]  ;;  %v82_v60 = vld [vmem:[#allocation2 + $0x38] sm:$0xff] }
 0x198   :  { %6775 = vmatpush1.bf16.msra.mxu0 %v11084_v2  ;;  %6857 = vmatpush1.bf16.msra.mxu1 %v11086_v3  ;;  %v911_v2 = vld [vmem:[#allocation2 + $0x1a20] sm:$0xff]  ;;  %v98_v61 = vld [vmem:[#allocation2 + $0xb8] sm:$0xff] }
 0x199   :  { %6776 = vmatprep.subr.bf16.mxu0 %v11117_v4  ;;  %6858 = vmatprep.subr.bf16.mxu1 %v11119_v5  ;;  %v927_v3 = vld [vmem:[#allocation2 + $0x1aa0] sm:$0xff]  ;;  %v912_v4 = vld [vmem:[#allocation2 + $0x1a28] sm:$0xff] }
 0x19a   :  { %v928_v5 = vld [vmem:[#allocation2 + $0x1aa8] sm:$0xff]  ;;  %v11341_v8 = vcombine.high %v911_v2, %v927_v3  ;;  %v11340_v16 = vcombine.low %v911_v2, %v927_v3  ;;  %v113_v2 = vld [vmem:[#allocation2 + $0x130] sm:$0xff] }
 0x19b   :  { %v11343_v9 = vcombine.high %v912_v4, %v928_v5  ;;  %v11342_v17 = vcombine.low %v912_v4, %v928_v5  ;;  %v129_v3 = vld [vmem:[#allocation2 + $0x1b0] sm:$0xff]  ;;  %v114_v4 = vld [vmem:[#allocation2 + $0x138] sm:$0xff] }
 0x19c   :  { %6777 = vmatpush1.bf16.msra.mxu0 %v11116_v10  ;;  %6859 = vmatpush1.bf16.msra.mxu1 %v11118_v11  ;;  %v943_v10 = vld [vmem:[#allocation2 + $0x1b20] sm:$0xff]  ;;  %v130_v5 = vld [vmem:[#allocation2 + $0x1b8] sm:$0xff] }
 0x19d   :  { %6778 = vmatprep.subr.bf16.mxu0 %v11149_v13  ;;  %6860 = vmatprep.subr.bf16.mxu1 %v11151_v14  ;;  %v959_v11 = vld [vmem:[#allocation2 + $0x1ba0] sm:$0xff]  ;;  %v944_v13 = vld [vmem:[#allocation2 + $0x1b28] sm:$0xff] }
 0x19e   :  { %v960_v14 = vld [vmem:[#allocation2 + $0x1ba8] sm:$0xff]  ;;  %v11373_v18 = vcombine.high %v943_v10, %v959_v11  ;;  %v11372_v25 = vcombine.low %v943_v10, %v959_v11  ;;  %v145_v10 = vld [vmem:[#allocation2 + $0x230] sm:$0xff] }
 0x19f   :  { %v11375_v19 = vcombine.high %v944_v13, %v960_v14  ;;  %v11374_v26 = vcombine.low %v944_v13, %v960_v14  ;;  %v161_v11 = vld [vmem:[#allocation2 + $0x2b0] sm:$0xff]  ;;  %v146_v13 = vld [vmem:[#allocation2 + $0x238] sm:$0xff] }
 0x1a0   :  { %6779 = vmatpush1.bf16.msra.mxu0 %v11148_v20  ;;  %6861 = vmatpush1.bf16.msra.mxu1 %v11150_v21  ;;  %v975_v20 = vld [vmem:[#allocation2 + $0x1c20] sm:$0xff]  ;;  %v162_v14 = vld [vmem:[#allocation2 + $0x2b8] sm:$0xff] }
 0x1a1   :  { %6780 = vmatprep.subr.bf16.mxu0 %v11181_v22  ;;  %6862 = vmatprep.subr.bf16.mxu1 %v11183_v53  ;;  %v991_v21 = vld [vmem:[#allocation2 + $0x1ca0] sm:$0xff]  ;;  %v976_v22 = vld [vmem:[#allocation2 + $0x1c28] sm:$0xff] }
 0x1a2   :  { %v12763_v32 = vpop.f32.mrb[0].mxu0  ;;  %v12765_v35 = vpop.f32.mrb[0].mxu1  ;;  %v992_v53 = vld [vmem:[#allocation2 + $0x1ca8] sm:$0xff]  ;;  %v11405_v27 = vcombine.high %v975_v20, %v991_v21  ;;  %v11404_v15 = vcombine.low %v975_v20, %v991_v21  ;;  %v177_v20 = vld [vmem:[#allocation2 + $0x330] sm:$0xff] }
 0x1a3   :  { %v12767_v36 = vpop.f32.mrb[1].mxu0  ;;  %v12769_v39 = vpop.f32.mrb[1].mxu1  ;;  %v11407_v28 = vcombine.high %v976_v22, %v992_v53  ;;  %v11406_v34 = vcombine.low %v976_v22, %v992_v53  ;;  %v193_v21 = vld [vmem:[#allocation2 + $0x3b0] sm:$0xff]  ;;  %v178_v22 = vld [vmem:[#allocation2 + $0x338] sm:$0xff] }
 0x1a4   :  { %v6480_v40 = vpop.f32.mrb[2].mxu0  ;;  %6781 = vmatpush1.bf16.msra.mxu0 %v11180_v29  ;;  %v6562_v42 = vpop.f32.mrb[2].mxu1  ;;  %6863 = vmatpush1.bf16.msra.mxu1 %v11182_v30  ;;  %v1007_v29 = vld [vmem:[#allocation2 + $0x1d20] sm:$0xff]  ;;  %v194_v53 = vld [vmem:[#allocation2 + $0x3b8] sm:$0xff] }
 0x1a5   :  { %v6481_v43 = vpop.f32.mrb[3].mxu0  ;;  %6782 = vmatprep.subr.bf16.mxu0 %v11213_v31  ;;  %v6563_v46 = vpop.f32.mrb[3].mxu1  ;;  %6864 = vmatprep.subr.bf16.mxu1 %v11215_v33  ;;  %v1023_v30 = vld [vmem:[#allocation2 + $0x1da0] sm:$0xff]  ;;  %v1008_v31 = vld [vmem:[#allocation2 + $0x1d28] sm:$0xff] }
 0x1a6   :  { %v1024_v33 = vld [vmem:[#allocation2 + $0x1da8] sm:$0xff]  ;;  %v11437_v37 = vcombine.high %v1007_v29, %v1023_v30  ;;  %v1039_v40 = vld [vmem:[#allocation2 + $0x1e20] sm:$0xff] }
 0x1a7   :  { %v11439_v38 = vcombine.high %v1008_v31, %v1024_v33  ;;  %v1040_v42 = vld [vmem:[#allocation2 + $0x1e28] sm:$0xff] }
 0x1a8   :  { %6783 = vmatpush1.bf16.msra.mxu0 %v11212_v41  ;;  %6865 = vmatpush1.bf16.msra.mxu1 %v11214_v44  ;;  %v1055_v41 = vld [vmem:[#allocation2 + $0x1ea0] sm:$0xff]  ;;  %v1056_v43 = vld [vmem:[#allocation2 + $0x1ea8] sm:$0xff]  ;;  %v11436_v44 = vcombine.low %v1007_v29, %v1023_v30  ;;  %v209_v29 = vld [vmem:[#allocation2 + $0x430] sm:$0xff] }
 0x1a9   :  { %6784 = vmatprep.subr.bf16.mxu0 %v11245_v45  ;;  %6866 = vmatprep.subr.bf16.mxu1 %v11247_v47  ;;  %v11438_v45 = vcombine.low %v1008_v31, %v1024_v33  ;;  %v11469_v46 = vcombine.high %v1039_v40, %v1055_v41  ;;  %v11471_v47 = vcombine.high %v1040_v42, %v1056_v43  ;;  %v225_v30 = vld [vmem:[#allocation2 + $0x4b0] sm:$0xff]  ;;  %v210_v31 = vld [vmem:[#allocation2 + $0x438] sm:$0xff] }
 0x1aa   :  { %v226_v33 = vld [vmem:[#allocation2 + $0x4b8] sm:$0xff] }
 0x1ac   :  { %6785 = vmatpush1.bf16.msra.mxu0 %v11244_v52  ;;  %6867 = vmatpush1.bf16.msra.mxu1 %v11246_v54  ;;  %v11468_v52 = vcombine.low %v1039_v40, %v1055_v41  ;;  %v11470_v54 = vcombine.low %v1040_v42, %v1056_v43  ;;  %v241_v40 = vld [vmem:[#allocation2 + $0x530] sm:$0xff]  ;;  %v242_v42 = vld [vmem:[#allocation2 + $0x538] sm:$0xff] }
 0x1ad   :  { %6786 = vmatprep.subr.bf16.mxu0 %v11277_v55  ;;  %6868 = vmatprep.subr.bf16.mxu1 %v11279_v56  ;;  %v11501_v55 = vcombine.high %v1071_v48, %v1087_v49  ;;  %v11503_v56 = vcombine.high %v1072_v50, %v1088_v51  ;;  %v257_v41 = vld [vmem:[#allocation2 + $0x5b0] sm:$0xff]  ;;  %v258_v43 = vld [vmem:[#allocation2 + $0x5b8] sm:$0xff] }
 0x1b0   :  { %6787 = vmatpush1.bf16.msra.mxu0 %v11276_v62  ;;  %6869 = vmatpush1.bf16.msra.mxu1 %v11278_v63  ;;  %v11500_v62 = vcombine.low %v1071_v48, %v1087_v49  ;;  %v11502_v63 = vcombine.low %v1072_v50, %v1088_v51  ;;  %v273_v48 = vld [vmem:[#allocation2 + $0x630] sm:$0xff]  ;;  %v274_v50 = vld [vmem:[#allocation2 + $0x638] sm:$0xff] }
 0x1b1   :  { %6788 = vmatprep.subr.bf16.mxu0 %v11309_v0  ;;  %6870 = vmatprep.subr.bf16.mxu1 %v11311_v1  ;;  %v10513_v0 = vcombine.high %v81_v58, %v97_v59  ;;  %v10515_v1 = vcombine.high %v82_v60, %v98_v61  ;;  %v289_v49 = vld [vmem:[#allocation2 + $0x6b0] sm:$0xff]  ;;  %v290_v51 = vld [vmem:[#allocation2 + $0x6b8] sm:$0xff] }
 0x1b4   :  { %6789 = vmatpush1.bf16.msra.mxu0 %v11308_v6  ;;  %6871 = vmatpush1.bf16.msra.mxu1 %v11310_v7  ;;  %v10512_v6 = vcombine.low %v81_v58, %v97_v59  ;;  %v10514_v7 = vcombine.low %v82_v60, %v98_v61  ;;  %v305_v58 = vld [vmem:[#allocation2 + $0x730] sm:$0xff]  ;;  %v306_v60 = vld [vmem:[#allocation2 + $0x738] sm:$0xff] }
 0x1b5   :  { %6790 = vmatprep.subr.bf16.mxu0 %v11341_v8  ;;  %6872 = vmatprep.subr.bf16.mxu1 %v11343_v9  ;;  %v10545_v8 = vcombine.high %v113_v2, %v129_v3  ;;  %v10547_v9 = vcombine.high %v114_v4, %v130_v5  ;;  %v321_v59 = vld [vmem:[#allocation2 + $0x7b0] sm:$0xff]  ;;  %v322_v61 = vld [vmem:[#allocation2 + $0x7b8] sm:$0xff] }
 0x1b8   :  { %6791 = vmatpush1.bf16.msra.mxu0 %v11340_v16  ;;  %6873 = vmatpush1.bf16.msra.mxu1 %v11342_v17  ;;  %v10544_v16 = vcombine.low %v113_v2, %v129_v3  ;;  %v10546_v17 = vcombine.low %v114_v4, %v130_v5  ;;  %v337_v2 = vld [vmem:[#allocation2 + $0x830] sm:$0xff]  ;;  %v338_v4 = vld [vmem:[#allocation2 + $0x838] sm:$0xff] }
 0x1b9   :  { %6792 = vmatprep.subr.bf16.mxu0 %v11373_v18  ;;  %6874 = vmatprep.subr.bf16.mxu1 %v11375_v19  ;;  %v10577_v18 = vcombine.high %v145_v10, %v161_v11  ;;  %v10579_v19 = vcombine.high %v146_v13, %v162_v14  ;;  %v353_v3 = vld [vmem:[#allocation2 + $0x8b0] sm:$0xff]  ;;  %v354_v5 = vld [vmem:[#allocation2 + $0x8b8] sm:$0xff] }
 0x1bc   :  { %6793 = vmatpush1.bf16.msra.mxu0 %v11372_v25  ;;  %6875 = vmatpush1.bf16.msra.mxu1 %v11374_v26  ;;  %v10576_v25 = vcombine.low %v145_v10, %v161_v11  ;;  %v10578_v26 = vcombine.low %v146_v13, %v162_v14  ;;  %v369_v10 = vld [vmem:[#allocation2 + $0x930] sm:$0xff]  ;;  %v370_v13 = vld [vmem:[#allocation2 + $0x938] sm:$0xff] }
 0x1bd   :  { %6794 = vmatprep.subr.bf16.mxu0 %v11405_v27  ;;  %6876 = vmatprep.subr.bf16.mxu1 %v11407_v28  ;;  %v10609_v27 = vcombine.high %v177_v20, %v193_v21  ;;  %v10611_v28 = vcombine.high %v178_v22, %v194_v53  ;;  %v385_v11 = vld [vmem:[#allocation2 + $0x9b0] sm:$0xff]  ;;  %v386_v14 = vld [vmem:[#allocation2 + $0x9b8] sm:$0xff] }
 0x1c0   :  { %6795 = vmatpush1.bf16.msra.mxu0 %v11404_v15  ;;  %6877 = vmatpush1.bf16.msra.mxu1 %v11406_v34  ;;  %v10608_v15 = vcombine.low %v177_v20, %v193_v21  ;;  %v10610_v34 = vcombine.low %v178_v22, %v194_v53  ;;  %v401_v20 = vld [vmem:[#allocation2 + $0xa30] sm:$0xff]  ;;  %v402_v22 = vld [vmem:[#allocation2 + $0xa38] sm:$0xff] }
 0x1c1   :  { %6796 = vmatprep.subr.bf16.mxu0 %v11437_v37  ;;  %6878 = vmatprep.subr.bf16.mxu1 %v11439_v38  ;;  %v10641_v37 = vcombine.high %v209_v29, %v225_v30  ;;  %v10643_v38 = vcombine.high %v210_v31, %v226_v33  ;;  %v417_v21 = vld [vmem:[#allocation2 + $0xab0] sm:$0xff]  ;;  %v418_v53 = vld [vmem:[#allocation2 + $0xab8] sm:$0xff] }
 0x1c4   :  { %6797 = vmatpush1.bf16.msra.mxu0 %v11436_v44  ;;  %6879 = vmatpush1.bf16.msra.mxu1 %v11438_v45  ;;  %v10640_v44 = vcombine.low %v209_v29, %v225_v30  ;;  %v10642_v45 = vcombine.low %v210_v31, %v226_v33  ;;  %v433_v29 = vld [vmem:[#allocation2 + $0xb30] sm:$0xff]  ;;  %v434_v31 = vld [vmem:[#allocation2 + $0xb38] sm:$0xff] }
 0x1c5   :  { %6798 = vmatprep.subr.bf16.mxu0 %v11469_v46  ;;  %6880 = vmatprep.subr.bf16.mxu1 %v11471_v47  ;;  %v10673_v46 = vcombine.high %v241_v40, %v257_v41  ;;  %v10675_v47 = vcombine.high %v242_v42, %v258_v43  ;;  %v449_v30 = vld [vmem:[#allocation2 + $0xbb0] sm:$0xff]  ;;  %v450_v33 = vld [vmem:[#allocation2 + $0xbb8] sm:$0xff] }
 0x1c8   :  { %6799 = vmatpush1.bf16.msra.mxu0 %v11468_v52  ;;  %6881 = vmatpush1.bf16.msra.mxu1 %v11470_v54  ;;  %v10672_v52 = vcombine.low %v241_v40, %v257_v41  ;;  %v10674_v54 = vcombine.low %v242_v42, %v258_v43  ;;  %v465_v40 = vld [vmem:[#allocation2 + $0xc30] sm:$0xff]  ;;  %v466_v42 = vld [vmem:[#allocation2 + $0xc38] sm:$0xff] }
 0x1c9   :  { %6800 = vmatprep.subr.bf16.mxu0 %v11501_v55  ;;  %6882 = vmatprep.subr.bf16.mxu1 %v11503_v56  ;;  %v10705_v55 = vcombine.high %v273_v48, %v289_v49  ;;  %v10707_v56 = vcombine.high %v274_v50, %v290_v51  ;;  %v481_v41 = vld [vmem:[#allocation2 + $0xcb0] sm:$0xff]  ;;  %v482_v43 = vld [vmem:[#allocation2 + $0xcb8] sm:$0xff] }
 0x1cc   :  { %6801 = vmatpush1.bf16.msra.mxu0 %v11500_v62  ;;  %6883 = vmatpush1.bf16.msra.mxu1 %v11502_v63  ;;  %v10704_v62 = vcombine.low %v273_v48, %v289_v49  ;;  %v10706_v63 = vcombine.low %v274_v50, %v290_v51  ;;  %v497_v48 = vld [vmem:[#allocation2 + $0xd30] sm:$0xff]  ;;  %v498_v50 = vld [vmem:[#allocation2 + $0xd38] sm:$0xff] }
 0x1cd   :  { %6893 = vmatprep.subr.bf16.mxu0 %v10513_v0  ;;  %6975 = vmatprep.subr.bf16.mxu1 %v10515_v1  ;;  %v10737_v0 = vcombine.high %v305_v58, %v321_v59  ;;  %v10739_v1 = vcombine.high %v306_v60, %v322_v61  ;;  %v513_v49 = vld [vmem:[#allocation2 + $0xdb0] sm:$0xff]  ;;  %v514_v51 = vld [vmem:[#allocation2 + $0xdb8] sm:$0xff] }
 0x1cf   :  { %6803 = vmatmul.mubr.bf16.vlgmr.msra.gmra.mrb[8].mxu0 %v12745_v24  ;;  %6885 = vmatmul.mubr.bf16.vlgmr.msra.gmra.mrb[8].mxu1 %v12745_v24 }
 0x1d0   :  { %6894 = vmatpush1.bf16.msra.mxu0 %v10512_v6  ;;  %6976 = vmatpush1.bf16.msra.mxu1 %v10514_v7  ;;  %v10736_v6 = vcombine.low %v305_v58, %v321_v59  ;;  %v10738_v7 = vcombine.low %v306_v60, %v322_v61  ;;  %v529_v58 = vld [vmem:[#allocation2 + $0xe30] sm:$0xff]  ;;  %v530_v60 = vld [vmem:[#allocation2 + $0xe38] sm:$0xff] }
 0x1d1   :  { %6895 = vmatprep.subr.bf16.mxu0 %v10545_v8  ;;  %6977 = vmatprep.subr.bf16.mxu1 %v10547_v9  ;;  %v10769_v8 = vcombine.high %v337_v2, %v353_v3  ;;  %v10771_v9 = vcombine.high %v338_v4, %v354_v5  ;;  %v545_v59 = vld [vmem:[#allocation2 + $0xeb0] sm:$0xff]  ;;  %v546_v61 = vld [vmem:[#allocation2 + $0xeb8] sm:$0xff] }
 0x1d2   :  { %6925 = vmatprep.mubr.bf16.mxu0 %v12722_v57  ;;  %7007 = vmatprep.mubr.bf16.mxu1 %v12722_v57 }
 0x1d4   :  { %6896 = vmatpush1.bf16.msra.mxu0 %v10544_v16  ;;  %6978 = vmatpush1.bf16.msra.mxu1 %v10546_v17  ;;  %v10768_v16 = vcombine.low %v337_v2, %v353_v3  ;;  %v10770_v17 = vcombine.low %v338_v4, %v354_v5  ;;  %v561_v2 = vld [vmem:[#allocation2 + $0xf30] sm:$0xff]  ;;  %v562_v4 = vld [vmem:[#allocation2 + $0xf38] sm:$0xff] }
 0x1d5   :  { %6897 = vmatprep.subr.bf16.mxu0 %v10577_v18  ;;  %6979 = vmatprep.subr.bf16.mxu1 %v10579_v19  ;;  %v10801_v18 = vcombine.high %v369_v10, %v385_v11  ;;  %v10803_v19 = vcombine.high %v370_v13, %v386_v14  ;;  %v577_v3 = vld [vmem:[#allocation2 + $0xfb0] sm:$0xff]  ;;  %v578_v5 = vld [vmem:[#allocation2 + $0xfb8] sm:$0xff] }
 0x1d8   :  { %6898 = vmatpush1.bf16.msra.mxu0 %v10576_v25  ;;  %6980 = vmatpush1.bf16.msra.mxu1 %v10578_v26  ;;  %v10800_v25 = vcombine.low %v369_v10, %v385_v11  ;;  %v10802_v26 = vcombine.low %v370_v13, %v386_v14  ;;  %v593_v10 = vld [vmem:[#allocation2 + $0x1030] sm:$0xff]  ;;  %v594_v13 = vld [vmem:[#allocation2 + $0x1038] sm:$0xff] }
 0x1d9   :  { %6899 = vmatprep.subr.bf16.mxu0 %v10609_v27  ;;  %6981 = vmatprep.subr.bf16.mxu1 %v10611_v28  ;;  %v10833_v27 = vcombine.high %v401_v20, %v417_v21  ;;  %v10835_v28 = vcombine.high %v402_v22, %v418_v53  ;;  %v609_v11 = vld [vmem:[#allocation2 + $0x10b0] sm:$0xff]  ;;  %v610_v14 = vld [vmem:[#allocation2 + $0x10b8] sm:$0xff] }
 0x1dc   :  { %6900 = vmatpush1.bf16.msra.mxu0 %v10608_v15  ;;  %6982 = vmatpush1.bf16.msra.mxu1 %v10610_v34  ;;  %v10832_v15 = vcombine.low %v401_v20, %v417_v21  ;;  %v10834_v34 = vcombine.low %v402_v22, %v418_v53  ;;  %v625_v20 = vld [vmem:[#allocation2 + $0x1130] sm:$0xff]  ;;  %v626_v22 = vld [vmem:[#allocation2 + $0x1138] sm:$0xff] }
 0x1dd   :  { %6901 = vmatprep.subr.bf16.mxu0 %v10641_v37  ;;  %6983 = vmatprep.subr.bf16.mxu1 %v10643_v38  ;;  %v10865_v37 = vcombine.high %v433_v29, %v449_v30  ;;  %v10867_v38 = vcombine.high %v434_v31, %v450_v33  ;;  %v641_v21 = vld [vmem:[#allocation2 + $0x11b0] sm:$0xff]  ;;  %v642_v53 = vld [vmem:[#allocation2 + $0x11b8] sm:$0xff] }
 0x1e0   :  { %6902 = vmatpush1.bf16.msra.mxu0 %v10640_v44  ;;  %6984 = vmatpush1.bf16.msra.mxu1 %v10642_v45  ;;  %v10864_v44 = vcombine.low %v433_v29, %v449_v30  ;;  %v10866_v45 = vcombine.low %v434_v31, %v450_v33  ;;  %v657_v29 = vld [vmem:[#allocation2 + $0x1230] sm:$0xff]  ;;  %v658_v31 = vld [vmem:[#allocation2 + $0x1238] sm:$0xff] }
 0x1e1   :  { %6903 = vmatprep.subr.bf16.mxu0 %v10673_v46  ;;  %6985 = vmatprep.subr.bf16.mxu1 %v10675_v47  ;;  %v10897_v46 = vcombine.high %v465_v40, %v481_v41  ;;  %v10899_v47 = vcombine.high %v466_v42, %v482_v43  ;;  %v673_v30 = vld [vmem:[#allocation2 + $0x12b0] sm:$0xff]  ;;  %v674_v33 = vld [vmem:[#allocation2 + $0x12b8] sm:$0xff] }
 0x1e4   :  { %6904 = vmatpush1.bf16.msra.mxu0 %v10672_v52  ;;  %6986 = vmatpush1.bf16.msra.mxu1 %v10674_v54  ;;  %v10896_v52 = vcombine.low %v465_v40, %v481_v41  ;;  %v10898_v54 = vcombine.low %v466_v42, %v482_v43  ;;  %v689_v40 = vld [vmem:[#allocation2 + $0x1330] sm:$0xff]  ;;  %v690_v42 = vld [vmem:[#allocation2 + $0x1338] sm:$0xff] }
 0x1e5   :  { %6905 = vmatprep.subr.bf16.mxu0 %v10705_v55  ;;  %6987 = vmatprep.subr.bf16.mxu1 %v10707_v56  ;;  %v10929_v55 = vcombine.high %v497_v48, %v513_v49  ;;  %v10931_v56 = vcombine.high %v498_v50, %v514_v51  ;;  %v705_v41 = vld [vmem:[#allocation2 + $0x13b0] sm:$0xff]  ;;  %v706_v43 = vld [vmem:[#allocation2 + $0x13b8] sm:$0xff] }
 0x1e8   :  { %6906 = vmatpush1.bf16.msra.mxu0 %v10704_v62  ;;  %6988 = vmatpush1.bf16.msra.mxu1 %v10706_v63  ;;  %v10928_v62 = vcombine.low %v497_v48, %v513_v49  ;;  %v10930_v63 = vcombine.low %v498_v50, %v514_v51  ;;  %v721_v48 = vld [vmem:[#allocation2 + $0x1430] sm:$0xff]  ;;  %v722_v50 = vld [vmem:[#allocation2 + $0x1438] sm:$0xff] }
 0x1e9   :  { %6907 = vmatprep.subr.bf16.mxu0 %v10737_v0  ;;  %6989 = vmatprep.subr.bf16.mxu1 %v10739_v1  ;;  %v10961_v0 = vcombine.high %v529_v58, %v545_v59  ;;  %v10963_v1 = vcombine.high %v530_v60, %v546_v61  ;;  %v737_v49 = vld [vmem:[#allocation2 + $0x14b0] sm:$0xff]  ;;  %v738_v51 = vld [vmem:[#allocation2 + $0x14b8] sm:$0xff] }
 0x1ec   :  { %6908 = vmatpush1.bf16.msra.mxu0 %v10736_v6  ;;  %6990 = vmatpush1.bf16.msra.mxu1 %v10738_v7  ;;  %v10960_v6 = vcombine.low %v529_v58, %v545_v59  ;;  %v10962_v7 = vcombine.low %v530_v60, %v546_v61  ;;  %v753_v58 = vld [vmem:[#allocation2 + $0x1530] sm:$0xff]  ;;  %v754_v60 = vld [vmem:[#allocation2 + $0x1538] sm:$0xff] }
 0x1ed   :  { %6909 = vmatprep.subr.bf16.mxu0 %v10769_v8  ;;  %6991 = vmatprep.subr.bf16.mxu1 %v10771_v9  ;;  %v10993_v8 = vcombine.high %v561_v2, %v577_v3  ;;  %v10995_v9 = vcombine.high %v562_v4, %v578_v5  ;;  %v769_v59 = vld [vmem:[#allocation2 + $0x15b0] sm:$0xff]  ;;  %v770_v61 = vld [vmem:[#allocation2 + $0x15b8] sm:$0xff] }
 0x1f0   :  { %6910 = vmatpush1.bf16.msra.mxu0 %v10768_v16  ;;  %6992 = vmatpush1.bf16.msra.mxu1 %v10770_v17  ;;  %v10992_v16 = vcombine.low %v561_v2, %v577_v3  ;;  %v10994_v17 = vcombine.low %v562_v4, %v578_v5  ;;  %v785_v2 = vld [vmem:[#allocation2 + $0x1630] sm:$0xff]  ;;  %v786_v4 = vld [vmem:[#allocation2 + $0x1638] sm:$0xff] }
 0x1f1   :  { %6911 = vmatprep.subr.bf16.mxu0 %v10801_v18  ;;  %6993 = vmatprep.subr.bf16.mxu1 %v10803_v19  ;;  %v11025_v18 = vcombine.high %v593_v10, %v609_v11  ;;  %v11027_v19 = vcombine.high %v594_v13, %v610_v14  ;;  %v801_v3 = vld [vmem:[#allocation2 + $0x16b0] sm:$0xff]  ;;  %v802_v5 = vld [vmem:[#allocation2 + $0x16b8] sm:$0xff] }
 0x1f4   :  { %6912 = vmatpush1.bf16.msra.mxu0 %v10800_v25  ;;  %6994 = vmatpush1.bf16.msra.mxu1 %v10802_v26  ;;  %v11024_v25 = vcombine.low %v593_v10, %v609_v11  ;;  %v11026_v26 = vcombine.low %v594_v13, %v610_v14  ;;  %v11219_v10 = vcombine.high %v786_v4, %v802_v5  ;;  %v817_v11 = vld [vmem:[#allocation2 + $0x1730] sm:$0xff] }
 0x1f5   :  { %6913 = vmatprep.subr.bf16.mxu0 %v10833_v27  ;;  %6995 = vmatprep.subr.bf16.mxu1 %v10835_v28  ;;  %v11057_v27 = vcombine.high %v625_v20, %v641_v21  ;;  %v11059_v28 = vcombine.high %v626_v22, %v642_v53  ;;  %v833_v13 = vld [vmem:[#allocation2 + $0x17b0] sm:$0xff] }
 0x1f8   :  { %6914 = vmatpush1.bf16.msra.mxu0 %v10832_v15  ;;  %6996 = vmatpush1.bf16.msra.mxu1 %v10834_v34  ;;  %v11056_v15 = vcombine.low %v625_v20, %v641_v21  ;;  %v11058_v34 = vcombine.low %v626_v22, %v642_v53  ;;  %v11216_v21 = vcombine.low %v785_v2, %v801_v3 }
 0x1f9   :  { %6915 = vmatprep.subr.bf16.mxu0 %v10865_v37  ;;  %6997 = vmatprep.subr.bf16.mxu1 %v10867_v38  ;;  %v11089_v37 = vcombine.high %v657_v29, %v673_v30  ;;  %v11091_v38 = vcombine.high %v658_v31, %v674_v33 }
 0x1fc   :  { %6916 = vmatpush1.bf16.msra.mxu0 %v10864_v44  ;;  %6998 = vmatpush1.bf16.msra.mxu1 %v10866_v45  ;;  %v11088_v44 = vcombine.low %v657_v29, %v673_v30  ;;  %v11090_v45 = vcombine.low %v658_v31, %v674_v33  ;;  %v849_v29 = vld [vmem:[#allocation2 + $0x1830] sm:$0xff]  ;;  %v850_v31 = vld [vmem:[#allocation2 + $0x1838] sm:$0xff] }
 0x1fd   :  { %6917 = vmatprep.subr.bf16.mxu0 %v10897_v46  ;;  %6999 = vmatprep.subr.bf16.mxu1 %v10899_v47  ;;  %v11121_v46 = vcombine.high %v689_v40, %v705_v41  ;;  %v11123_v47 = vcombine.high %v690_v42, %v706_v43  ;;  %v865_v30 = vld [vmem:[#allocation2 + $0x18b0] sm:$0xff]  ;;  %v866_v33 = vld [vmem:[#allocation2 + $0x18b8] sm:$0xff] }
 0x200   :  { %6918 = vmatpush1.bf16.msra.mxu0 %v10896_v52  ;;  %7000 = vmatpush1.bf16.msra.mxu1 %v10898_v54  ;;  %v11120_v52 = vcombine.low %v689_v40, %v705_v41  ;;  %v11122_v54 = vcombine.low %v690_v42, %v706_v43  ;;  %v881_v40 = vld [vmem:[#allocation2 + $0x1930] sm:$0xff]  ;;  %v882_v42 = vld [vmem:[#allocation2 + $0x1938] sm:$0xff] }
 0x201   :  { %6919 = vmatprep.subr.bf16.mxu0 %v10929_v55  ;;  %7001 = vmatprep.subr.bf16.mxu1 %v10931_v56  ;;  %v11153_v55 = vcombine.high %v721_v48, %v737_v49  ;;  %v11155_v56 = vcombine.high %v722_v50, %v738_v51  ;;  %v897_v41 = vld [vmem:[#allocation2 + $0x19b0] sm:$0xff]  ;;  %v898_v43 = vld [vmem:[#allocation2 + $0x19b8] sm:$0xff] }
 0x204   :  { %6920 = vmatpush1.bf16.msra.mxu0 %v10928_v62  ;;  %7002 = vmatpush1.bf16.msra.mxu1 %v10930_v63  ;;  %v11152_v62 = vcombine.low %v721_v48, %v737_v49  ;;  %v11154_v63 = vcombine.low %v722_v50, %v738_v51  ;;  %v913_v48 = vld [vmem:[#allocation2 + $0x1a30] sm:$0xff]  ;;  %v914_v50 = vld [vmem:[#allocation2 + $0x1a38] sm:$0xff] }
 0x205   :  { %6921 = vmatprep.subr.bf16.mxu0 %v10961_v0  ;;  %7003 = vmatprep.subr.bf16.mxu1 %v10963_v1  ;;  %v11185_v0 = vcombine.high %v753_v58, %v769_v59  ;;  %v11187_v1 = vcombine.high %v754_v60, %v770_v61  ;;  %v929_v49 = vld [vmem:[#allocation2 + $0x1ab0] sm:$0xff]  ;;  %v930_v51 = vld [vmem:[#allocation2 + $0x1ab8] sm:$0xff] }
 0x208   :  { %6922 = vmatpush1.bf16.msra.mxu0 %v10960_v6  ;;  %7004 = vmatpush1.bf16.msra.mxu1 %v10962_v7  ;;  %v11184_v6 = vcombine.low %v753_v58, %v769_v59  ;;  %v11186_v7 = vcombine.low %v754_v60, %v770_v61  ;;  %v945_v58 = vld [vmem:[#allocation2 + $0x1b30] sm:$0xff]  ;;  %v946_v60 = vld [vmem:[#allocation2 + $0x1b38] sm:$0xff] }
 0x209   :  { %6923 = vmatprep.subr.bf16.mxu0 %v10993_v8  ;;  %7005 = vmatprep.subr.bf16.mxu1 %v10995_v9  ;;  %v11217_v8 = vcombine.high %v785_v2, %v801_v3  ;;  %v961_v59 = vld [vmem:[#allocation2 + $0x1bb0] sm:$0xff]  ;;  %v962_v61 = vld [vmem:[#allocation2 + $0x1bb8] sm:$0xff] }
 0x20a   :  { %v977_v2 = vld [vmem:[#allocation2 + $0x1c30] sm:$0xff] }
 0x20b   :  { %v993_v3 = vld [vmem:[#allocation2 + $0x1cb0] sm:$0xff] }
 0x20c   :  { %6924 = vmatpush1.bf16.msra.mxu0 %v10992_v16  ;;  %7006 = vmatpush1.bf16.msra.mxu1 %v10994_v17  ;;  %v818_v17 = vld [vmem:[#allocation2 + $0x1738] sm:$0xff] }
 0x20d   :  { %6934 = vmatprep.subr.bf16.mxu0 %v11025_v18  ;;  %7016 = vmatprep.subr.bf16.mxu1 %v11027_v19  ;;  %v834_v18 = vld [vmem:[#allocation2 + $0x17b8] sm:$0xff] }
 0x20f   :  { %6926 = vmatmul.mubr.bf16.vlgmr.msra.gmra.mrb[12].mxu0 %v12728_v12  ;;  %7008 = vmatmul.mubr.bf16.vlgmr.msra.gmra.mrb[12].mxu1 %v12728_v12 }
 0x210   :  { %6935 = vmatpush1.bf16.msra.mxu0 %v11024_v25  ;;  %7017 = vmatpush1.bf16.msra.mxu1 %v11026_v26  ;;  %v11218_v25 = vcombine.low %v786_v4, %v802_v5  ;;  %v11249_v26 = vcombine.high %v817_v11, %v833_v13  ;;  %v978_v4 = vld [vmem:[#allocation2 + $0x1c38] sm:$0xff] }
 0x211   :  { %6936 = vmatprep.subr.bf16.mxu0 %v11057_v27  ;;  %7018 = vmatprep.subr.bf16.mxu1 %v11059_v28  ;;  %v11251_v28 = vcombine.high %v818_v17, %v834_v18  ;;  %v994_v5 = vld [vmem:[#allocation2 + $0x1cb8] sm:$0xff] }
 0x212   :  { %6966 = vmatprep.mubr.bf16.mxu0 %v12737_v23  ;;  %7048 = vmatprep.mubr.bf16.mxu1 %v12737_v23 }
 0x214   :  { %6937 = vmatpush1.bf16.msra.mxu0 %v11056_v15  ;;  %7019 = vmatpush1.bf16.msra.mxu1 %v11058_v34  ;;  %v11248_v15 = vcombine.low %v817_v11, %v833_v13  ;;  %v11250_v34 = vcombine.low %v818_v17, %v834_v18  ;;  %v1009_v11 = vld [vmem:[#allocation2 + $0x1d30] sm:$0xff]  ;;  %v1010_v17 = vld [vmem:[#allocation2 + $0x1d38] sm:$0xff] }
 0x215   :  { %6938 = vmatprep.subr.bf16.mxu0 %v11089_v37  ;;  %7020 = vmatprep.subr.bf16.mxu1 %v11091_v38  ;;  %v11281_v37 = vcombine.high %v849_v29, %v865_v30  ;;  %v11283_v38 = vcombine.high %v850_v31, %v866_v33  ;;  %v1025_v13 = vld [vmem:[#allocation2 + $0x1db0] sm:$0xff]  ;;  %v1026_v18 = vld [vmem:[#allocation2 + $0x1db8] sm:$0xff] }
 0x218   :  { %6939 = vmatpush1.bf16.msra.mxu0 %v11088_v44  ;;  %7021 = vmatpush1.bf16.msra.mxu1 %v11090_v45  ;;  %v11280_v44 = vcombine.low %v849_v29, %v865_v30  ;;  %v11282_v45 = vcombine.low %v850_v31, %v866_v33  ;;  %v11440_v29 = vcombine.low %v1009_v11, %v1025_v13 }
 0x219   :  { %6940 = vmatprep.subr.bf16.mxu0 %v11121_v46  ;;  %7022 = vmatprep.subr.bf16.mxu1 %v11123_v47  ;;  %v11313_v46 = vcombine.high %v881_v40, %v897_v41  ;;  %v11315_v47 = vcombine.high %v882_v42, %v898_v43  ;;  %v11442_v30 = vcombine.low %v1010_v17, %v1026_v18 }
 0x21c   :  { %6941 = vmatpush1.bf16.msra.mxu0 %v11120_v52  ;;  %7023 = vmatpush1.bf16.msra.mxu1 %v11122_v54  ;;  %v11312_v52 = vcombine.low %v881_v40, %v897_v41  ;;  %v11314_v54 = vcombine.low %v882_v42, %v898_v43 }
 0x21d   :  { %6942 = vmatprep.subr.bf16.mxu0 %v11153_v55  ;;  %7024 = vmatprep.subr.bf16.mxu1 %v11155_v56  ;;  %v11345_v55 = vcombine.high %v913_v48, %v929_v49  ;;  %v11347_v56 = vcombine.high %v914_v50, %v930_v51 }
 0x220   :  { %6943 = vmatpush1.bf16.msra.mxu0 %v11152_v62  ;;  %7025 = vmatpush1.bf16.msra.mxu1 %v11154_v63  ;;  %v11344_v62 = vcombine.low %v913_v48, %v929_v49  ;;  %v11346_v63 = vcombine.low %v914_v50, %v930_v51 }
 0x221   :  { %6944 = vmatprep.subr.bf16.mxu0 %v11185_v0  ;;  %7026 = vmatprep.subr.bf16.mxu1 %v11187_v1  ;;  %v11377_v0 = vcombine.high %v945_v58, %v961_v59  ;;  %v11379_v1 = vcombine.high %v946_v60, %v962_v61 }
 0x222   :  { %v12779_v9 = vpop.f32.mrb[4].mxu0  ;;  %v12781_v14 = vpop.f32.mrb[4].mxu1 }
 0x223   :  { %v12783_v16 = vpop.f32.mrb[5].mxu0  ;;  %v12785_v19 = vpop.f32.mrb[5].mxu1 }
 0x224   :  { %v6644_v20 = vpop.f32.mrb[6].mxu0  ;;  %6945 = vmatpush1.bf16.msra.mxu0 %v11184_v6  ;;  %v6726_v22 = vpop.f32.mrb[6].mxu1  ;;  %7027 = vmatpush1.bf16.msra.mxu1 %v11186_v7  ;;  %v11376_v6 = vcombine.low %v945_v58, %v961_v59  ;;  %v11378_v7 = vcombine.low %v946_v60, %v962_v61 }
 0x225   :  { %v6645_v53 = vpop.f32.mrb[7].mxu0  ;;  %6946 = vmatprep.subr.bf16.mxu0 %v11217_v8  ;;  %v6727_v27 = vpop.f32.mrb[7].mxu1  ;;  %7028 = vmatprep.subr.bf16.mxu1 %v11219_v10  ;;  %v11409_v8 = vcombine.high %v977_v2, %v993_v3  ;;  %v11411_v10 = vcombine.high %v978_v4, %v994_v5  ;;  %v11408_v20 = vcombine.low %v977_v2, %v993_v3 }
 0x226   :  { %v11441_v22 = vcombine.high %v1009_v11, %v1025_v13  ;;  %v11443_v53 = vcombine.high %v1010_v17, %v1026_v18  ;;  %v1042_v27 = vld [vmem:[#allocation2 + $0x1e38] sm:$0xff] }
 0x228   :  { %6947 = vmatpush1.bf16.msra.mxu0 %v11216_v21  ;;  %7029 = vmatpush1.bf16.msra.mxu1 %v11218_v25  ;;  %v11410_v21 = vcombine.low %v978_v4, %v994_v5  ;;  %v1041_v25 = vld [vmem:[#allocation2 + $0x1e30] sm:$0xff] }
 0x229   :  { %6948 = vmatprep.subr.bf16.mxu0 %v11249_v26  ;;  %7030 = vmatprep.subr.bf16.mxu1 %v11251_v28  ;;  %v1057_v26 = vld [vmem:[#allocation2 + $0x1eb0] sm:$0xff]  ;;  %v1058_v28 = vld [vmem:[#allocation2 + $0x1eb8] sm:$0xff] }
 0x22a   :  { %v11473_v31 = vcombine.high %v1041_v25, %v1057_v26  ;;  %v11475_v33 = vcombine.high %v1042_v27, %v1058_v28  ;;  %v11472_v40 = vcombine.low %v1041_v25, %v1057_v26  ;;  %v11474_v41 = vcombine.low %v1042_v27, %v1058_v28 }
 0x22c   :  { %6949 = vmatpush1.bf16.msra.mxu0 %v11248_v15  ;;  %7031 = vmatpush1.bf16.msra.mxu1 %v11250_v34  ;;  %v1073_v15 = vld [vmem:[#allocation2 + $0x1f30] sm:$0xff] }
 0x22d   :  { %6950 = vmatprep.subr.bf16.mxu0 %v11281_v37  ;;  %7032 = vmatprep.subr.bf16.mxu1 %v11283_v38  ;;  %v1089_v34 = vld [vmem:[#allocation2 + $0x1fb0] sm:$0xff]  ;;  %v1074_v37 = vld [vmem:[#allocation2 + $0x1f38] sm:$0xff] }
 0x22e   :  { %v1090_v38 = vld [vmem:[#allocation2 + $0x1fb8] sm:$0xff]  ;;  %v11505_v42 = vcombine.high %v1073_v15, %v1089_v34  ;;  %v11504_v48 = vcombine.low %v1073_v15, %v1089_v34 }
 0x22f   :  { %v11507_v43 = vcombine.high %v1074_v37, %v1090_v38  ;;  %v11506_v49 = vcombine.low %v1074_v37, %v1090_v38 }
 0x230   :  { %6951 = vmatpush1.bf16.msra.mxu0 %v11280_v44  ;;  %7033 = vmatpush1.bf16.msra.mxu1 %v11282_v45  ;;  %v83_v44 = vld [vmem:[#allocation2 + $0x40] sm:$0xff] }
 0x231   :  { %6952 = vmatprep.subr.bf16.mxu0 %v11313_v46  ;;  %7034 = vmatprep.subr.bf16.mxu1 %v11315_v47  ;;  %v99_v45 = vld [vmem:[#allocation2 + $0xc0] sm:$0xff]  ;;  %v84_v46 = vld [vmem:[#allocation2 + $0x48] sm:$0xff] }
 0x232   :  { %v100_v47 = vld [vmem:[#allocation2 + $0xc8] sm:$0xff]  ;;  %v10517_v50 = vcombine.high %v83_v44, %v99_v45  ;;  %v10516_v58 = vcombine.low %v83_v44, %v99_v45 }
 0x233   :  { %v10519_v51 = vcombine.high %v84_v46, %v100_v47  ;;  %v10518_v59 = vcombine.low %v84_v46, %v100_v47 }
 0x234   :  { %6953 = vmatpush1.bf16.msra.mxu0 %v11312_v52  ;;  %7035 = vmatpush1.bf16.msra.mxu1 %v11314_v54  ;;  %v115_v52 = vld [vmem:[#allocation2 + $0x140] sm:$0xff] }
 0x235   :  { %6954 = vmatprep.subr.bf16.mxu0 %v11345_v55  ;;  %7036 = vmatprep.subr.bf16.mxu1 %v11347_v56  ;;  %v131_v54 = vld [vmem:[#allocation2 + $0x1c0] sm:$0xff]  ;;  %v116_v55 = vld [vmem:[#allocation2 + $0x148] sm:$0xff] }
 0x236   :  { %v132_v56 = vld [vmem:[#allocation2 + $0x1c8] sm:$0xff]  ;;  %v10549_v60 = vcombine.high %v115_v52, %v131_v54  ;;  %v10548_v2 = vcombine.low %v115_v52, %v131_v54 }
 0x237   :  { %v10551_v61 = vcombine.high %v116_v55, %v132_v56  ;;  %v10550_v3 = vcombine.low %v116_v55, %v132_v56 }
 0x238   :  { %6955 = vmatpush1.bf16.msra.mxu0 %v11344_v62  ;;  %7037 = vmatpush1.bf16.msra.mxu1 %v11346_v63  ;;  %v147_v62 = vld [vmem:[#allocation2 + $0x240] sm:$0xff] }
 0x239   :  { %6956 = vmatprep.subr.bf16.mxu0 %v11377_v0  ;;  %7038 = vmatprep.subr.bf16.mxu1 %v11379_v1  ;;  %v163_v63 = vld [vmem:[#allocation2 + $0x2c0] sm:$0xff]  ;;  %v148_v0 = vld [vmem:[#allocation2 + $0x248] sm:$0xff] }
 0x23a   :  { %v164_v1 = vld [vmem:[#allocation2 + $0x2c8] sm:$0xff]  ;;  %v10581_v4 = vcombine.high %v147_v62, %v163_v63  ;;  %v10580_v11 = vcombine.low %v147_v62, %v163_v63 }
 0x23b   :  { %v10583_v5 = vcombine.high %v148_v0, %v164_v1  ;;  %v10582_v13 = vcombine.low %v148_v0, %v164_v1 }
 0x23c   :  { %6957 = vmatpush1.bf16.msra.mxu0 %v11376_v6  ;;  %7039 = vmatpush1.bf16.msra.mxu1 %v11378_v7  ;;  %v179_v6 = vld [vmem:[#allocation2 + $0x340] sm:$0xff] }
 0x23d   :  { %6958 = vmatprep.subr.bf16.mxu0 %v11409_v8  ;;  %7040 = vmatprep.subr.bf16.mxu1 %v11411_v10  ;;  %v195_v7 = vld [vmem:[#allocation2 + $0x3c0] sm:$0xff]  ;;  %v180_v8 = vld [vmem:[#allocation2 + $0x348] sm:$0xff] }
 0x23e   :  { %v196_v10 = vld [vmem:[#allocation2 + $0x3c8] sm:$0xff]  ;;  %v10613_v17 = vcombine.high %v179_v6, %v195_v7  ;;  %v10612_v25 = vcombine.low %v179_v6, %v195_v7 }
 0x23f   :  { %v10615_v18 = vcombine.high %v180_v8, %v196_v10  ;;  %v10614_v26 = vcombine.low %v180_v8, %v196_v10 }
 0x240   :  { %6959 = vmatpush1.bf16.msra.mxu0 %v11408_v20  ;;  %7041 = vmatpush1.bf16.msra.mxu1 %v11410_v21  ;;  %v211_v20 = vld [vmem:[#allocation2 + $0x440] sm:$0xff] }
 0x241   :  { %6960 = vmatprep.subr.bf16.mxu0 %v11441_v22  ;;  %7042 = vmatprep.subr.bf16.mxu1 %v11443_v53  ;;  %v227_v21 = vld [vmem:[#allocation2 + $0x4c0] sm:$0xff]  ;;  %v212_v22 = vld [vmem:[#allocation2 + $0x448] sm:$0xff] }
 0x242   :  { %v228_v53 = vld [vmem:[#allocation2 + $0x4c8] sm:$0xff]  ;;  %v10645_v27 = vcombine.high %v211_v20, %v227_v21  ;;  %v10644_v15 = vcombine.low %v211_v20, %v227_v21 }
 0x243   :  { %v10647_v28 = vcombine.high %v212_v22, %v228_v53  ;;  %v10646_v34 = vcombine.low %v212_v22, %v228_v53 }
 0x244   :  { %6961 = vmatpush1.bf16.msra.mxu0 %v11440_v29  ;;  %7043 = vmatpush1.bf16.msra.mxu1 %v11442_v30  ;;  %v243_v29 = vld [vmem:[#allocation2 + $0x540] sm:$0xff] }
 0x245   :  { %6962 = vmatprep.subr.bf16.mxu0 %v11473_v31  ;;  %7044 = vmatprep.subr.bf16.mxu1 %v11475_v33  ;;  %v259_v30 = vld [vmem:[#allocation2 + $0x5c0] sm:$0xff]  ;;  %v244_v31 = vld [vmem:[#allocation2 + $0x548] sm:$0xff] }
 0x246   :  { %v260_v33 = vld [vmem:[#allocation2 + $0x5c8] sm:$0xff]  ;;  %v10677_v37 = vcombine.high %v243_v29, %v259_v30  ;;  %v10676_v44 = vcombine.low %v243_v29, %v259_v30 }
 0x247   :  { %v10679_v38 = vcombine.high %v244_v31, %v260_v33  ;;  %v10678_v45 = vcombine.low %v244_v31, %v260_v33 }
 0x248   :  { %6963 = vmatpush1.bf16.msra.mxu0 %v11472_v40  ;;  %7045 = vmatpush1.bf16.msra.mxu1 %v11474_v41  ;;  %v275_v40 = vld [vmem:[#allocation2 + $0x640] sm:$0xff] }
 0x249   :  { %6964 = vmatprep.subr.bf16.mxu0 %v11505_v42  ;;  %7046 = vmatprep.subr.bf16.mxu1 %v11507_v43  ;;  %v291_v41 = vld [vmem:[#allocation2 + $0x6c0] sm:$0xff]  ;;  %v276_v42 = vld [vmem:[#allocation2 + $0x648] sm:$0xff] }
 0x24a   :  { %v292_v43 = vld [vmem:[#allocation2 + $0x6c8] sm:$0xff]  ;;  %v10709_v46 = vcombine.high %v275_v40, %v291_v41  ;;  %v10708_v52 = vcombine.low %v275_v40, %v291_v41 }
 0x24b   :  { %v10711_v47 = vcombine.high %v276_v42, %v292_v43  ;;  %v10710_v54 = vcombine.low %v276_v42, %v292_v43 }
 0x24c   :  { %6965 = vmatpush1.bf16.msra.mxu0 %v11504_v48  ;;  %7047 = vmatpush1.bf16.msra.mxu1 %v11506_v49  ;;  %v307_v48 = vld [vmem:[#allocation2 + $0x740] sm:$0xff] }
 0x24d   :  { %7057 = vmatprep.subr.bf16.mxu0 %v10517_v50  ;;  %7139 = vmatprep.subr.bf16.mxu1 %v10519_v51  ;;  %v323_v49 = vld [vmem:[#allocation2 + $0x7c0] sm:$0xff]  ;;  %v308_v50 = vld [vmem:[#allocation2 + $0x748] sm:$0xff] }
 0x24e   :  { %v324_v51 = vld [vmem:[#allocation2 + $0x7c8] sm:$0xff]  ;;  %v10741_v55 = vcombine.high %v307_v48, %v323_v49  ;;  %v10740_v62 = vcombine.low %v307_v48, %v323_v49 }
 0x24f   :  { %6967 = vmatmul.mubr.bf16.vlgmr.msra.gmra.mrb[12].mxu0 %v12745_v24  ;;  %7049 = vmatmul.mubr.bf16.vlgmr.msra.gmra.mrb[12].mxu1 %v12745_v24  ;;  %v10743_v56 = vcombine.high %v308_v50, %v324_v51  ;;  %v10742_v63 = vcombine.low %v308_v50, %v324_v51 }
 0x250   :  { %7058 = vmatpush1.bf16.msra.mxu0 %v10516_v58  ;;  %7140 = vmatpush1.bf16.msra.mxu1 %v10518_v59  ;;  %v339_v58 = vld [vmem:[#allocation2 + $0x840] sm:$0xff] }
 0x251   :  { %7059 = vmatprep.subr.bf16.mxu0 %v10549_v60  ;;  %7141 = vmatprep.subr.bf16.mxu1 %v10551_v61  ;;  %v355_v59 = vld [vmem:[#allocation2 + $0x8c0] sm:$0xff]  ;;  %v340_v60 = vld [vmem:[#allocation2 + $0x848] sm:$0xff] }
 0x252   :  { %7089 = vmatprep.mubr.bf16.mxu0 %v12722_v57  ;;  %7171 = vmatprep.mubr.bf16.mxu1 %v12722_v57  ;;  %v356_v61 = vld [vmem:[#allocation2 + $0x8c8] sm:$0xff]  ;;  %v10773_v0 = vcombine.high %v339_v58, %v355_v59  ;;  %v10772_v6 = vcombine.low %v339_v58, %v355_v59 }
 0x253   :  { %v10775_v1 = vcombine.high %v340_v60, %v356_v61  ;;  %v10774_v7 = vcombine.low %v340_v60, %v356_v61 }
 0x254   :  { %7060 = vmatpush1.bf16.msra.mxu0 %v10548_v2  ;;  %7142 = vmatpush1.bf16.msra.mxu1 %v10550_v3  ;;  %v371_v2 = vld [vmem:[#allocation2 + $0x940] sm:$0xff] }
 0x255   :  { %7061 = vmatprep.subr.bf16.mxu0 %v10581_v4  ;;  %7143 = vmatprep.subr.bf16.mxu1 %v10583_v5  ;;  %v387_v3 = vld [vmem:[#allocation2 + $0x9c0] sm:$0xff]  ;;  %v372_v4 = vld [vmem:[#allocation2 + $0x948] sm:$0xff] }
 0x256   :  { %v388_v5 = vld [vmem:[#allocation2 + $0x9c8] sm:$0xff]  ;;  %v10805_v8 = vcombine.high %v371_v2, %v387_v3  ;;  %v10804_v20 = vcombine.low %v371_v2, %v387_v3 }
 0x257   :  { %v10807_v10 = vcombine.high %v372_v4, %v388_v5  ;;  %v10806_v21 = vcombine.low %v372_v4, %v388_v5 }
 0x258   :  { %7062 = vmatpush1.bf16.msra.mxu0 %v10580_v11  ;;  %7144 = vmatpush1.bf16.msra.mxu1 %v10582_v13  ;;  %v403_v11 = vld [vmem:[#allocation2 + $0xa40] sm:$0xff] }
 0x259   :  { %7063 = vmatprep.subr.bf16.mxu0 %v10613_v17  ;;  %7145 = vmatprep.subr.bf16.mxu1 %v10615_v18  ;;  %v419_v13 = vld [vmem:[#allocation2 + $0xac0] sm:$0xff]  ;;  %v404_v17 = vld [vmem:[#allocation2 + $0xa48] sm:$0xff] }
 0x25a   :  { %v420_v18 = vld [vmem:[#allocation2 + $0xac8] sm:$0xff]  ;;  %v10837_v22 = vcombine.high %v403_v11, %v419_v13  ;;  %v10836_v29 = vcombine.low %v403_v11, %v419_v13 }
 0x25b   :  { %v10839_v53 = vcombine.high %v404_v17, %v420_v18  ;;  %v10838_v30 = vcombine.low %v404_v17, %v420_v18 }
 0x25c   :  { %7064 = vmatpush1.bf16.msra.mxu0 %v10612_v25  ;;  %7146 = vmatpush1.bf16.msra.mxu1 %v10614_v26  ;;  %v435_v25 = vld [vmem:[#allocation2 + $0xb40] sm:$0xff] }
 0x25d   :  { %7065 = vmatprep.subr.bf16.mxu0 %v10645_v27  ;;  %7147 = vmatprep.subr.bf16.mxu1 %v10647_v28  ;;  %v451_v26 = vld [vmem:[#allocation2 + $0xbc0] sm:$0xff]  ;;  %v436_v27 = vld [vmem:[#allocation2 + $0xb48] sm:$0xff] }
 0x25e   :  { %v452_v28 = vld [vmem:[#allocation2 + $0xbc8] sm:$0xff]  ;;  %v10869_v31 = vcombine.high %v435_v25, %v451_v26  ;;  %v10868_v40 = vcombine.low %v435_v25, %v451_v26 }
 0x25f   :  { %v10871_v33 = vcombine.high %v436_v27, %v452_v28  ;;  %v10870_v41 = vcombine.low %v436_v27, %v452_v28 }
 0x260   :  { %7066 = vmatpush1.bf16.msra.mxu0 %v10644_v15  ;;  %7148 = vmatpush1.bf16.msra.mxu1 %v10646_v34  ;;  %v467_v15 = vld [vmem:[#allocation2 + $0xc40] sm:$0xff] }
 0x261   :  { %7067 = vmatprep.subr.bf16.mxu0 %v10677_v37  ;;  %7149 = vmatprep.subr.bf16.mxu1 %v10679_v38  ;;  %v483_v34 = vld [vmem:[#allocation2 + $0xcc0] sm:$0xff]  ;;  %v468_v37 = vld [vmem:[#allocation2 + $0xc48] sm:$0xff] }
 0x262   :  { %v484_v38 = vld [vmem:[#allocation2 + $0xcc8] sm:$0xff]  ;;  %v10901_v42 = vcombine.high %v467_v15, %v483_v34  ;;  %v10900_v48 = vcombine.low %v467_v15, %v483_v34 }
 0x263   :  { %v10903_v43 = vcombine.high %v468_v37, %v484_v38  ;;  %v10902_v49 = vcombine.low %v468_v37, %v484_v38 }
 0x264   :  { %7068 = vmatpush1.bf16.msra.mxu0 %v10676_v44  ;;  %7150 = vmatpush1.bf16.msra.mxu1 %v10678_v45  ;;  %v499_v44 = vld [vmem:[#allocation2 + $0xd40] sm:$0xff] }
 0x265   :  { %7069 = vmatprep.subr.bf16.mxu0 %v10709_v46  ;;  %7151 = vmatprep.subr.bf16.mxu1 %v10711_v47  ;;  %v515_v45 = vld [vmem:[#allocation2 + $0xdc0] sm:$0xff]  ;;  %v500_v46 = vld [vmem:[#allocation2 + $0xd48] sm:$0xff] }
 0x266   :  { %v516_v47 = vld [vmem:[#allocation2 + $0xdc8] sm:$0xff]  ;;  %v10933_v50 = vcombine.high %v499_v44, %v515_v45  ;;  %v10932_v58 = vcombine.low %v499_v44, %v515_v45 }
 0x267   :  { %v10935_v51 = vcombine.high %v500_v46, %v516_v47  ;;  %v10934_v59 = vcombine.low %v500_v46, %v516_v47 }
 0x268   :  { %7070 = vmatpush1.bf16.msra.mxu0 %v10708_v52  ;;  %7152 = vmatpush1.bf16.msra.mxu1 %v10710_v54  ;;  %v531_v52 = vld [vmem:[#allocation2 + $0xe40] sm:$0xff] }
 0x269   :  { %7071 = vmatprep.subr.bf16.mxu0 %v10741_v55  ;;  %7153 = vmatprep.subr.bf16.mxu1 %v10743_v56  ;;  %v547_v54 = vld [vmem:[#allocation2 + $0xec0] sm:$0xff]  ;;  %v532_v55 = vld [vmem:[#allocation2 + $0xe48] sm:$0xff] }
 0x26a   :  { %v548_v56 = vld [vmem:[#allocation2 + $0xec8] sm:$0xff]  ;;  %v10965_v60 = vcombine.high %v531_v52, %v547_v54  ;;  %v10964_v2 = vcombine.low %v531_v52, %v547_v54 }
 0x26b   :  { %v10967_v61 = vcombine.high %v532_v55, %v548_v56  ;;  %v10966_v3 = vcombine.low %v532_v55, %v548_v56 }
 0x26c   :  { %7072 = vmatpush1.bf16.msra.mxu0 %v10740_v62  ;;  %7154 = vmatpush1.bf16.msra.mxu1 %v10742_v63  ;;  %v563_v62 = vld [vmem:[#allocation2 + $0xf40] sm:$0xff] }
 0x26d   :  { %7073 = vmatprep.subr.bf16.mxu0 %v10773_v0  ;;  %7155 = vmatprep.subr.bf16.mxu1 %v10775_v1  ;;  %v579_v63 = vld [vmem:[#allocation2 + $0xfc0] sm:$0xff]  ;;  %v564_v0 = vld [vmem:[#allocation2 + $0xf48] sm:$0xff] }
 0x26e   :  { %v580_v1 = vld [vmem:[#allocation2 + $0xfc8] sm:$0xff]  ;;  %v10997_v4 = vcombine.high %v563_v62, %v579_v63  ;;  %v10996_v11 = vcombine.low %v563_v62, %v579_v63 }
 0x26f   :  { %v10999_v5 = vcombine.high %v564_v0, %v580_v1  ;;  %v10998_v13 = vcombine.low %v564_v0, %v580_v1 }
 0x270   :  { %7074 = vmatpush1.bf16.msra.mxu0 %v10772_v6  ;;  %7156 = vmatpush1.bf16.msra.mxu1 %v10774_v7  ;;  %v595_v6 = vld [vmem:[#allocation2 + $0x1040] sm:$0xff] }
 0x271   :  { %7075 = vmatprep.subr.bf16.mxu0 %v10805_v8  ;;  %7157 = vmatprep.subr.bf16.mxu1 %v10807_v10  ;;  %v611_v7 = vld [vmem:[#allocation2 + $0x10c0] sm:$0xff]  ;;  %v596_v8 = vld [vmem:[#allocation2 + $0x1048] sm:$0xff] }
 0x272   :  { %v612_v10 = vld [vmem:[#allocation2 + $0x10c8] sm:$0xff]  ;;  %v11029_v17 = vcombine.high %v595_v6, %v611_v7  ;;  %v11028_v25 = vcombine.low %v595_v6, %v611_v7 }
 0x273   :  { %v11031_v18 = vcombine.high %v596_v8, %v612_v10  ;;  %v11030_v26 = vcombine.low %v596_v8, %v612_v10 }
 0x274   :  { %7076 = vmatpush1.bf16.msra.mxu0 %v10804_v20  ;;  %7158 = vmatpush1.bf16.msra.mxu1 %v10806_v21  ;;  %v627_v20 = vld [vmem:[#allocation2 + $0x1140] sm:$0xff] }
 0x275   :  { %7077 = vmatprep.subr.bf16.mxu0 %v10837_v22  ;;  %7159 = vmatprep.subr.bf16.mxu1 %v10839_v53  ;;  %v643_v21 = vld [vmem:[#allocation2 + $0x11c0] sm:$0xff]  ;;  %v628_v22 = vld [vmem:[#allocation2 + $0x1148] sm:$0xff] }
 0x276   :  { %v644_v53 = vld [vmem:[#allocation2 + $0x11c8] sm:$0xff]  ;;  %v11061_v27 = vcombine.high %v627_v20, %v643_v21  ;;  %v11060_v15 = vcombine.low %v627_v20, %v643_v21 }
 0x277   :  { %v11063_v28 = vcombine.high %v628_v22, %v644_v53  ;;  %v11062_v34 = vcombine.low %v628_v22, %v644_v53  ;;  %v820_v21 = vld [vmem:[#allocation2 + $0x1748] sm:$0xff] }
 0x278   :  { %7078 = vmatpush1.bf16.msra.mxu0 %v10836_v29  ;;  %7160 = vmatpush1.bf16.msra.mxu1 %v10838_v30  ;;  %v659_v29 = vld [vmem:[#allocation2 + $0x1240] sm:$0xff]  ;;  %v836_v22 = vld [vmem:[#allocation2 + $0x17c8] sm:$0xff] }
 0x279   :  { %7079 = vmatprep.subr.bf16.mxu0 %v10869_v31  ;;  %7161 = vmatprep.subr.bf16.mxu1 %v10871_v33  ;;  %v675_v30 = vld [vmem:[#allocation2 + $0x12c0] sm:$0xff]  ;;  %v660_v31 = vld [vmem:[#allocation2 + $0x1248] sm:$0xff] }
 0x27a   :  { %v676_v33 = vld [vmem:[#allocation2 + $0x12c8] sm:$0xff]  ;;  %v11093_v37 = vcombine.high %v659_v29, %v675_v30  ;;  %v11092_v44 = vcombine.low %v659_v29, %v675_v30 }
 0x27b   :  { %v11095_v38 = vcombine.high %v660_v31, %v676_v33  ;;  %v11094_v45 = vcombine.low %v660_v31, %v676_v33  ;;  %v11255_v33 = vcombine.high %v820_v21, %v836_v22 }
 0x27c   :  { %7080 = vmatpush1.bf16.msra.mxu0 %v10868_v40  ;;  %7162 = vmatpush1.bf16.msra.mxu1 %v10870_v41  ;;  %v691_v40 = vld [vmem:[#allocation2 + $0x1340] sm:$0xff] }
 0x27d   :  { %7081 = vmatprep.subr.bf16.mxu0 %v10901_v42  ;;  %7163 = vmatprep.subr.bf16.mxu1 %v10903_v43  ;;  %v707_v41 = vld [vmem:[#allocation2 + $0x13c0] sm:$0xff]  ;;  %v692_v42 = vld [vmem:[#allocation2 + $0x1348] sm:$0xff] }
 0x27e   :  { %v708_v43 = vld [vmem:[#allocation2 + $0x13c8] sm:$0xff]  ;;  %v11125_v46 = vcombine.high %v691_v40, %v707_v41  ;;  %v11124_v52 = vcombine.low %v691_v40, %v707_v41  ;;  %v11254_v41 = vcombine.low %v820_v21, %v836_v22 }
 0x27f   :  { %v11127_v47 = vcombine.high %v692_v42, %v708_v43  ;;  %v11126_v54 = vcombine.low %v692_v42, %v708_v43 }
 0x280   :  { %7082 = vmatpush1.bf16.msra.mxu0 %v10900_v48  ;;  %7164 = vmatpush1.bf16.msra.mxu1 %v10902_v49  ;;  %v723_v48 = vld [vmem:[#allocation2 + $0x1440] sm:$0xff] }
 0x281   :  { %7083 = vmatprep.subr.bf16.mxu0 %v10933_v50  ;;  %7165 = vmatprep.subr.bf16.mxu1 %v10935_v51  ;;  %v739_v49 = vld [vmem:[#allocation2 + $0x14c0] sm:$0xff]  ;;  %v724_v50 = vld [vmem:[#allocation2 + $0x1448] sm:$0xff] }
 0x282   :  { %v740_v51 = vld [vmem:[#allocation2 + $0x14c8] sm:$0xff]  ;;  %v11157_v55 = vcombine.high %v723_v48, %v739_v49  ;;  %v11156_v62 = vcombine.low %v723_v48, %v739_v49 }
 0x283   :  { %v11159_v56 = vcombine.high %v724_v50, %v740_v51  ;;  %v11158_v63 = vcombine.low %v724_v50, %v740_v51 }
 0x284   :  { %7084 = vmatpush1.bf16.msra.mxu0 %v10932_v58  ;;  %7166 = vmatpush1.bf16.msra.mxu1 %v10934_v59  ;;  %v755_v58 = vld [vmem:[#allocation2 + $0x1540] sm:$0xff] }
 0x285   :  { %7085 = vmatprep.subr.bf16.mxu0 %v10965_v60  ;;  %7167 = vmatprep.subr.bf16.mxu1 %v10967_v61  ;;  %v771_v59 = vld [vmem:[#allocation2 + $0x15c0] sm:$0xff]  ;;  %v756_v60 = vld [vmem:[#allocation2 + $0x1548] sm:$0xff] }
 0x286   :  { %v772_v61 = vld [vmem:[#allocation2 + $0x15c8] sm:$0xff]  ;;  %v11189_v0 = vcombine.high %v755_v58, %v771_v59  ;;  %v11188_v6 = vcombine.low %v755_v58, %v771_v59 }
 0x287   :  { %v11191_v1 = vcombine.high %v756_v60, %v772_v61  ;;  %v11190_v7 = vcombine.low %v756_v60, %v772_v61 }
 0x288   :  { %7086 = vmatpush1.bf16.msra.mxu0 %v10964_v2  ;;  %7168 = vmatpush1.bf16.msra.mxu1 %v10966_v3  ;;  %v787_v2 = vld [vmem:[#allocation2 + $0x1640] sm:$0xff] }
 0x289   :  { %7087 = vmatprep.subr.bf16.mxu0 %v10997_v4  ;;  %7169 = vmatprep.subr.bf16.mxu1 %v10999_v5  ;;  %v803_v3 = vld [vmem:[#allocation2 + $0x16c0] sm:$0xff]  ;;  %v788_v4 = vld [vmem:[#allocation2 + $0x1648] sm:$0xff] }
 0x28a   :  { %v804_v5 = vld [vmem:[#allocation2 + $0x16c8] sm:$0xff]  ;;  %v11221_v8 = vcombine.high %v787_v2, %v803_v3 }
 0x28b   :  { %v11222_v29 = vcombine.low %v788_v4, %v804_v5 }
 0x28c   :  { %7088 = vmatpush1.bf16.msra.mxu0 %v10996_v11  ;;  %7170 = vmatpush1.bf16.msra.mxu1 %v10998_v13  ;;  %v11223_v11 = vcombine.high %v788_v4, %v804_v5  ;;  %v819_v13 = vld [vmem:[#allocation2 + $0x1740] sm:$0xff] }
 0x28d   :  { %7098 = vmatprep.subr.bf16.mxu0 %v11029_v17  ;;  %7180 = vmatprep.subr.bf16.mxu1 %v11031_v18  ;;  %v835_v17 = vld [vmem:[#allocation2 + $0x17c0] sm:$0xff] }
 0x28e   :  { %v11253_v30 = vcombine.high %v819_v13, %v835_v17  ;;  %v11252_v40 = vcombine.low %v819_v13, %v835_v17 }
 0x28f   :  { %7090 = vmatmul.mubr.bf16.vlgmr.msra.gmra.mrb[16].mxu0 %v12728_v12  ;;  %7172 = vmatmul.mubr.bf16.vlgmr.msra.gmra.mrb[16].mxu1 %v12728_v12 }
 0x290   :  { %7099 = vmatpush1.bf16.msra.mxu0 %v11028_v25  ;;  %7181 = vmatpush1.bf16.msra.mxu1 %v11030_v26  ;;  %v11220_v26 = vcombine.low %v787_v2, %v803_v3 }
 0x291   :  { %7100 = vmatprep.subr.bf16.mxu0 %v11061_v27  ;;  %7182 = vmatprep.subr.bf16.mxu1 %v11063_v28 }
 0x292   :  { %7130 = vmatprep.mubr.bf16.mxu0 %v12737_v23  ;;  %7212 = vmatprep.mubr.bf16.mxu1 %v12737_v23 }
 0x294   :  { %7101 = vmatpush1.bf16.msra.mxu0 %v11060_v15  ;;  %7183 = vmatpush1.bf16.msra.mxu1 %v11062_v34  ;;  %v851_v15 = vld [vmem:[#allocation2 + $0x1840] sm:$0xff] }
 0x295   :  { %7102 = vmatprep.subr.bf16.mxu0 %v11093_v37  ;;  %7184 = vmatprep.subr.bf16.mxu1 %v11095_v38  ;;  %v867_v34 = vld [vmem:[#allocation2 + $0x18c0] sm:$0xff]  ;;  %v852_v37 = vld [vmem:[#allocation2 + $0x1848] sm:$0xff] }
 0x296   :  { %v868_v38 = vld [vmem:[#allocation2 + $0x18c8] sm:$0xff]  ;;  %v11285_v42 = vcombine.high %v851_v15, %v867_v34  ;;  %v11284_v48 = vcombine.low %v851_v15, %v867_v34  ;;  %v1043_v15 = vld [vmem:[#allocation2 + $0x1e40] sm:$0xff] }
 0x297   :  { %v11287_v43 = vcombine.high %v852_v37, %v868_v38  ;;  %v11286_v49 = vcombine.low %v852_v37, %v868_v38  ;;  %v1059_v34 = vld [vmem:[#allocation2 + $0x1ec0] sm:$0xff]  ;;  %v1044_v37 = vld [vmem:[#allocation2 + $0x1e48] sm:$0xff] }
 0x298   :  { %7103 = vmatpush1.bf16.msra.mxu0 %v11092_v44  ;;  %7185 = vmatpush1.bf16.msra.mxu1 %v11094_v45  ;;  %v883_v44 = vld [vmem:[#allocation2 + $0x1940] sm:$0xff]  ;;  %v1060_v38 = vld [vmem:[#allocation2 + $0x1ec8] sm:$0xff] }
 0x299   :  { %7104 = vmatprep.subr.bf16.mxu0 %v11125_v46  ;;  %7186 = vmatprep.subr.bf16.mxu1 %v11127_v47  ;;  %v899_v45 = vld [vmem:[#allocation2 + $0x19c0] sm:$0xff]  ;;  %v884_v46 = vld [vmem:[#allocation2 + $0x1948] sm:$0xff] }
 0x29a   :  { %v900_v47 = vld [vmem:[#allocation2 + $0x19c8] sm:$0xff]  ;;  %v11317_v50 = vcombine.high %v883_v44, %v899_v45  ;;  %v11316_v58 = vcombine.low %v883_v44, %v899_v45  ;;  %v1075_v44 = vld [vmem:[#allocation2 + $0x1f40] sm:$0xff] }
 0x29b   :  { %v11319_v51 = vcombine.high %v884_v46, %v900_v47  ;;  %v11318_v59 = vcombine.low %v884_v46, %v900_v47  ;;  %v1091_v45 = vld [vmem:[#allocation2 + $0x1fc0] sm:$0xff]  ;;  %v1076_v46 = vld [vmem:[#allocation2 + $0x1f48] sm:$0xff] }
 0x29c   :  { %7105 = vmatpush1.bf16.msra.mxu0 %v11124_v52  ;;  %7187 = vmatpush1.bf16.msra.mxu1 %v11126_v54  ;;  %v915_v52 = vld [vmem:[#allocation2 + $0x1a40] sm:$0xff]  ;;  %v1092_v47 = vld [vmem:[#allocation2 + $0x1fc8] sm:$0xff] }
 0x29d   :  { %7106 = vmatprep.subr.bf16.mxu0 %v11157_v55  ;;  %7188 = vmatprep.subr.bf16.mxu1 %v11159_v56  ;;  %v931_v54 = vld [vmem:[#allocation2 + $0x1ac0] sm:$0xff]  ;;  %v916_v55 = vld [vmem:[#allocation2 + $0x1a48] sm:$0xff] }
 0x29e   :  { %v932_v56 = vld [vmem:[#allocation2 + $0x1ac8] sm:$0xff]  ;;  %v11349_v60 = vcombine.high %v915_v52, %v931_v54  ;;  %v11348_v2 = vcombine.low %v915_v52, %v931_v54  ;;  %v85_v52 = vld [vmem:[#allocation2 + $0x50] sm:$0xff] }
 0x29f   :  { %v11351_v61 = vcombine.high %v916_v55, %v932_v56  ;;  %v11350_v3 = vcombine.low %v916_v55, %v932_v56  ;;  %v101_v54 = vld [vmem:[#allocation2 + $0xd0] sm:$0xff]  ;;  %v86_v55 = vld [vmem:[#allocation2 + $0x58] sm:$0xff] }
 0x2a0   :  { %7107 = vmatpush1.bf16.msra.mxu0 %v11156_v62  ;;  %7189 = vmatpush1.bf16.msra.mxu1 %v11158_v63  ;;  %v947_v62 = vld [vmem:[#allocation2 + $0x1b40] sm:$0xff]  ;;  %v102_v56 = vld [vmem:[#allocation2 + $0xd8] sm:$0xff] }
 0x2a1   :  { %7108 = vmatprep.subr.bf16.mxu0 %v11189_v0  ;;  %7190 = vmatprep.subr.bf16.mxu1 %v11191_v1  ;;  %v963_v63 = vld [vmem:[#allocation2 + $0x1bc0] sm:$0xff]  ;;  %v948_v0 = vld [vmem:[#allocation2 + $0x1b48] sm:$0xff] }
 0x2a2   :  { %v12795_v10 = vpop.f32.mrb[8].mxu0  ;;  %v12797_v18 = vpop.f32.mrb[8].mxu1  ;;  %v964_v1 = vld [vmem:[#allocation2 + $0x1bc8] sm:$0xff]  ;;  %v11381_v4 = vcombine.high %v947_v62, %v963_v63  ;;  %v11380_v13 = vcombine.low %v947_v62, %v963_v63  ;;  %v117_v62 = vld [vmem:[#allocation2 + $0x150] sm:$0xff] }
 0x2a3   :  { %v12799_v20 = vpop.f32.mrb[9].mxu0  ;;  %v12801_v53 = vpop.f32.mrb[9].mxu1  ;;  %v11383_v5 = vcombine.high %v948_v0, %v964_v1  ;;  %v11382_v17 = vcombine.low %v948_v0, %v964_v1  ;;  %v133_v63 = vld [vmem:[#allocation2 + $0x1d0] sm:$0xff]  ;;  %v118_v0 = vld [vmem:[#allocation2 + $0x158] sm:$0xff] }
 0x2a4   :  { %v6808_v25 = vpop.f32.mrb[10].mxu0  ;;  %7109 = vmatpush1.bf16.msra.mxu0 %v11188_v6  ;;  %v6890_v27 = vpop.f32.mrb[10].mxu1  ;;  %7191 = vmatpush1.bf16.msra.mxu1 %v11190_v7  ;;  %v979_v6 = vld [vmem:[#allocation2 + $0x1c40] sm:$0xff]  ;;  %v134_v1 = vld [vmem:[#allocation2 + $0x1d8] sm:$0xff] }
 0x2a5   :  { %v6809_v28 = vpop.f32.mrb[11].mxu0  ;;  %7110 = vmatprep.subr.bf16.mxu0 %v11221_v8  ;;  %v6891_v31 = vpop.f32.mrb[11].mxu1  ;;  %7192 = vmatprep.subr.bf16.mxu1 %v11223_v11  ;;  %v995_v7 = vld [vmem:[#allocation2 + $0x1cc0] sm:$0xff]  ;;  %v980_v8 = vld [vmem:[#allocation2 + $0x1c48] sm:$0xff] }
 0x2a6   :  { %v996_v11 = vld [vmem:[#allocation2 + $0x1cc8] sm:$0xff]  ;;  %v11413_v21 = vcombine.high %v979_v6, %v995_v7  ;;  %v1011_v25 = vld [vmem:[#allocation2 + $0x1d40] sm:$0xff] }
 0x2a7   :  { %v11415_v22 = vcombine.high %v980_v8, %v996_v11  ;;  %v1012_v27 = vld [vmem:[#allocation2 + $0x1d48] sm:$0xff] }
 0x2a8   :  { %7111 = vmatpush1.bf16.msra.mxu0 %v11220_v26  ;;  %7193 = vmatpush1.bf16.msra.mxu1 %v11222_v29  ;;  %v1027_v26 = vld [vmem:[#allocation2 + $0x1dc0] sm:$0xff]  ;;  %v1028_v28 = vld [vmem:[#allocation2 + $0x1dc8] sm:$0xff]  ;;  %v11412_v29 = vcombine.low %v979_v6, %v995_v7  ;;  %v149_v6 = vld [vmem:[#allocation2 + $0x250] sm:$0xff] }
 0x2a9   :  { %7112 = vmatprep.subr.bf16.mxu0 %v11253_v30  ;;  %7194 = vmatprep.subr.bf16.mxu1 %v11255_v33  ;;  %v11414_v30 = vcombine.low %v980_v8, %v996_v11  ;;  %v11445_v31 = vcombine.high %v1011_v25, %v1027_v26  ;;  %v11447_v33 = vcombine.high %v1012_v27, %v1028_v28  ;;  %v165_v7 = vld [vmem:[#allocation2 + $0x2d0] sm:$0xff]  ;;  %v150_v8 = vld [vmem:[#allocation2 + $0x258] sm:$0xff] }
 0x2aa   :  { %v166_v11 = vld [vmem:[#allocation2 + $0x2d8] sm:$0xff] }
 0x2ac   :  { %7113 = vmatpush1.bf16.msra.mxu0 %v11252_v40  ;;  %7195 = vmatpush1.bf16.msra.mxu1 %v11254_v41  ;;  %v11444_v40 = vcombine.low %v1011_v25, %v1027_v26  ;;  %v11446_v41 = vcombine.low %v1012_v27, %v1028_v28  ;;  %v181_v25 = vld [vmem:[#allocation2 + $0x350] sm:$0xff]  ;;  %v182_v27 = vld [vmem:[#allocation2 + $0x358] sm:$0xff] }
 0x2ad   :  { %7114 = vmatprep.subr.bf16.mxu0 %v11285_v42  ;;  %7196 = vmatprep.subr.bf16.mxu1 %v11287_v43  ;;  %v11477_v42 = vcombine.high %v1043_v15, %v1059_v34  ;;  %v11479_v43 = vcombine.high %v1044_v37, %v1060_v38  ;;  %v197_v26 = vld [vmem:[#allocation2 + $0x3d0] sm:$0xff]  ;;  %v198_v28 = vld [vmem:[#allocation2 + $0x3d8] sm:$0xff] }
 0x2b0   :  { %7115 = vmatpush1.bf16.msra.mxu0 %v11284_v48  ;;  %7197 = vmatpush1.bf16.msra.mxu1 %v11286_v49  ;;  %v11476_v48 = vcombine.low %v1043_v15, %v1059_v34  ;;  %v11478_v49 = vcombine.low %v1044_v37, %v1060_v38  ;;  %v213_v15 = vld [vmem:[#allocation2 + $0x450] sm:$0xff]  ;;  %v214_v37 = vld [vmem:[#allocation2 + $0x458] sm:$0xff] }
 0x2b1   :  { %7116 = vmatprep.subr.bf16.mxu0 %v11317_v50  ;;  %7198 = vmatprep.subr.bf16.mxu1 %v11319_v51  ;;  %v11509_v50 = vcombine.high %v1075_v44, %v1091_v45  ;;  %v11511_v51 = vcombine.high %v1076_v46, %v1092_v47  ;;  %v229_v34 = vld [vmem:[#allocation2 + $0x4d0] sm:$0xff]  ;;  %v230_v38 = vld [vmem:[#allocation2 + $0x4d8] sm:$0xff] }
 0x2b4   :  { %7117 = vmatpush1.bf16.msra.mxu0 %v11316_v58  ;;  %7199 = vmatpush1.bf16.msra.mxu1 %v11318_v59  ;;  %v11508_v58 = vcombine.low %v1075_v44, %v1091_v45  ;;  %v11510_v59 = vcombine.low %v1076_v46, %v1092_v47  ;;  %v245_v44 = vld [vmem:[#allocation2 + $0x550] sm:$0xff]  ;;  %v246_v46 = vld [vmem:[#allocation2 + $0x558] sm:$0xff] }
 0x2b5   :  { %7118 = vmatprep.subr.bf16.mxu0 %v11349_v60  ;;  %7200 = vmatprep.subr.bf16.mxu1 %v11351_v61  ;;  %v10521_v60 = vcombine.high %v85_v52, %v101_v54  ;;  %v10523_v61 = vcombine.high %v86_v55, %v102_v56  ;;  %v261_v45 = vld [vmem:[#allocation2 + $0x5d0] sm:$0xff]  ;;  %v262_v47 = vld [vmem:[#allocation2 + $0x5d8] sm:$0xff] }
 0x2b8   :  { %7119 = vmatpush1.bf16.msra.mxu0 %v11348_v2  ;;  %7201 = vmatpush1.bf16.msra.mxu1 %v11350_v3  ;;  %v10520_v2 = vcombine.low %v85_v52, %v101_v54  ;;  %v10522_v3 = vcombine.low %v86_v55, %v102_v56  ;;  %v277_v52 = vld [vmem:[#allocation2 + $0x650] sm:$0xff]  ;;  %v278_v55 = vld [vmem:[#allocation2 + $0x658] sm:$0xff] }
 0x2b9   :  { %7120 = vmatprep.subr.bf16.mxu0 %v11381_v4  ;;  %7202 = vmatprep.subr.bf16.mxu1 %v11383_v5  ;;  %v10553_v4 = vcombine.high %v117_v62, %v133_v63  ;;  %v10555_v5 = vcombine.high %v118_v0, %v134_v1  ;;  %v293_v54 = vld [vmem:[#allocation2 + $0x6d0] sm:$0xff]  ;;  %v294_v56 = vld [vmem:[#allocation2 + $0x6d8] sm:$0xff] }
 0x2bc   :  { %7121 = vmatpush1.bf16.msra.mxu0 %v11380_v13  ;;  %7203 = vmatpush1.bf16.msra.mxu1 %v11382_v17  ;;  %v10552_v13 = vcombine.low %v117_v62, %v133_v63  ;;  %v10554_v17 = vcombine.low %v118_v0, %v134_v1  ;;  %v309_v62 = vld [vmem:[#allocation2 + $0x750] sm:$0xff]  ;;  %v310_v0 = vld [vmem:[#allocation2 + $0x758] sm:$0xff] }
 0x2bd   :  { %7122 = vmatprep.subr.bf16.mxu0 %v11413_v21  ;;  %7204 = vmatprep.subr.bf16.mxu1 %v11415_v22  ;;  %v10585_v21 = vcombine.high %v149_v6, %v165_v7  ;;  %v10587_v22 = vcombine.high %v150_v8, %v166_v11  ;;  %v325_v63 = vld [vmem:[#allocation2 + $0x7d0] sm:$0xff]  ;;  %v326_v1 = vld [vmem:[#allocation2 + $0x7d8] sm:$0xff] }
 0x2c0   :  { %7123 = vmatpush1.bf16.msra.mxu0 %v11412_v29  ;;  %7205 = vmatpush1.bf16.msra.mxu1 %v11414_v30  ;;  %v10584_v29 = vcombine.low %v149_v6, %v165_v7  ;;  %v10586_v30 = vcombine.low %v150_v8, %v166_v11  ;;  %v341_v6 = vld [vmem:[#allocation2 + $0x850] sm:$0xff]  ;;  %v342_v8 = vld [vmem:[#allocation2 + $0x858] sm:$0xff] }
 0x2c1   :  { %7124 = vmatprep.subr.bf16.mxu0 %v11445_v31  ;;  %7206 = vmatprep.subr.bf16.mxu1 %v11447_v33  ;;  %v10617_v31 = vcombine.high %v181_v25, %v197_v26  ;;  %v10619_v33 = vcombine.high %v182_v27, %v198_v28  ;;  %v357_v7 = vld [vmem:[#allocation2 + $0x8d0] sm:$0xff]  ;;  %v358_v11 = vld [vmem:[#allocation2 + $0x8d8] sm:$0xff] }
 0x2c4   :  { %7125 = vmatpush1.bf16.msra.mxu0 %v11444_v40  ;;  %7207 = vmatpush1.bf16.msra.mxu1 %v11446_v41  ;;  %v10616_v40 = vcombine.low %v181_v25, %v197_v26  ;;  %v10618_v41 = vcombine.low %v182_v27, %v198_v28  ;;  %v373_v25 = vld [vmem:[#allocation2 + $0x950] sm:$0xff]  ;;  %v374_v27 = vld [vmem:[#allocation2 + $0x958] sm:$0xff] }
 0x2c5   :  { %7126 = vmatprep.subr.bf16.mxu0 %v11477_v42  ;;  %7208 = vmatprep.subr.bf16.mxu1 %v11479_v43  ;;  %v10649_v42 = vcombine.high %v213_v15, %v229_v34  ;;  %v10651_v43 = vcombine.high %v214_v37, %v230_v38  ;;  %v389_v26 = vld [vmem:[#allocation2 + $0x9d0] sm:$0xff]  ;;  %v390_v28 = vld [vmem:[#allocation2 + $0x9d8] sm:$0xff] }
 0x2c8   :  { %7127 = vmatpush1.bf16.msra.mxu0 %v11476_v48  ;;  %7209 = vmatpush1.bf16.msra.mxu1 %v11478_v49  ;;  %v10648_v48 = vcombine.low %v213_v15, %v229_v34  ;;  %v10650_v49 = vcombine.low %v214_v37, %v230_v38  ;;  %v405_v15 = vld [vmem:[#allocation2 + $0xa50] sm:$0xff]  ;;  %v406_v37 = vld [vmem:[#allocation2 + $0xa58] sm:$0xff] }
 0x2c9   :  { %7128 = vmatprep.subr.bf16.mxu0 %v11509_v50  ;;  %7210 = vmatprep.subr.bf16.mxu1 %v11511_v51  ;;  %v10681_v50 = vcombine.high %v245_v44, %v261_v45  ;;  %v10683_v51 = vcombine.high %v246_v46, %v262_v47  ;;  %v421_v34 = vld [vmem:[#allocation2 + $0xad0] sm:$0xff]  ;;  %v422_v38 = vld [vmem:[#allocation2 + $0xad8] sm:$0xff] }
 0x2cc   :  { %7129 = vmatpush1.bf16.msra.mxu0 %v11508_v58  ;;  %7211 = vmatpush1.bf16.msra.mxu1 %v11510_v59  ;;  %v10680_v58 = vcombine.low %v245_v44, %v261_v45  ;;  %v10682_v59 = vcombine.low %v246_v46, %v262_v47  ;;  %v437_v44 = vld [vmem:[#allocation2 + $0xb50] sm:$0xff]  ;;  %v438_v46 = vld [vmem:[#allocation2 + $0xb58] sm:$0xff] }
 0x2cd   :  { %7221 = vmatprep.subr.bf16.mxu0 %v10521_v60  ;;  %7303 = vmatprep.subr.bf16.mxu1 %v10523_v61  ;;  %v10713_v60 = vcombine.high %v277_v52, %v293_v54  ;;  %v10715_v61 = vcombine.high %v278_v55, %v294_v56  ;;  %v453_v45 = vld [vmem:[#allocation2 + $0xbd0] sm:$0xff]  ;;  %v454_v47 = vld [vmem:[#allocation2 + $0xbd8] sm:$0xff] }
 0x2cf   :  { %7131 = vmatmul.mubr.bf16.vlgmr.msra.gmra.mrb[16].mxu0 %v12745_v24  ;;  %7213 = vmatmul.mubr.bf16.vlgmr.msra.gmra.mrb[16].mxu1 %v12745_v24 }
 0x2d0   :  { %7222 = vmatpush1.bf16.msra.mxu0 %v10520_v2  ;;  %7304 = vmatpush1.bf16.msra.mxu1 %v10522_v3  ;;  %v10712_v2 = vcombine.low %v277_v52, %v293_v54  ;;  %v10714_v3 = vcombine.low %v278_v55, %v294_v56  ;;  %v469_v52 = vld [vmem:[#allocation2 + $0xc50] sm:$0xff]  ;;  %v470_v55 = vld [vmem:[#allocation2 + $0xc58] sm:$0xff] }
 0x2d1   :  { %7223 = vmatprep.subr.bf16.mxu0 %v10553_v4  ;;  %7305 = vmatprep.subr.bf16.mxu1 %v10555_v5  ;;  %v10745_v4 = vcombine.high %v309_v62, %v325_v63  ;;  %v10747_v5 = vcombine.high %v310_v0, %v326_v1  ;;  %v485_v54 = vld [vmem:[#allocation2 + $0xcd0] sm:$0xff]  ;;  %v486_v56 = vld [vmem:[#allocation2 + $0xcd8] sm:$0xff] }
 0x2d2   :  { %7253 = vmatprep.mubr.bf16.mxu0 %v12722_v57  ;;  %7335 = vmatprep.mubr.bf16.mxu1 %v12722_v57 }
 0x2d4   :  { %7224 = vmatpush1.bf16.msra.mxu0 %v10552_v13  ;;  %7306 = vmatpush1.bf16.msra.mxu1 %v10554_v17  ;;  %v10744_v13 = vcombine.low %v309_v62, %v325_v63  ;;  %v10746_v17 = vcombine.low %v310_v0, %v326_v1  ;;  %v501_v62 = vld [vmem:[#allocation2 + $0xd50] sm:$0xff]  ;;  %v502_v0 = vld [vmem:[#allocation2 + $0xd58] sm:$0xff] }
 0x2d5   :  { %7225 = vmatprep.subr.bf16.mxu0 %v10585_v21  ;;  %7307 = vmatprep.subr.bf16.mxu1 %v10587_v22  ;;  %v10777_v21 = vcombine.high %v341_v6, %v357_v7  ;;  %v10779_v22 = vcombine.high %v342_v8, %v358_v11  ;;  %v517_v63 = vld [vmem:[#allocation2 + $0xdd0] sm:$0xff]  ;;  %v518_v1 = vld [vmem:[#allocation2 + $0xdd8] sm:$0xff] }
 0x2d8   :  { %7226 = vmatpush1.bf16.msra.mxu0 %v10584_v29  ;;  %7308 = vmatpush1.bf16.msra.mxu1 %v10586_v30  ;;  %v10776_v29 = vcombine.low %v341_v6, %v357_v7  ;;  %v10778_v30 = vcombine.low %v342_v8, %v358_v11  ;;  %v533_v6 = vld [vmem:[#allocation2 + $0xe50] sm:$0xff]  ;;  %v534_v8 = vld [vmem:[#allocation2 + $0xe58] sm:$0xff] }
 0x2d9   :  { %7227 = vmatprep.subr.bf16.mxu0 %v10617_v31  ;;  %7309 = vmatprep.subr.bf16.mxu1 %v10619_v33  ;;  %v10809_v31 = vcombine.high %v373_v25, %v389_v26  ;;  %v10811_v33 = vcombine.high %v374_v27, %v390_v28  ;;  %v549_v7 = vld [vmem:[#allocation2 + $0xed0] sm:$0xff]  ;;  %v550_v11 = vld [vmem:[#allocation2 + $0xed8] sm:$0xff] }
 0x2dc   :  { %7228 = vmatpush1.bf16.msra.mxu0 %v10616_v40  ;;  %7310 = vmatpush1.bf16.msra.mxu1 %v10618_v41  ;;  %v10808_v40 = vcombine.low %v373_v25, %v389_v26  ;;  %v10810_v41 = vcombine.low %v374_v27, %v390_v28  ;;  %v565_v25 = vld [vmem:[#allocation2 + $0xf50] sm:$0xff]  ;;  %v566_v27 = vld [vmem:[#allocation2 + $0xf58] sm:$0xff] }
 0x2dd   :  { %7229 = vmatprep.subr.bf16.mxu0 %v10649_v42  ;;  %7311 = vmatprep.subr.bf16.mxu1 %v10651_v43  ;;  %v10841_v42 = vcombine.high %v405_v15, %v421_v34  ;;  %v10843_v43 = vcombine.high %v406_v37, %v422_v38  ;;  %v581_v26 = vld [vmem:[#allocation2 + $0xfd0] sm:$0xff]  ;;  %v582_v28 = vld [vmem:[#allocation2 + $0xfd8] sm:$0xff] }
 0x2e0   :  { %7230 = vmatpush1.bf16.msra.mxu0 %v10648_v48  ;;  %7312 = vmatpush1.bf16.msra.mxu1 %v10650_v49  ;;  %v10840_v48 = vcombine.low %v405_v15, %v421_v34  ;;  %v10842_v49 = vcombine.low %v406_v37, %v422_v38  ;;  %v597_v15 = vld [vmem:[#allocation2 + $0x1050] sm:$0xff]  ;;  %v598_v37 = vld [vmem:[#allocation2 + $0x1058] sm:$0xff] }
 0x2e1   :  { %7231 = vmatprep.subr.bf16.mxu0 %v10681_v50  ;;  %7313 = vmatprep.subr.bf16.mxu1 %v10683_v51  ;;  %v10873_v50 = vcombine.high %v437_v44, %v453_v45  ;;  %v10875_v51 = vcombine.high %v438_v46, %v454_v47  ;;  %v613_v34 = vld [vmem:[#allocation2 + $0x10d0] sm:$0xff]  ;;  %v614_v38 = vld [vmem:[#allocation2 + $0x10d8] sm:$0xff] }
 0x2e4   :  { %7232 = vmatpush1.bf16.msra.mxu0 %v10680_v58  ;;  %7314 = vmatpush1.bf16.msra.mxu1 %v10682_v59  ;;  %v10872_v58 = vcombine.low %v437_v44, %v453_v45  ;;  %v10874_v59 = vcombine.low %v438_v46, %v454_v47  ;;  %v629_v44 = vld [vmem:[#allocation2 + $0x1150] sm:$0xff]  ;;  %v630_v46 = vld [vmem:[#allocation2 + $0x1158] sm:$0xff] }
 0x2e5   :  { %7233 = vmatprep.subr.bf16.mxu0 %v10713_v60  ;;  %7315 = vmatprep.subr.bf16.mxu1 %v10715_v61  ;;  %v10905_v60 = vcombine.high %v469_v52, %v485_v54  ;;  %v10907_v61 = vcombine.high %v470_v55, %v486_v56  ;;  %v645_v45 = vld [vmem:[#allocation2 + $0x11d0] sm:$0xff]  ;;  %v646_v47 = vld [vmem:[#allocation2 + $0x11d8] sm:$0xff] }
 0x2e8   :  { %7234 = vmatpush1.bf16.msra.mxu0 %v10712_v2  ;;  %7316 = vmatpush1.bf16.msra.mxu1 %v10714_v3  ;;  %v10904_v2 = vcombine.low %v469_v52, %v485_v54  ;;  %v10906_v3 = vcombine.low %v470_v55, %v486_v56  ;;  %v661_v52 = vld [vmem:[#allocation2 + $0x1250] sm:$0xff]  ;;  %v662_v55 = vld [vmem:[#allocation2 + $0x1258] sm:$0xff] }
 0x2e9   :  { %7235 = vmatprep.subr.bf16.mxu0 %v10745_v4  ;;  %7317 = vmatprep.subr.bf16.mxu1 %v10747_v5  ;;  %v10937_v4 = vcombine.high %v501_v62, %v517_v63  ;;  %v10939_v5 = vcombine.high %v502_v0, %v518_v1  ;;  %v677_v54 = vld [vmem:[#allocation2 + $0x12d0] sm:$0xff]  ;;  %v678_v56 = vld [vmem:[#allocation2 + $0x12d8] sm:$0xff] }
 0x2ec   :  { %7236 = vmatpush1.bf16.msra.mxu0 %v10744_v13  ;;  %7318 = vmatpush1.bf16.msra.mxu1 %v10746_v17  ;;  %v10936_v13 = vcombine.low %v501_v62, %v517_v63  ;;  %v10938_v17 = vcombine.low %v502_v0, %v518_v1  ;;  %v693_v62 = vld [vmem:[#allocation2 + $0x1350] sm:$0xff]  ;;  %v694_v0 = vld [vmem:[#allocation2 + $0x1358] sm:$0xff] }
 0x2ed   :  { %7237 = vmatprep.subr.bf16.mxu0 %v10777_v21  ;;  %7319 = vmatprep.subr.bf16.mxu1 %v10779_v22  ;;  %v10969_v21 = vcombine.high %v533_v6, %v549_v7  ;;  %v10971_v22 = vcombine.high %v534_v8, %v550_v11  ;;  %v709_v63 = vld [vmem:[#allocation2 + $0x13d0] sm:$0xff]  ;;  %v710_v1 = vld [vmem:[#allocation2 + $0x13d8] sm:$0xff] }
 0x2f0   :  { %7238 = vmatpush1.bf16.msra.mxu0 %v10776_v29  ;;  %7320 = vmatpush1.bf16.msra.mxu1 %v10778_v30  ;;  %v10968_v29 = vcombine.low %v533_v6, %v549_v7  ;;  %v10970_v30 = vcombine.low %v534_v8, %v550_v11  ;;  %v725_v6 = vld [vmem:[#allocation2 + $0x1450] sm:$0xff]  ;;  %v726_v8 = vld [vmem:[#allocation2 + $0x1458] sm:$0xff] }
 0x2f1   :  { %7239 = vmatprep.subr.bf16.mxu0 %v10809_v31  ;;  %7321 = vmatprep.subr.bf16.mxu1 %v10811_v33  ;;  %v11001_v31 = vcombine.high %v565_v25, %v581_v26  ;;  %v11003_v33 = vcombine.high %v566_v27, %v582_v28  ;;  %v741_v7 = vld [vmem:[#allocation2 + $0x14d0] sm:$0xff]  ;;  %v742_v11 = vld [vmem:[#allocation2 + $0x14d8] sm:$0xff] }
 0x2f4   :  { %7240 = vmatpush1.bf16.msra.mxu0 %v10808_v40  ;;  %7322 = vmatpush1.bf16.msra.mxu1 %v10810_v41  ;;  %v11000_v40 = vcombine.low %v565_v25, %v581_v26  ;;  %v11002_v41 = vcombine.low %v566_v27, %v582_v28  ;;  %v757_v25 = vld [vmem:[#allocation2 + $0x1550] sm:$0xff]  ;;  %v758_v27 = vld [vmem:[#allocation2 + $0x1558] sm:$0xff] }
 0x2f5   :  { %7241 = vmatprep.subr.bf16.mxu0 %v10841_v42  ;;  %7323 = vmatprep.subr.bf16.mxu1 %v10843_v43  ;;  %v11033_v42 = vcombine.high %v597_v15, %v613_v34  ;;  %v11035_v43 = vcombine.high %v598_v37, %v614_v38  ;;  %v773_v26 = vld [vmem:[#allocation2 + $0x15d0] sm:$0xff]  ;;  %v774_v28 = vld [vmem:[#allocation2 + $0x15d8] sm:$0xff] }
 0x2f8   :  { %7242 = vmatpush1.bf16.msra.mxu0 %v10840_v48  ;;  %7324 = vmatpush1.bf16.msra.mxu1 %v10842_v49  ;;  %v11032_v48 = vcombine.low %v597_v15, %v613_v34  ;;  %v11034_v49 = vcombine.low %v598_v37, %v614_v38  ;;  %v789_v15 = vld [vmem:[#allocation2 + $0x1650] sm:$0xff]  ;;  %v790_v37 = vld [vmem:[#allocation2 + $0x1658] sm:$0xff] }
 0x2f9   :  { %7243 = vmatprep.subr.bf16.mxu0 %v10873_v50  ;;  %7325 = vmatprep.subr.bf16.mxu1 %v10875_v51  ;;  %v11065_v50 = vcombine.high %v629_v44, %v645_v45  ;;  %v11067_v51 = vcombine.high %v630_v46, %v646_v47  ;;  %v805_v34 = vld [vmem:[#allocation2 + $0x16d0] sm:$0xff]  ;;  %v806_v38 = vld [vmem:[#allocation2 + $0x16d8] sm:$0xff] }
 0x2fc   :  { %7244 = vmatpush1.bf16.msra.mxu0 %v10872_v58  ;;  %7326 = vmatpush1.bf16.msra.mxu1 %v10874_v59  ;;  %v11064_v58 = vcombine.low %v629_v44, %v645_v45  ;;  %v11066_v59 = vcombine.low %v630_v46, %v646_v47  ;;  %v11227_v44 = vcombine.high %v790_v37, %v806_v38  ;;  %v821_v45 = vld [vmem:[#allocation2 + $0x1750] sm:$0xff] }
 0x2fd   :  { %7245 = vmatprep.subr.bf16.mxu0 %v10905_v60  ;;  %7327 = vmatprep.subr.bf16.mxu1 %v10907_v61  ;;  %v11097_v60 = vcombine.high %v661_v52, %v677_v54  ;;  %v11099_v61 = vcombine.high %v662_v55, %v678_v56  ;;  %v837_v46 = vld [vmem:[#allocation2 + $0x17d0] sm:$0xff] }
 0x300   :  { %7246 = vmatpush1.bf16.msra.mxu0 %v10904_v2  ;;  %7328 = vmatpush1.bf16.msra.mxu1 %v10906_v3  ;;  %v11096_v2 = vcombine.low %v661_v52, %v677_v54  ;;  %v11098_v3 = vcombine.low %v662_v55, %v678_v56  ;;  %v11224_v54 = vcombine.low %v789_v15, %v805_v34 }
 0x301   :  { %7247 = vmatprep.subr.bf16.mxu0 %v10937_v4  ;;  %7329 = vmatprep.subr.bf16.mxu1 %v10939_v5  ;;  %v11129_v4 = vcombine.high %v693_v62, %v709_v63  ;;  %v11131_v5 = vcombine.high %v694_v0, %v710_v1 }
 0x304   :  { %7248 = vmatpush1.bf16.msra.mxu0 %v10936_v13  ;;  %7330 = vmatpush1.bf16.msra.mxu1 %v10938_v17  ;;  %v11128_v13 = vcombine.low %v693_v62, %v709_v63  ;;  %v11130_v17 = vcombine.low %v694_v0, %v710_v1  ;;  %v853_v62 = vld [vmem:[#allocation2 + $0x1850] sm:$0xff]  ;;  %v854_v0 = vld [vmem:[#allocation2 + $0x1858] sm:$0xff] }
 0x305   :  { %7249 = vmatprep.subr.bf16.mxu0 %v10969_v21  ;;  %7331 = vmatprep.subr.bf16.mxu1 %v10971_v22  ;;  %v11161_v21 = vcombine.high %v725_v6, %v741_v7  ;;  %v11163_v22 = vcombine.high %v726_v8, %v742_v11  ;;  %v869_v63 = vld [vmem:[#allocation2 + $0x18d0] sm:$0xff]  ;;  %v870_v1 = vld [vmem:[#allocation2 + $0x18d8] sm:$0xff] }
 0x308   :  { %7250 = vmatpush1.bf16.msra.mxu0 %v10968_v29  ;;  %7332 = vmatpush1.bf16.msra.mxu1 %v10970_v30  ;;  %v11160_v29 = vcombine.low %v725_v6, %v741_v7  ;;  %v11162_v30 = vcombine.low %v726_v8, %v742_v11  ;;  %v885_v6 = vld [vmem:[#allocation2 + $0x1950] sm:$0xff]  ;;  %v886_v8 = vld [vmem:[#allocation2 + $0x1958] sm:$0xff] }
 0x309   :  { %7251 = vmatprep.subr.bf16.mxu0 %v11001_v31  ;;  %7333 = vmatprep.subr.bf16.mxu1 %v11003_v33  ;;  %v11193_v31 = vcombine.high %v757_v25, %v773_v26  ;;  %v11195_v33 = vcombine.high %v758_v27, %v774_v28  ;;  %v901_v7 = vld [vmem:[#allocation2 + $0x19d0] sm:$0xff]  ;;  %v902_v11 = vld [vmem:[#allocation2 + $0x19d8] sm:$0xff] }
 0x30c   :  { %7252 = vmatpush1.bf16.msra.mxu0 %v11000_v40  ;;  %7334 = vmatpush1.bf16.msra.mxu1 %v11002_v41  ;;  %v11192_v40 = vcombine.low %v757_v25, %v773_v26  ;;  %v11194_v41 = vcombine.low %v758_v27, %v774_v28  ;;  %v917_v25 = vld [vmem:[#allocation2 + $0x1a50] sm:$0xff]  ;;  %v918_v27 = vld [vmem:[#allocation2 + $0x1a58] sm:$0xff] }
 0x30d   :  { %7262 = vmatprep.subr.bf16.mxu0 %v11033_v42  ;;  %7344 = vmatprep.subr.bf16.mxu1 %v11035_v43  ;;  %v11225_v42 = vcombine.high %v789_v15, %v805_v34  ;;  %v933_v26 = vld [vmem:[#allocation2 + $0x1ad0] sm:$0xff]  ;;  %v934_v28 = vld [vmem:[#allocation2 + $0x1ad8] sm:$0xff] }
 0x30e   :  { %v949_v15 = vld [vmem:[#allocation2 + $0x1b50] sm:$0xff] }
 0x30f   :  { %7254 = vmatmul.mubr.bf16.vlgmr.msra.gmra.mrb[20].mxu0 %v12728_v12  ;;  %7336 = vmatmul.mubr.bf16.vlgmr.msra.gmra.mrb[20].mxu1 %v12728_v12  ;;  %v965_v34 = vld [vmem:[#allocation2 + $0x1bd0] sm:$0xff] }
 0x310   :  { %7263 = vmatpush1.bf16.msra.mxu0 %v11032_v48  ;;  %7345 = vmatpush1.bf16.msra.mxu1 %v11034_v49  ;;  %v822_v49 = vld [vmem:[#allocation2 + $0x1758] sm:$0xff] }
 0x311   :  { %7264 = vmatprep.subr.bf16.mxu0 %v11065_v50  ;;  %7346 = vmatprep.subr.bf16.mxu1 %v11067_v51  ;;  %v838_v50 = vld [vmem:[#allocation2 + $0x17d8] sm:$0xff] }
 0x312   :  { %7294 = vmatprep.mubr.bf16.mxu0 %v12737_v23  ;;  %7376 = vmatprep.mubr.bf16.mxu1 %v12737_v23 }
 0x314   :  { %7265 = vmatpush1.bf16.msra.mxu0 %v11064_v58  ;;  %7347 = vmatpush1.bf16.msra.mxu1 %v11066_v59  ;;  %v11226_v58 = vcombine.low %v790_v37, %v806_v38  ;;  %v11257_v59 = vcombine.high %v821_v45, %v837_v46  ;;  %v950_v37 = vld [vmem:[#allocation2 + $0x1b58] sm:$0xff] }
 0x315   :  { %7266 = vmatprep.subr.bf16.mxu0 %v11097_v60  ;;  %7348 = vmatprep.subr.bf16.mxu1 %v11099_v61  ;;  %v11259_v61 = vcombine.high %v822_v49, %v838_v50  ;;  %v966_v38 = vld [vmem:[#allocation2 + $0x1bd8] sm:$0xff] }
 0x318   :  { %7267 = vmatpush1.bf16.msra.mxu0 %v11096_v2  ;;  %7349 = vmatpush1.bf16.msra.mxu1 %v11098_v3  ;;  %v11256_v2 = vcombine.low %v821_v45, %v837_v46  ;;  %v11258_v3 = vcombine.low %v822_v49, %v838_v50  ;;  %v981_v45 = vld [vmem:[#allocation2 + $0x1c50] sm:$0xff]  ;;  %v982_v49 = vld [vmem:[#allocation2 + $0x1c58] sm:$0xff] }
 0x319   :  { %7268 = vmatprep.subr.bf16.mxu0 %v11129_v4  ;;  %7350 = vmatprep.subr.bf16.mxu1 %v11131_v5  ;;  %v11289_v4 = vcombine.high %v853_v62, %v869_v63  ;;  %v11291_v5 = vcombine.high %v854_v0, %v870_v1  ;;  %v997_v46 = vld [vmem:[#allocation2 + $0x1cd0] sm:$0xff]  ;;  %v998_v50 = vld [vmem:[#allocation2 + $0x1cd8] sm:$0xff] }
 0x31c   :  { %7269 = vmatpush1.bf16.msra.mxu0 %v11128_v13  ;;  %7351 = vmatpush1.bf16.msra.mxu1 %v11130_v17  ;;  %v11288_v13 = vcombine.low %v853_v62, %v869_v63  ;;  %v11290_v17 = vcombine.low %v854_v0, %v870_v1  ;;  %v11416_v62 = vcombine.low %v981_v45, %v997_v46 }
 0x31d   :  { %7270 = vmatprep.subr.bf16.mxu0 %v11161_v21  ;;  %7352 = vmatprep.subr.bf16.mxu1 %v11163_v22  ;;  %v11321_v21 = vcombine.high %v885_v6, %v901_v7  ;;  %v11323_v22 = vcombine.high %v886_v8, %v902_v11  ;;  %v11418_v63 = vcombine.low %v982_v49, %v998_v50 }
 0x320   :  { %7271 = vmatpush1.bf16.msra.mxu0 %v11160_v29  ;;  %7353 = vmatpush1.bf16.msra.mxu1 %v11162_v30  ;;  %v11320_v29 = vcombine.low %v885_v6, %v901_v7  ;;  %v11322_v30 = vcombine.low %v886_v8, %v902_v11 }
 0x321   :  { %7272 = vmatprep.subr.bf16.mxu0 %v11193_v31  ;;  %7354 = vmatprep.subr.bf16.mxu1 %v11195_v33  ;;  %v11353_v31 = vcombine.high %v917_v25, %v933_v26  ;;  %v11355_v33 = vcombine.high %v918_v27, %v934_v28 }
 0x322   :  { %v12811_v43 = vpop.f32.mrb[12].mxu0  ;;  %v12813_v47 = vpop.f32.mrb[12].mxu1 }
 0x323   :  { %v12815_v48 = vpop.f32.mrb[13].mxu0  ;;  %v12817_v51 = vpop.f32.mrb[13].mxu1 }
 0x324   :  { %v6972_v52 = vpop.f32.mrb[14].mxu0  ;;  %7273 = vmatpush1.bf16.msra.mxu0 %v11192_v40  ;;  %v7054_v55 = vpop.f32.mrb[14].mxu1  ;;  %7355 = vmatpush1.bf16.msra.mxu1 %v11194_v41  ;;  %v11352_v40 = vcombine.low %v917_v25, %v933_v26  ;;  %v11354_v41 = vcombine.low %v918_v27, %v934_v28 }
 0x325   :  { %v6973_v56 = vpop.f32.mrb[15].mxu0  ;;  %7274 = vmatprep.subr.bf16.mxu0 %v11225_v42  ;;  %v7055_v60 = vpop.f32.mrb[15].mxu1  ;;  %7356 = vmatprep.subr.bf16.mxu1 %v11227_v44  ;;  %v11385_v42 = vcombine.high %v949_v15, %v965_v34  ;;  %v11387_v44 = vcombine.high %v950_v37, %v966_v38  ;;  %v11384_v52 = vcombine.low %v949_v15, %v965_v34 }
 0x326   :  { %v11417_v55 = vcombine.high %v981_v45, %v997_v46  ;;  %v11419_v56 = vcombine.high %v982_v49, %v998_v50  ;;  %v1014_v60 = vld [vmem:[#allocation2 + $0x1d58] sm:$0xff] }
 0x328   :  { %7275 = vmatpush1.bf16.msra.mxu0 %v11224_v54  ;;  %7357 = vmatpush1.bf16.msra.mxu1 %v11226_v58  ;;  %v11386_v54 = vcombine.low %v950_v37, %v966_v38  ;;  %v1013_v58 = vld [vmem:[#allocation2 + $0x1d50] sm:$0xff] }
 0x329   :  { %7276 = vmatprep.subr.bf16.mxu0 %v11257_v59  ;;  %7358 = vmatprep.subr.bf16.mxu1 %v11259_v61  ;;  %v1029_v59 = vld [vmem:[#allocation2 + $0x1dd0] sm:$0xff]  ;;  %v1030_v61 = vld [vmem:[#allocation2 + $0x1dd8] sm:$0xff] }
 0x32a   :  { %v11449_v0 = vcombine.high %v1013_v58, %v1029_v59  ;;  %v11451_v1 = vcombine.high %v1014_v60, %v1030_v61  ;;  %v11448_v6 = vcombine.low %v1013_v58, %v1029_v59  ;;  %v11450_v7 = vcombine.low %v1014_v60, %v1030_v61 }
 0x32c   :  { %7277 = vmatpush1.bf16.msra.mxu0 %v11256_v2  ;;  %7359 = vmatpush1.bf16.msra.mxu1 %v11258_v3  ;;  %v1045_v2 = vld [vmem:[#allocation2 + $0x1e50] sm:$0xff] }
 0x32d   :  { %7278 = vmatprep.subr.bf16.mxu0 %v11289_v4  ;;  %7360 = vmatprep.subr.bf16.mxu1 %v11291_v5  ;;  %v1061_v3 = vld [vmem:[#allocation2 + $0x1ed0] sm:$0xff]  ;;  %v1046_v4 = vld [vmem:[#allocation2 + $0x1e58] sm:$0xff] }
 0x32e   :  { %v1062_v5 = vld [vmem:[#allocation2 + $0x1ed8] sm:$0xff]  ;;  %v11481_v8 = vcombine.high %v1045_v2, %v1061_v3  ;;  %v11480_v25 = vcombine.low %v1045_v2, %v1061_v3 }
 0x32f   :  { %v11483_v11 = vcombine.high %v1046_v4, %v1062_v5  ;;  %v11482_v26 = vcombine.low %v1046_v4, %v1062_v5 }
 0x330   :  { %7279 = vmatpush1.bf16.msra.mxu0 %v11288_v13  ;;  %7361 = vmatpush1.bf16.msra.mxu1 %v11290_v17  ;;  %v1077_v13 = vld [vmem:[#allocation2 + $0x1f50] sm:$0xff] }
 0x331   :  { %7280 = vmatprep.subr.bf16.mxu0 %v11321_v21  ;;  %7362 = vmatprep.subr.bf16.mxu1 %v11323_v22  ;;  %v1093_v17 = vld [vmem:[#allocation2 + $0x1fd0] sm:$0xff]  ;;  %v1078_v21 = vld [vmem:[#allocation2 + $0x1f58] sm:$0xff] }
 0x332   :  { %v1094_v22 = vld [vmem:[#allocation2 + $0x1fd8] sm:$0xff]  ;;  %v11513_v27 = vcombine.high %v1077_v13, %v1093_v17  ;;  %v11512_v15 = vcombine.low %v1077_v13, %v1093_v17 }
 0x333   :  { %v11515_v28 = vcombine.high %v1078_v21, %v1094_v22  ;;  %v11514_v34 = vcombine.low %v1078_v21, %v1094_v22 }
 0x334   :  { %7281 = vmatpush1.bf16.msra.mxu0 %v11320_v29  ;;  %7363 = vmatpush1.bf16.msra.mxu1 %v11322_v30  ;;  %v87_v29 = vld [vmem:[#allocation2 + $0x60] sm:$0xff] }
 0x335   :  { %7282 = vmatprep.subr.bf16.mxu0 %v11353_v31  ;;  %7364 = vmatprep.subr.bf16.mxu1 %v11355_v33  ;;  %v103_v30 = vld [vmem:[#allocation2 + $0xe0] sm:$0xff]  ;;  %v88_v31 = vld [vmem:[#allocation2 + $0x68] sm:$0xff] }
 0x336   :  { %v104_v33 = vld [vmem:[#allocation2 + $0xe8] sm:$0xff]  ;;  %v10525_v37 = vcombine.high %v87_v29, %v103_v30  ;;  %v10524_v45 = vcombine.low %v87_v29, %v103_v30 }
 0x337   :  { %v10527_v38 = vcombine.high %v88_v31, %v104_v33  ;;  %v10526_v46 = vcombine.low %v88_v31, %v104_v33 }
 0x338   :  { %7283 = vmatpush1.bf16.msra.mxu0 %v11352_v40  ;;  %7365 = vmatpush1.bf16.msra.mxu1 %v11354_v41  ;;  %v119_v40 = vld [vmem:[#allocation2 + $0x160] sm:$0xff] }
 0x339   :  { %7284 = vmatprep.subr.bf16.mxu0 %v11385_v42  ;;  %7366 = vmatprep.subr.bf16.mxu1 %v11387_v44  ;;  %v135_v41 = vld [vmem:[#allocation2 + $0x1e0] sm:$0xff]  ;;  %v120_v42 = vld [vmem:[#allocation2 + $0x168] sm:$0xff] }
 0x33a   :  { %v136_v44 = vld [vmem:[#allocation2 + $0x1e8] sm:$0xff]  ;;  %v10557_v49 = vcombine.high %v119_v40, %v135_v41  ;;  %v10556_v58 = vcombine.low %v119_v40, %v135_v41 }
 0x33b   :  { %v10559_v50 = vcombine.high %v120_v42, %v136_v44  ;;  %v10558_v59 = vcombine.low %v120_v42, %v136_v44 }
 0x33c   :  { %7285 = vmatpush1.bf16.msra.mxu0 %v11384_v52  ;;  %7367 = vmatpush1.bf16.msra.mxu1 %v11386_v54  ;;  %v151_v52 = vld [vmem:[#allocation2 + $0x260] sm:$0xff] }
 0x33d   :  { %7286 = vmatprep.subr.bf16.mxu0 %v11417_v55  ;;  %7368 = vmatprep.subr.bf16.mxu1 %v11419_v56  ;;  %v167_v54 = vld [vmem:[#allocation2 + $0x2e0] sm:$0xff]  ;;  %v152_v55 = vld [vmem:[#allocation2 + $0x268] sm:$0xff] }
 0x33e   :  { %v168_v56 = vld [vmem:[#allocation2 + $0x2e8] sm:$0xff]  ;;  %v10589_v60 = vcombine.high %v151_v52, %v167_v54  ;;  %v10588_v2 = vcombine.low %v151_v52, %v167_v54 }
 0x33f   :  { %v10591_v61 = vcombine.high %v152_v55, %v168_v56  ;;  %v10590_v3 = vcombine.low %v152_v55, %v168_v56 }
 0x340   :  { %7287 = vmatpush1.bf16.msra.mxu0 %v11416_v62  ;;  %7369 = vmatpush1.bf16.msra.mxu1 %v11418_v63  ;;  %v183_v62 = vld [vmem:[#allocation2 + $0x360] sm:$0xff] }
 0x341   :  { %7288 = vmatprep.subr.bf16.mxu0 %v11449_v0  ;;  %7370 = vmatprep.subr.bf16.mxu1 %v11451_v1  ;;  %v199_v63 = vld [vmem:[#allocation2 + $0x3e0] sm:$0xff]  ;;  %v184_v0 = vld [vmem:[#allocation2 + $0x368] sm:$0xff] }
 0x342   :  { %v200_v1 = vld [vmem:[#allocation2 + $0x3e8] sm:$0xff]  ;;  %v10621_v4 = vcombine.high %v183_v62, %v199_v63  ;;  %v10620_v13 = vcombine.low %v183_v62, %v199_v63 }
 0x343   :  { %v10623_v5 = vcombine.high %v184_v0, %v200_v1  ;;  %v10622_v17 = vcombine.low %v184_v0, %v200_v1 }
 0x344   :  { %7289 = vmatpush1.bf16.msra.mxu0 %v11448_v6  ;;  %7371 = vmatpush1.bf16.msra.mxu1 %v11450_v7  ;;  %v215_v6 = vld [vmem:[#allocation2 + $0x460] sm:$0xff] }
 0x345   :  { %7290 = vmatprep.subr.bf16.mxu0 %v11481_v8  ;;  %7372 = vmatprep.subr.bf16.mxu1 %v11483_v11  ;;  %v231_v7 = vld [vmem:[#allocation2 + $0x4e0] sm:$0xff]  ;;  %v216_v8 = vld [vmem:[#allocation2 + $0x468] sm:$0xff] }
 0x346   :  { %v232_v11 = vld [vmem:[#allocation2 + $0x4e8] sm:$0xff]  ;;  %v10653_v21 = vcombine.high %v215_v6, %v231_v7  ;;  %v10652_v29 = vcombine.low %v215_v6, %v231_v7 }
 0x347   :  { %v10655_v22 = vcombine.high %v216_v8, %v232_v11  ;;  %v10654_v30 = vcombine.low %v216_v8, %v232_v11 }
 0x348   :  { %7291 = vmatpush1.bf16.msra.mxu0 %v11480_v25  ;;  %7373 = vmatpush1.bf16.msra.mxu1 %v11482_v26  ;;  %v247_v25 = vld [vmem:[#allocation2 + $0x560] sm:$0xff] }
 0x349   :  { %7292 = vmatprep.subr.bf16.mxu0 %v11513_v27  ;;  %7374 = vmatprep.subr.bf16.mxu1 %v11515_v28  ;;  %v263_v26 = vld [vmem:[#allocation2 + $0x5e0] sm:$0xff]  ;;  %v248_v27 = vld [vmem:[#allocation2 + $0x568] sm:$0xff] }
 0x34a   :  { %v264_v28 = vld [vmem:[#allocation2 + $0x5e8] sm:$0xff]  ;;  %v10685_v31 = vcombine.high %v247_v25, %v263_v26  ;;  %v10684_v40 = vcombine.low %v247_v25, %v263_v26 }
 0x34b   :  { %v10687_v33 = vcombine.high %v248_v27, %v264_v28  ;;  %v10686_v41 = vcombine.low %v248_v27, %v264_v28 }
 0x34c   :  { %7293 = vmatpush1.bf16.msra.mxu0 %v11512_v15  ;;  %7375 = vmatpush1.bf16.msra.mxu1 %v11514_v34  ;;  %v279_v15 = vld [vmem:[#allocation2 + $0x660] sm:$0xff] }
 0x34d   :  { %7385 = vmatprep.subr.bf16.mxu0 %v10525_v37  ;;  %7467 = vmatprep.subr.bf16.mxu1 %v10527_v38  ;;  %v295_v34 = vld [vmem:[#allocation2 + $0x6e0] sm:$0xff]  ;;  %v280_v37 = vld [vmem:[#allocation2 + $0x668] sm:$0xff] }
 0x34e   :  { %v296_v38 = vld [vmem:[#allocation2 + $0x6e8] sm:$0xff]  ;;  %v10717_v42 = vcombine.high %v279_v15, %v295_v34  ;;  %v10716_v52 = vcombine.low %v279_v15, %v295_v34 }
 0x34f   :  { %7295 = vmatmul.mubr.bf16.vlgmr.msra.gmra.mrb[20].mxu0 %v12745_v24  ;;  %7377 = vmatmul.mubr.bf16.vlgmr.msra.gmra.mrb[20].mxu1 %v12745_v24  ;;  %v10719_v44 = vcombine.high %v280_v37, %v296_v38  ;;  %v10718_v54 = vcombine.low %v280_v37, %v296_v38 }
 0x350   :  { %7386 = vmatpush1.bf16.msra.mxu0 %v10524_v45  ;;  %7468 = vmatpush1.bf16.msra.mxu1 %v10526_v46  ;;  %v311_v45 = vld [vmem:[#allocation2 + $0x760] sm:$0xff] }
 0x351   :  { %7387 = vmatprep.subr.bf16.mxu0 %v10557_v49  ;;  %7469 = vmatprep.subr.bf16.mxu1 %v10559_v50  ;;  %v327_v46 = vld [vmem:[#allocation2 + $0x7e0] sm:$0xff]  ;;  %v312_v49 = vld [vmem:[#allocation2 + $0x768] sm:$0xff] }
 0x352   :  { %7417 = vmatprep.mubr.bf16.mxu0 %v12722_v57  ;;  %7499 = vmatprep.mubr.bf16.mxu1 %v12722_v57  ;;  %v328_v50 = vld [vmem:[#allocation2 + $0x7e8] sm:$0xff]  ;;  %v10749_v55 = vcombine.high %v311_v45, %v327_v46  ;;  %v10748_v62 = vcombine.low %v311_v45, %v327_v46 }
 0x353   :  { %v10751_v56 = vcombine.high %v312_v49, %v328_v50  ;;  %v10750_v63 = vcombine.low %v312_v49, %v328_v50 }
 0x354   :  { %7388 = vmatpush1.bf16.msra.mxu0 %v10556_v58  ;;  %7470 = vmatpush1.bf16.msra.mxu1 %v10558_v59  ;;  %v343_v58 = vld [vmem:[#allocation2 + $0x860] sm:$0xff] }
 0x355   :  { %7389 = vmatprep.subr.bf16.mxu0 %v10589_v60  ;;  %7471 = vmatprep.subr.bf16.mxu1 %v10591_v61  ;;  %v359_v59 = vld [vmem:[#allocation2 + $0x8e0] sm:$0xff]  ;;  %v344_v60 = vld [vmem:[#allocation2 + $0x868] sm:$0xff] }
 0x356   :  { %v360_v61 = vld [vmem:[#allocation2 + $0x8e8] sm:$0xff]  ;;  %v10781_v0 = vcombine.high %v343_v58, %v359_v59  ;;  %v10780_v6 = vcombine.low %v343_v58, %v359_v59 }
 0x357   :  { %v10783_v1 = vcombine.high %v344_v60, %v360_v61  ;;  %v10782_v7 = vcombine.low %v344_v60, %v360_v61 }
 0x358   :  { %7390 = vmatpush1.bf16.msra.mxu0 %v10588_v2  ;;  %7472 = vmatpush1.bf16.msra.mxu1 %v10590_v3  ;;  %v375_v2 = vld [vmem:[#allocation2 + $0x960] sm:$0xff] }
 0x359   :  { %7391 = vmatprep.subr.bf16.mxu0 %v10621_v4  ;;  %7473 = vmatprep.subr.bf16.mxu1 %v10623_v5  ;;  %v391_v3 = vld [vmem:[#allocation2 + $0x9e0] sm:$0xff]  ;;  %v376_v4 = vld [vmem:[#allocation2 + $0x968] sm:$0xff] }
 0x35a   :  { %v392_v5 = vld [vmem:[#allocation2 + $0x9e8] sm:$0xff]  ;;  %v10813_v8 = vcombine.high %v375_v2, %v391_v3  ;;  %v10812_v25 = vcombine.low %v375_v2, %v391_v3 }
 0x35b   :  { %v10815_v11 = vcombine.high %v376_v4, %v392_v5  ;;  %v10814_v26 = vcombine.low %v376_v4, %v392_v5 }
 0x35c   :  { %7392 = vmatpush1.bf16.msra.mxu0 %v10620_v13  ;;  %7474 = vmatpush1.bf16.msra.mxu1 %v10622_v17  ;;  %v407_v13 = vld [vmem:[#allocation2 + $0xa60] sm:$0xff] }
 0x35d   :  { %7393 = vmatprep.subr.bf16.mxu0 %v10653_v21  ;;  %7475 = vmatprep.subr.bf16.mxu1 %v10655_v22  ;;  %v423_v17 = vld [vmem:[#allocation2 + $0xae0] sm:$0xff]  ;;  %v408_v21 = vld [vmem:[#allocation2 + $0xa68] sm:$0xff] }
 0x35e   :  { %v424_v22 = vld [vmem:[#allocation2 + $0xae8] sm:$0xff]  ;;  %v10845_v27 = vcombine.high %v407_v13, %v423_v17  ;;  %v10844_v15 = vcombine.low %v407_v13, %v423_v17 }
 0x35f   :  { %v10847_v28 = vcombine.high %v408_v21, %v424_v22  ;;  %v10846_v34 = vcombine.low %v408_v21, %v424_v22 }
 0x360   :  { %7394 = vmatpush1.bf16.msra.mxu0 %v10652_v29  ;;  %7476 = vmatpush1.bf16.msra.mxu1 %v10654_v30  ;;  %v439_v29 = vld [vmem:[#allocation2 + $0xb60] sm:$0xff] }
 0x361   :  { %7395 = vmatprep.subr.bf16.mxu0 %v10685_v31  ;;  %7477 = vmatprep.subr.bf16.mxu1 %v10687_v33  ;;  %v455_v30 = vld [vmem:[#allocation2 + $0xbe0] sm:$0xff]  ;;  %v440_v31 = vld [vmem:[#allocation2 + $0xb68] sm:$0xff] }
 0x362   :  { %v456_v33 = vld [vmem:[#allocation2 + $0xbe8] sm:$0xff]  ;;  %v10877_v37 = vcombine.high %v439_v29, %v455_v30  ;;  %v10876_v45 = vcombine.low %v439_v29, %v455_v30 }
 0x363   :  { %v10879_v38 = vcombine.high %v440_v31, %v456_v33  ;;  %v10878_v46 = vcombine.low %v440_v31, %v456_v33 }
 0x364   :  { %7396 = vmatpush1.bf16.msra.mxu0 %v10684_v40  ;;  %7478 = vmatpush1.bf16.msra.mxu1 %v10686_v41  ;;  %v471_v40 = vld [vmem:[#allocation2 + $0xc60] sm:$0xff] }
 0x365   :  { %7397 = vmatprep.subr.bf16.mxu0 %v10717_v42  ;;  %7479 = vmatprep.subr.bf16.mxu1 %v10719_v44  ;;  %v487_v41 = vld [vmem:[#allocation2 + $0xce0] sm:$0xff]  ;;  %v472_v42 = vld [vmem:[#allocation2 + $0xc68] sm:$0xff] }
 0x366   :  { %v488_v44 = vld [vmem:[#allocation2 + $0xce8] sm:$0xff]  ;;  %v10909_v49 = vcombine.high %v471_v40, %v487_v41  ;;  %v10908_v58 = vcombine.low %v471_v40, %v487_v41 }
 0x367   :  { %v10911_v50 = vcombine.high %v472_v42, %v488_v44  ;;  %v10910_v59 = vcombine.low %v472_v42, %v488_v44 }
 0x368   :  { %7398 = vmatpush1.bf16.msra.mxu0 %v10716_v52  ;;  %7480 = vmatpush1.bf16.msra.mxu1 %v10718_v54  ;;  %v503_v52 = vld [vmem:[#allocation2 + $0xd60] sm:$0xff] }
 0x369   :  { %7399 = vmatprep.subr.bf16.mxu0 %v10749_v55  ;;  %7481 = vmatprep.subr.bf16.mxu1 %v10751_v56  ;;  %v519_v54 = vld [vmem:[#allocation2 + $0xde0] sm:$0xff]  ;;  %v504_v55 = vld [vmem:[#allocation2 + $0xd68] sm:$0xff] }
 0x36a   :  { %v520_v56 = vld [vmem:[#allocation2 + $0xde8] sm:$0xff]  ;;  %v10941_v60 = vcombine.high %v503_v52, %v519_v54  ;;  %v10940_v2 = vcombine.low %v503_v52, %v519_v54 }
 0x36b   :  { %v10943_v61 = vcombine.high %v504_v55, %v520_v56  ;;  %v10942_v3 = vcombine.low %v504_v55, %v520_v56 }
 0x36c   :  { %7400 = vmatpush1.bf16.msra.mxu0 %v10748_v62  ;;  %7482 = vmatpush1.bf16.msra.mxu1 %v10750_v63  ;;  %v535_v62 = vld [vmem:[#allocation2 + $0xe60] sm:$0xff] }
 0x36d   :  { %7401 = vmatprep.subr.bf16.mxu0 %v10781_v0  ;;  %7483 = vmatprep.subr.bf16.mxu1 %v10783_v1  ;;  %v551_v63 = vld [vmem:[#allocation2 + $0xee0] sm:$0xff]  ;;  %v536_v0 = vld [vmem:[#allocation2 + $0xe68] sm:$0xff] }
 0x36e   :  { %v552_v1 = vld [vmem:[#allocation2 + $0xee8] sm:$0xff]  ;;  %v10973_v4 = vcombine.high %v535_v62, %v551_v63  ;;  %v10972_v13 = vcombine.low %v535_v62, %v551_v63 }
 0x36f   :  { %v10975_v5 = vcombine.high %v536_v0, %v552_v1  ;;  %v10974_v17 = vcombine.low %v536_v0, %v552_v1 }
 0x370   :  { %7402 = vmatpush1.bf16.msra.mxu0 %v10780_v6  ;;  %7484 = vmatpush1.bf16.msra.mxu1 %v10782_v7  ;;  %v567_v6 = vld [vmem:[#allocation2 + $0xf60] sm:$0xff] }
 0x371   :  { %7403 = vmatprep.subr.bf16.mxu0 %v10813_v8  ;;  %7485 = vmatprep.subr.bf16.mxu1 %v10815_v11  ;;  %v583_v7 = vld [vmem:[#allocation2 + $0xfe0] sm:$0xff]  ;;  %v568_v8 = vld [vmem:[#allocation2 + $0xf68] sm:$0xff] }
 0x372   :  { %v584_v11 = vld [vmem:[#allocation2 + $0xfe8] sm:$0xff]  ;;  %v11005_v21 = vcombine.high %v567_v6, %v583_v7  ;;  %v11004_v29 = vcombine.low %v567_v6, %v583_v7 }
 0x373   :  { %v11007_v22 = vcombine.high %v568_v8, %v584_v11  ;;  %v11006_v30 = vcombine.low %v568_v8, %v584_v11 }
 0x374   :  { %7404 = vmatpush1.bf16.msra.mxu0 %v10812_v25  ;;  %7486 = vmatpush1.bf16.msra.mxu1 %v10814_v26  ;;  %v599_v25 = vld [vmem:[#allocation2 + $0x1060] sm:$0xff] }
 0x375   :  { %7405 = vmatprep.subr.bf16.mxu0 %v10845_v27  ;;  %7487 = vmatprep.subr.bf16.mxu1 %v10847_v28  ;;  %v615_v26 = vld [vmem:[#allocation2 + $0x10e0] sm:$0xff]  ;;  %v600_v27 = vld [vmem:[#allocation2 + $0x1068] sm:$0xff] }
 0x376   :  { %v616_v28 = vld [vmem:[#allocation2 + $0x10e8] sm:$0xff]  ;;  %v11037_v31 = vcombine.high %v599_v25, %v615_v26  ;;  %v11036_v40 = vcombine.low %v599_v25, %v615_v26 }
 0x377   :  { %v11039_v33 = vcombine.high %v600_v27, %v616_v28  ;;  %v11038_v41 = vcombine.low %v600_v27, %v616_v28 }
 0x378   :  { %7406 = vmatpush1.bf16.msra.mxu0 %v10844_v15  ;;  %7488 = vmatpush1.bf16.msra.mxu1 %v10846_v34  ;;  %v631_v15 = vld [vmem:[#allocation2 + $0x1160] sm:$0xff] }
 0x379   :  { %7407 = vmatprep.subr.bf16.mxu0 %v10877_v37  ;;  %7489 = vmatprep.subr.bf16.mxu1 %v10879_v38  ;;  %v647_v34 = vld [vmem:[#allocation2 + $0x11e0] sm:$0xff]  ;;  %v632_v37 = vld [vmem:[#allocation2 + $0x1168] sm:$0xff] }
 0x37a   :  { %v648_v38 = vld [vmem:[#allocation2 + $0x11e8] sm:$0xff]  ;;  %v11069_v42 = vcombine.high %v631_v15, %v647_v34  ;;  %v11068_v52 = vcombine.low %v631_v15, %v647_v34 }
 0x37b   :  { %v11071_v44 = vcombine.high %v632_v37, %v648_v38  ;;  %v11070_v54 = vcombine.low %v632_v37, %v648_v38 }
 0x37c   :  { %7408 = vmatpush1.bf16.msra.mxu0 %v10876_v45  ;;  %7490 = vmatpush1.bf16.msra.mxu1 %v10878_v46  ;;  %v663_v45 = vld [vmem:[#allocation2 + $0x1260] sm:$0xff] }
 0x37d   :  { %7409 = vmatprep.subr.bf16.mxu0 %v10909_v49  ;;  %7491 = vmatprep.subr.bf16.mxu1 %v10911_v50  ;;  %v679_v46 = vld [vmem:[#allocation2 + $0x12e0] sm:$0xff]  ;;  %v664_v49 = vld [vmem:[#allocation2 + $0x1268] sm:$0xff] }
 0x37e   :  { %v680_v50 = vld [vmem:[#allocation2 + $0x12e8] sm:$0xff]  ;;  %v11101_v55 = vcombine.high %v663_v45, %v679_v46  ;;  %v11100_v62 = vcombine.low %v663_v45, %v679_v46 }
 0x37f   :  { %v11103_v56 = vcombine.high %v664_v49, %v680_v50  ;;  %v11102_v63 = vcombine.low %v664_v49, %v680_v50  ;;  %v824_v46 = vld [vmem:[#allocation2 + $0x1768] sm:$0xff] }
 0x380   :  { %7410 = vmatpush1.bf16.msra.mxu0 %v10908_v58  ;;  %7492 = vmatpush1.bf16.msra.mxu1 %v10910_v59  ;;  %v695_v58 = vld [vmem:[#allocation2 + $0x1360] sm:$0xff]  ;;  %v840_v49 = vld [vmem:[#allocation2 + $0x17e8] sm:$0xff] }
 0x381   :  { %7411 = vmatprep.subr.bf16.mxu0 %v10941_v60  ;;  %7493 = vmatprep.subr.bf16.mxu1 %v10943_v61  ;;  %v711_v59 = vld [vmem:[#allocation2 + $0x13e0] sm:$0xff]  ;;  %v696_v60 = vld [vmem:[#allocation2 + $0x1368] sm:$0xff] }
 0x382   :  { %v712_v61 = vld [vmem:[#allocation2 + $0x13e8] sm:$0xff]  ;;  %v11133_v0 = vcombine.high %v695_v58, %v711_v59  ;;  %v11132_v6 = vcombine.low %v695_v58, %v711_v59 }
 0x383   :  { %v11135_v1 = vcombine.high %v696_v60, %v712_v61  ;;  %v11134_v7 = vcombine.low %v696_v60, %v712_v61  ;;  %v11263_v61 = vcombine.high %v824_v46, %v840_v49 }
 0x384   :  { %7412 = vmatpush1.bf16.msra.mxu0 %v10940_v2  ;;  %7494 = vmatpush1.bf16.msra.mxu1 %v10942_v3  ;;  %v727_v2 = vld [vmem:[#allocation2 + $0x1460] sm:$0xff] }
 0x385   :  { %7413 = vmatprep.subr.bf16.mxu0 %v10973_v4  ;;  %7495 = vmatprep.subr.bf16.mxu1 %v10975_v5  ;;  %v743_v3 = vld [vmem:[#allocation2 + $0x14e0] sm:$0xff]  ;;  %v728_v4 = vld [vmem:[#allocation2 + $0x1468] sm:$0xff] }
 0x386   :  { %v744_v5 = vld [vmem:[#allocation2 + $0x14e8] sm:$0xff]  ;;  %v11165_v8 = vcombine.high %v727_v2, %v743_v3  ;;  %v11164_v25 = vcombine.low %v727_v2, %v743_v3  ;;  %v11262_v3 = vcombine.low %v824_v46, %v840_v49 }
 0x387   :  { %v11167_v11 = vcombine.high %v728_v4, %v744_v5  ;;  %v11166_v26 = vcombine.low %v728_v4, %v744_v5 }
 0x388   :  { %7414 = vmatpush1.bf16.msra.mxu0 %v10972_v13  ;;  %7496 = vmatpush1.bf16.msra.mxu1 %v10974_v17  ;;  %v759_v13 = vld [vmem:[#allocation2 + $0x1560] sm:$0xff] }
 0x389   :  { %7415 = vmatprep.subr.bf16.mxu0 %v11005_v21  ;;  %7497 = vmatprep.subr.bf16.mxu1 %v11007_v22  ;;  %v775_v17 = vld [vmem:[#allocation2 + $0x15e0] sm:$0xff]  ;;  %v760_v21 = vld [vmem:[#allocation2 + $0x1568] sm:$0xff] }
 0x38a   :  { %v776_v22 = vld [vmem:[#allocation2 + $0x15e8] sm:$0xff]  ;;  %v11197_v27 = vcombine.high %v759_v13, %v775_v17  ;;  %v11196_v15 = vcombine.low %v759_v13, %v775_v17 }
 0x38b   :  { %v11199_v28 = vcombine.high %v760_v21, %v776_v22  ;;  %v11198_v34 = vcombine.low %v760_v21, %v776_v22 }
 0x38c   :  { %7416 = vmatpush1.bf16.msra.mxu0 %v11004_v29  ;;  %7498 = vmatpush1.bf16.msra.mxu1 %v11006_v30  ;;  %v791_v29 = vld [vmem:[#allocation2 + $0x1660] sm:$0xff] }
 0x38d   :  { %7426 = vmatprep.subr.bf16.mxu0 %v11037_v31  ;;  %7508 = vmatprep.subr.bf16.mxu1 %v11039_v33  ;;  %v807_v30 = vld [vmem:[#allocation2 + $0x16e0] sm:$0xff]  ;;  %v792_v31 = vld [vmem:[#allocation2 + $0x1668] sm:$0xff] }
 0x38e   :  { %v808_v33 = vld [vmem:[#allocation2 + $0x16e8] sm:$0xff]  ;;  %v11229_v37 = vcombine.high %v791_v29, %v807_v30 }
 0x38f   :  { %7418 = vmatmul.mubr.bf16.vlgmr.msra.gmra.mrb[24].mxu0 %v12728_v12  ;;  %7500 = vmatmul.mubr.bf16.vlgmr.msra.gmra.mrb[24].mxu1 %v12728_v12  ;;  %v11230_v58 = vcombine.low %v792_v31, %v808_v33 }
 0x390   :  { %7427 = vmatpush1.bf16.msra.mxu0 %v11036_v40  ;;  %7509 = vmatpush1.bf16.msra.mxu1 %v11038_v41  ;;  %v11231_v40 = vcombine.high %v792_v31, %v808_v33  ;;  %v823_v41 = vld [vmem:[#allocation2 + $0x1760] sm:$0xff] }
 0x391   :  { %7428 = vmatprep.subr.bf16.mxu0 %v11069_v42  ;;  %7510 = vmatprep.subr.bf16.mxu1 %v11071_v44  ;;  %v839_v42 = vld [vmem:[#allocation2 + $0x17e0] sm:$0xff] }
 0x392   :  { %7458 = vmatprep.mubr.bf16.mxu0 %v12737_v23  ;;  %7540 = vmatprep.mubr.bf16.mxu1 %v12737_v23  ;;  %v11261_v59 = vcombine.high %v823_v41, %v839_v42  ;;  %v11260_v2 = vcombine.low %v823_v41, %v839_v42 }
 0x394   :  { %7429 = vmatpush1.bf16.msra.mxu0 %v11068_v52  ;;  %7511 = vmatpush1.bf16.msra.mxu1 %v11070_v54  ;;  %v11228_v54 = vcombine.low %v791_v29, %v807_v30 }
 0x395   :  { %7430 = vmatprep.subr.bf16.mxu0 %v11101_v55  ;;  %7512 = vmatprep.subr.bf16.mxu1 %v11103_v56 }
 0x398   :  { %7431 = vmatpush1.bf16.msra.mxu0 %v11100_v62  ;;  %7513 = vmatpush1.bf16.msra.mxu1 %v11102_v63  ;;  %v855_v62 = vld [vmem:[#allocation2 + $0x1860] sm:$0xff] }
 0x399   :  { %7432 = vmatprep.subr.bf16.mxu0 %v11133_v0  ;;  %7514 = vmatprep.subr.bf16.mxu1 %v11135_v1  ;;  %v871_v63 = vld [vmem:[#allocation2 + $0x18e0] sm:$0xff]  ;;  %v856_v0 = vld [vmem:[#allocation2 + $0x1868] sm:$0xff] }
 0x39a   :  { %v872_v1 = vld [vmem:[#allocation2 + $0x18e8] sm:$0xff]  ;;  %v11293_v4 = vcombine.high %v855_v62, %v871_v63  ;;  %v11292_v13 = vcombine.low %v855_v62, %v871_v63  ;;  %v1015_v62 = vld [vmem:[#allocation2 + $0x1d60] sm:$0xff] }
 0x39b   :  { %v11295_v5 = vcombine.high %v856_v0, %v872_v1  ;;  %v11294_v17 = vcombine.low %v856_v0, %v872_v1  ;;  %v1031_v63 = vld [vmem:[#allocation2 + $0x1de0] sm:$0xff]  ;;  %v1016_v0 = vld [vmem:[#allocation2 + $0x1d68] sm:$0xff] }
 0x39c   :  { %7433 = vmatpush1.bf16.msra.mxu0 %v11132_v6  ;;  %7515 = vmatpush1.bf16.msra.mxu1 %v11134_v7  ;;  %v887_v6 = vld [vmem:[#allocation2 + $0x1960] sm:$0xff]  ;;  %v1032_v1 = vld [vmem:[#allocation2 + $0x1de8] sm:$0xff] }
 0x39d   :  { %7434 = vmatprep.subr.bf16.mxu0 %v11165_v8  ;;  %7516 = vmatprep.subr.bf16.mxu1 %v11167_v11  ;;  %v903_v7 = vld [vmem:[#allocation2 + $0x19e0] sm:$0xff]  ;;  %v888_v8 = vld [vmem:[#allocation2 + $0x1968] sm:$0xff] }
 0x39e   :  { %v904_v11 = vld [vmem:[#allocation2 + $0x19e8] sm:$0xff]  ;;  %v11325_v21 = vcombine.high %v887_v6, %v903_v7  ;;  %v11324_v29 = vcombine.low %v887_v6, %v903_v7  ;;  %v1047_v6 = vld [vmem:[#allocation2 + $0x1e60] sm:$0xff] }
 0x39f   :  { %v11327_v22 = vcombine.high %v888_v8, %v904_v11  ;;  %v11326_v30 = vcombine.low %v888_v8, %v904_v11  ;;  %v1063_v7 = vld [vmem:[#allocation2 + $0x1ee0] sm:$0xff]  ;;  %v1048_v8 = vld [vmem:[#allocation2 + $0x1e68] sm:$0xff] }
 0x3a0   :  { %7435 = vmatpush1.bf16.msra.mxu0 %v11164_v25  ;;  %7517 = vmatpush1.bf16.msra.mxu1 %v11166_v26  ;;  %v919_v25 = vld [vmem:[#allocation2 + $0x1a60] sm:$0xff]  ;;  %v1064_v11 = vld [vmem:[#allocation2 + $0x1ee8] sm:$0xff] }
 0x3a1   :  { %7436 = vmatprep.subr.bf16.mxu0 %v11197_v27  ;;  %7518 = vmatprep.subr.bf16.mxu1 %v11199_v28  ;;  %v935_v26 = vld [vmem:[#allocation2 + $0x1ae0] sm:$0xff]  ;;  %v920_v27 = vld [vmem:[#allocation2 + $0x1a68] sm:$0xff] }
 0x3a2   :  { %v12827_v38 = vpop.f32.mrb[16].mxu0  ;;  %v12829_v44 = vpop.f32.mrb[16].mxu1  ;;  %v936_v28 = vld [vmem:[#allocation2 + $0x1ae8] sm:$0xff]  ;;  %v11357_v31 = vcombine.high %v919_v25, %v935_v26  ;;  %v11356_v41 = vcombine.low %v919_v25, %v935_v26  ;;  %v1079_v25 = vld [vmem:[#allocation2 + $0x1f60] sm:$0xff] }
 0x3a3   :  { %v12831_v45 = vpop.f32.mrb[17].mxu0  ;;  %v12833_v50 = vpop.f32.mrb[17].mxu1  ;;  %v11359_v33 = vcombine.high %v920_v27, %v936_v28  ;;  %v11358_v42 = vcombine.low %v920_v27, %v936_v28  ;;  %v1095_v26 = vld [vmem:[#allocation2 + $0x1fe0] sm:$0xff]  ;;  %v1080_v27 = vld [vmem:[#allocation2 + $0x1f68] sm:$0xff] }
 0x3a4   :  { %v7136_v52 = vpop.f32.mrb[18].mxu0  ;;  %7437 = vmatpush1.bf16.msra.mxu0 %v11196_v15  ;;  %v7218_v55 = vpop.f32.mrb[18].mxu1  ;;  %7519 = vmatpush1.bf16.msra.mxu1 %v11198_v34  ;;  %v951_v15 = vld [vmem:[#allocation2 + $0x1b60] sm:$0xff]  ;;  %v1096_v28 = vld [vmem:[#allocation2 + $0x1fe8] sm:$0xff] }
 0x3a5   :  { %v7137_v56 = vpop.f32.mrb[19].mxu0  ;;  %7438 = vmatprep.subr.bf16.mxu0 %v11229_v37  ;;  %v7219_v60 = vpop.f32.mrb[19].mxu1  ;;  %7520 = vmatprep.subr.bf16.mxu1 %v11231_v40  ;;  %v967_v34 = vld [vmem:[#allocation2 + $0x1be0] sm:$0xff]  ;;  %v952_v37 = vld [vmem:[#allocation2 + $0x1b68] sm:$0xff] }
 0x3a6   :  { %v968_v40 = vld [vmem:[#allocation2 + $0x1be8] sm:$0xff]  ;;  %v11389_v46 = vcombine.high %v951_v15, %v967_v34  ;;  %v983_v52 = vld [vmem:[#allocation2 + $0x1c60] sm:$0xff] }
 0x3a7   :  { %v11391_v49 = vcombine.high %v952_v37, %v968_v40  ;;  %v984_v55 = vld [vmem:[#allocation2 + $0x1c68] sm:$0xff] }
 0x3a8   :  { %7439 = vmatpush1.bf16.msra.mxu0 %v11228_v54  ;;  %7521 = vmatpush1.bf16.msra.mxu1 %v11230_v58  ;;  %v999_v54 = vld [vmem:[#allocation2 + $0x1ce0] sm:$0xff]  ;;  %v1000_v56 = vld [vmem:[#allocation2 + $0x1ce8] sm:$0xff]  ;;  %v11388_v58 = vcombine.low %v951_v15, %v967_v34  ;;  %v89_v15 = vld [vmem:[#allocation2 + $0x70] sm:$0xff] }
 0x3a9   :  { %7440 = vmatprep.subr.bf16.mxu0 %v11261_v59  ;;  %7522 = vmatprep.subr.bf16.mxu1 %v11263_v61  ;;  %v11390_v59 = vcombine.low %v952_v37, %v968_v40  ;;  %v11421_v60 = vcombine.high %v983_v52, %v999_v54  ;;  %v11423_v61 = vcombine.high %v984_v55, %v1000_v56  ;;  %v105_v34 = vld [vmem:[#allocation2 + $0xf0] sm:$0xff]  ;;  %v90_v37 = vld [vmem:[#allocation2 + $0x78] sm:$0xff] }
 0x3aa   :  { %v106_v40 = vld [vmem:[#allocation2 + $0xf8] sm:$0xff] }
 0x3ac   :  { %7441 = vmatpush1.bf16.msra.mxu0 %v11260_v2  ;;  %7523 = vmatpush1.bf16.msra.mxu1 %v11262_v3  ;;  %v11420_v2 = vcombine.low %v983_v52, %v999_v54  ;;  %v11422_v3 = vcombine.low %v984_v55, %v1000_v56  ;;  %v121_v52 = vld [vmem:[#allocation2 + $0x170] sm:$0xff]  ;;  %v122_v55 = vld [vmem:[#allocation2 + $0x178] sm:$0xff] }
 0x3ad   :  { %7442 = vmatprep.subr.bf16.mxu0 %v11293_v4  ;;  %7524 = vmatprep.subr.bf16.mxu1 %v11295_v5  ;;  %v11453_v4 = vcombine.high %v1015_v62, %v1031_v63  ;;  %v11455_v5 = vcombine.high %v1016_v0, %v1032_v1  ;;  %v137_v54 = vld [vmem:[#allocation2 + $0x1f0] sm:$0xff]  ;;  %v138_v56 = vld [vmem:[#allocation2 + $0x1f8] sm:$0xff] }
 0x3b0   :  { %7443 = vmatpush1.bf16.msra.mxu0 %v11292_v13  ;;  %7525 = vmatpush1.bf16.msra.mxu1 %v11294_v17  ;;  %v11452_v13 = vcombine.low %v1015_v62, %v1031_v63  ;;  %v11454_v17 = vcombine.low %v1016_v0, %v1032_v1  ;;  %v153_v62 = vld [vmem:[#allocation2 + $0x270] sm:$0xff]  ;;  %v154_v0 = vld [vmem:[#allocation2 + $0x278] sm:$0xff] }
 0x3b1   :  { %7444 = vmatprep.subr.bf16.mxu0 %v11325_v21  ;;  %7526 = vmatprep.subr.bf16.mxu1 %v11327_v22  ;;  %v11485_v21 = vcombine.high %v1047_v6, %v1063_v7  ;;  %v11487_v22 = vcombine.high %v1048_v8, %v1064_v11  ;;  %v169_v63 = vld [vmem:[#allocation2 + $0x2f0] sm:$0xff]  ;;  %v170_v1 = vld [vmem:[#allocation2 + $0x2f8] sm:$0xff] }
 0x3b4   :  { %7445 = vmatpush1.bf16.msra.mxu0 %v11324_v29  ;;  %7527 = vmatpush1.bf16.msra.mxu1 %v11326_v30  ;;  %v11484_v29 = vcombine.low %v1047_v6, %v1063_v7  ;;  %v11486_v30 = vcombine.low %v1048_v8, %v1064_v11  ;;  %v185_v6 = vld [vmem:[#allocation2 + $0x370] sm:$0xff]  ;;  %v186_v8 = vld [vmem:[#allocation2 + $0x378] sm:$0xff] }
 0x3b5   :  { %7446 = vmatprep.subr.bf16.mxu0 %v11357_v31  ;;  %7528 = vmatprep.subr.bf16.mxu1 %v11359_v33  ;;  %v11517_v31 = vcombine.high %v1079_v25, %v1095_v26  ;;  %v11519_v33 = vcombine.high %v1080_v27, %v1096_v28  ;;  %v201_v7 = vld [vmem:[#allocation2 + $0x3f0] sm:$0xff]  ;;  %v202_v11 = vld [vmem:[#allocation2 + $0x3f8] sm:$0xff] }
 0x3b8   :  { %7447 = vmatpush1.bf16.msra.mxu0 %v11356_v41  ;;  %7529 = vmatpush1.bf16.msra.mxu1 %v11358_v42  ;;  %v11516_v41 = vcombine.low %v1079_v25, %v1095_v26  ;;  %v11518_v42 = vcombine.low %v1080_v27, %v1096_v28  ;;  %v217_v25 = vld [vmem:[#allocation2 + $0x470] sm:$0xff]  ;;  %v218_v27 = vld [vmem:[#allocation2 + $0x478] sm:$0xff] }
 0x3b9   :  { %7448 = vmatprep.subr.bf16.mxu0 %v11389_v46  ;;  %7530 = vmatprep.subr.bf16.mxu1 %v11391_v49  ;;  %v10529_v46 = vcombine.high %v89_v15, %v105_v34  ;;  %v10531_v49 = vcombine.high %v90_v37, %v106_v40  ;;  %v233_v26 = vld [vmem:[#allocation2 + $0x4f0] sm:$0xff]  ;;  %v234_v28 = vld [vmem:[#allocation2 + $0x4f8] sm:$0xff] }
 0x3bc   :  { %7449 = vmatpush1.bf16.msra.mxu0 %v11388_v58  ;;  %7531 = vmatpush1.bf16.msra.mxu1 %v11390_v59  ;;  %v10528_v58 = vcombine.low %v89_v15, %v105_v34  ;;  %v10530_v59 = vcombine.low %v90_v37, %v106_v40  ;;  %v265_v15 = vld [vmem:[#allocation2 + $0x5f0] sm:$0xff]  ;;  %v250_v34 = vld [vmem:[#allocation2 + $0x578] sm:$0xff]  ;;  %v10656_v40 = vcombine.low %v217_v25, %v233_v26 }
 0x3bd   :  { %7450 = vmatprep.subr.bf16.mxu0 %v11421_v60  ;;  %7532 = vmatprep.subr.bf16.mxu1 %v11423_v61  ;;  %v10561_v60 = vcombine.high %v121_v52, %v137_v54  ;;  %v10563_v61 = vcombine.high %v122_v55, %v138_v56  ;;  %v266_v37 = vld [vmem:[#allocation2 + $0x5f8] sm:$0xff] }
 0x3c0   :  { %7451 = vmatpush1.bf16.msra.mxu0 %v11420_v2  ;;  %7533 = vmatpush1.bf16.msra.mxu1 %v11422_v3  ;;  %v10560_v2 = vcombine.low %v121_v52, %v137_v54  ;;  %v10562_v3 = vcombine.low %v122_v55, %v138_v56  ;;  %v297_v52 = vld [vmem:[#allocation2 + $0x6f0] sm:$0xff]  ;;  %v282_v54 = vld [vmem:[#allocation2 + $0x678] sm:$0xff] }
 0x3c1   :  { %7452 = vmatprep.subr.bf16.mxu0 %v11453_v4  ;;  %7534 = vmatprep.subr.bf16.mxu1 %v11455_v5  ;;  %v10593_v4 = vcombine.high %v153_v62, %v169_v63  ;;  %v10595_v5 = vcombine.high %v154_v0, %v170_v1  ;;  %v298_v55 = vld [vmem:[#allocation2 + $0x6f8] sm:$0xff] }
 0x3c4   :  { %7453 = vmatpush1.bf16.msra.mxu0 %v11452_v13  ;;  %7535 = vmatpush1.bf16.msra.mxu1 %v11454_v17  ;;  %v10592_v13 = vcombine.low %v153_v62, %v169_v63  ;;  %v10594_v17 = vcombine.low %v154_v0, %v170_v1  ;;  %v329_v62 = vld [vmem:[#allocation2 + $0x7f0] sm:$0xff]  ;;  %v314_v63 = vld [vmem:[#allocation2 + $0x778] sm:$0xff] }
 0x3c5   :  { %7454 = vmatprep.subr.bf16.mxu0 %v11485_v21  ;;  %7536 = vmatprep.subr.bf16.mxu1 %v11487_v22  ;;  %v10625_v21 = vcombine.high %v185_v6, %v201_v7  ;;  %v10627_v22 = vcombine.high %v186_v8, %v202_v11  ;;  %v330_v0 = vld [vmem:[#allocation2 + $0x7f8] sm:$0xff] }
 0x3c8   :  { %7455 = vmatpush1.bf16.msra.mxu0 %v11484_v29  ;;  %7537 = vmatpush1.bf16.msra.mxu1 %v11486_v30  ;;  %v10624_v29 = vcombine.low %v185_v6, %v201_v7  ;;  %v10626_v30 = vcombine.low %v186_v8, %v202_v11  ;;  %v361_v6 = vld [vmem:[#allocation2 + $0x8f0] sm:$0xff]  ;;  %v346_v7 = vld [vmem:[#allocation2 + $0x878] sm:$0xff] }
 0x3c9   :  { %7456 = vmatprep.subr.bf16.mxu0 %v11517_v31  ;;  %7538 = vmatprep.subr.bf16.mxu1 %v11519_v33  ;;  %v10657_v31 = vcombine.high %v217_v25, %v233_v26  ;;  %v249_v33 = vld [vmem:[#allocation2 + $0x570] sm:$0xff]  ;;  %v362_v8 = vld [vmem:[#allocation2 + $0x8f8] sm:$0xff] }
 0x3ca   :  { %v10688_v56 = vcombine.low %v249_v33, %v265_v15  ;;  %v393_v25 = vld [vmem:[#allocation2 + $0x9f0] sm:$0xff]  ;;  %v378_v26 = vld [vmem:[#allocation2 + $0x978] sm:$0xff] }
 0x3cc   :  { %7457 = vmatpush1.bf16.msra.mxu0 %v11516_v41  ;;  %7539 = vmatpush1.bf16.msra.mxu1 %v11518_v42  ;;  %v10658_v41 = vcombine.low %v218_v27, %v234_v28  ;;  %v10689_v42 = vcombine.high %v249_v33, %v265_v15  ;;  %v425_v33 = vld [vmem:[#allocation2 + $0xaf0] sm:$0xff]  ;;  %v410_v15 = vld [vmem:[#allocation2 + $0xa78] sm:$0xff] }
 0x3cd   :  { %7549 = vmatprep.subr.bf16.mxu0 %v10529_v46  ;;  %7631 = vmatprep.subr.bf16.mxu1 %v10531_v49  ;;  %v10691_v46 = vcombine.high %v250_v34, %v266_v37  ;;  %v281_v49 = vld [vmem:[#allocation2 + $0x670] sm:$0xff] }
 0x3ce   :  { %v10720_v1 = vcombine.low %v281_v49, %v297_v52 }
 0x3cf   :  { %7459 = vmatmul.mubr.bf16.vlgmr.msra.gmra.mrb[24].mxu0 %v12745_v24  ;;  %7541 = vmatmul.mubr.bf16.vlgmr.msra.gmra.mrb[24].mxu1 %v12745_v24 }
 0x3d0   :  { %7550 = vmatpush1.bf16.msra.mxu0 %v10528_v58  ;;  %7632 = vmatpush1.bf16.msra.mxu1 %v10530_v59  ;;  %v10690_v58 = vcombine.low %v250_v34, %v266_v37  ;;  %v10721_v59 = vcombine.high %v281_v49, %v297_v52  ;;  %v426_v34 = vld [vmem:[#allocation2 + $0xaf8] sm:$0xff]  ;;  %v457_v49 = vld [vmem:[#allocation2 + $0xbf0] sm:$0xff] }
 0x3d1   :  { %7551 = vmatprep.subr.bf16.mxu0 %v10561_v60  ;;  %7633 = vmatprep.subr.bf16.mxu1 %v10563_v61  ;;  %v10723_v60 = vcombine.high %v282_v54, %v298_v55  ;;  %v313_v61 = vld [vmem:[#allocation2 + $0x770] sm:$0xff]  ;;  %v442_v52 = vld [vmem:[#allocation2 + $0xb78] sm:$0xff] }
 0x3d2   :  { %7581 = vmatprep.mubr.bf16.mxu0 %v12722_v57  ;;  %7663 = vmatprep.mubr.bf16.mxu1 %v12722_v57  ;;  %v10659_v57 = vcombine.high %v218_v27, %v234_v28  ;;  %v10752_v11 = vcombine.low %v313_v61, %v329_v62  ;;  %v394_v27 = vld [vmem:[#allocation2 + $0x9f8] sm:$0xff] }
 0x3d4   :  { %7552 = vmatpush1.bf16.msra.mxu0 %v10560_v2  ;;  %7634 = vmatpush1.bf16.msra.mxu1 %v10562_v3  ;;  %v10722_v2 = vcombine.low %v282_v54, %v298_v55  ;;  %v10753_v3 = vcombine.high %v313_v61, %v329_v62  ;;  %v458_v54 = vld [vmem:[#allocation2 + $0xbf8] sm:$0xff]  ;;  %v489_v61 = vld [vmem:[#allocation2 + $0xcf0] sm:$0xff] }
 0x3d5   :  { %7553 = vmatprep.subr.bf16.mxu0 %v10593_v4  ;;  %7635 = vmatprep.subr.bf16.mxu1 %v10595_v5  ;;  %v10755_v4 = vcombine.high %v314_v63, %v330_v0  ;;  %v345_v5 = vld [vmem:[#allocation2 + $0x870] sm:$0xff]  ;;  %v474_v62 = vld [vmem:[#allocation2 + $0xc78] sm:$0xff] }
 0x3d6   :  { %v10784_v28 = vcombine.low %v345_v5, %v361_v6 }
 0x3d8   :  { %7554 = vmatpush1.bf16.msra.mxu0 %v10592_v13  ;;  %7636 = vmatpush1.bf16.msra.mxu1 %v10594_v17  ;;  %v10754_v13 = vcombine.low %v314_v63, %v330_v0  ;;  %v10785_v17 = vcombine.high %v345_v5, %v361_v6  ;;  %v490_v63 = vld [vmem:[#allocation2 + $0xcf8] sm:$0xff]  ;;  %v521_v5 = vld [vmem:[#allocation2 + $0xdf0] sm:$0xff] }
 0x3d9   :  { %7555 = vmatprep.subr.bf16.mxu0 %v10625_v21  ;;  %7637 = vmatprep.subr.bf16.mxu1 %v10627_v22  ;;  %v10787_v21 = vcombine.high %v346_v7, %v362_v8  ;;  %v377_v22 = vld [vmem:[#allocation2 + $0x970] sm:$0xff]  ;;  %v506_v6 = vld [vmem:[#allocation2 + $0xd78] sm:$0xff] }
 0x3da   :  { %v10816_v37 = vcombine.low %v377_v22, %v393_v25 }
 0x3dc   :  { %7556 = vmatpush1.bf16.msra.mxu0 %v10624_v29  ;;  %7638 = vmatpush1.bf16.msra.mxu1 %v10626_v30  ;;  %v10786_v29 = vcombine.low %v346_v7, %v362_v8  ;;  %v10817_v30 = vcombine.high %v377_v22, %v393_v25  ;;  %v522_v7 = vld [vmem:[#allocation2 + $0xdf8] sm:$0xff]  ;;  %v553_v22 = vld [vmem:[#allocation2 + $0xef0] sm:$0xff] }
 0x3dd   :  { %7557 = vmatprep.subr.bf16.mxu0 %v10657_v31  ;;  %7639 = vmatprep.subr.bf16.mxu1 %v10659_v57  ;;  %v10819_v31 = vcombine.high %v378_v26, %v394_v27  ;;  %v409_v57 = vld [vmem:[#allocation2 + $0xa70] sm:$0xff]  ;;  %v538_v25 = vld [vmem:[#allocation2 + $0xe78] sm:$0xff] }
 0x3de   :  { %v10848_v55 = vcombine.low %v409_v57, %v425_v33 }
 0x3e0   :  { %7558 = vmatpush1.bf16.msra.mxu0 %v10656_v40  ;;  %7640 = vmatpush1.bf16.msra.mxu1 %v10658_v41  ;;  %v10818_v40 = vcombine.low %v378_v26, %v394_v27  ;;  %v10849_v41 = vcombine.high %v409_v57, %v425_v33  ;;  %v554_v26 = vld [vmem:[#allocation2 + $0xef8] sm:$0xff]  ;;  %v585_v57 = vld [vmem:[#allocation2 + $0xff0] sm:$0xff] }
 0x3e1   :  { %7559 = vmatprep.subr.bf16.mxu0 %v10689_v42  ;;  %7641 = vmatprep.subr.bf16.mxu1 %v10691_v46  ;;  %v10851_v42 = vcombine.high %v410_v15, %v426_v34  ;;  %v441_v46 = vld [vmem:[#allocation2 + $0xb70] sm:$0xff]  ;;  %v570_v33 = vld [vmem:[#allocation2 + $0xf78] sm:$0xff] }
 0x3e2   :  { %v10880_v0 = vcombine.low %v441_v46, %v457_v49 }
 0x3e4   :  { %7560 = vmatpush1.bf16.msra.mxu0 %v10688_v56  ;;  %7642 = vmatpush1.bf16.msra.mxu1 %v10690_v58  ;;  %v10850_v56 = vcombine.low %v410_v15, %v426_v34  ;;  %v10881_v58 = vcombine.high %v441_v46, %v457_v49  ;;  %v586_v15 = vld [vmem:[#allocation2 + $0xff8] sm:$0xff]  ;;  %v617_v46 = vld [vmem:[#allocation2 + $0x10f0] sm:$0xff] }
 0x3e5   :  { %7561 = vmatprep.subr.bf16.mxu0 %v10721_v59  ;;  %7643 = vmatprep.subr.bf16.mxu1 %v10723_v60  ;;  %v10883_v59 = vcombine.high %v442_v52, %v458_v54  ;;  %v473_v60 = vld [vmem:[#allocation2 + $0xc70] sm:$0xff]  ;;  %v602_v49 = vld [vmem:[#allocation2 + $0x1078] sm:$0xff] }
 0x3e6   :  { %v10912_v8 = vcombine.low %v473_v60, %v489_v61 }
 0x3e8   :  { %7562 = vmatpush1.bf16.msra.mxu0 %v10720_v1  ;;  %7644 = vmatpush1.bf16.msra.mxu1 %v10722_v2  ;;  %v10882_v1 = vcombine.low %v442_v52, %v458_v54  ;;  %v10913_v2 = vcombine.high %v473_v60, %v489_v61  ;;  %v618_v52 = vld [vmem:[#allocation2 + $0x10f8] sm:$0xff]  ;;  %v649_v60 = vld [vmem:[#allocation2 + $0x11f0] sm:$0xff] }
 0x3e9   :  { %7563 = vmatprep.subr.bf16.mxu0 %v10753_v3  ;;  %7645 = vmatprep.subr.bf16.mxu1 %v10755_v4  ;;  %v10915_v3 = vcombine.high %v474_v62, %v490_v63  ;;  %v505_v4 = vld [vmem:[#allocation2 + $0xd70] sm:$0xff]  ;;  %v634_v61 = vld [vmem:[#allocation2 + $0x1178] sm:$0xff] }
 0x3ea   :  { %v10944_v27 = vcombine.low %v505_v4, %v521_v5 }
 0x3ec   :  { %7564 = vmatpush1.bf16.msra.mxu0 %v10752_v11  ;;  %7646 = vmatpush1.bf16.msra.mxu1 %v10754_v13  ;;  %v10914_v11 = vcombine.low %v474_v62, %v490_v63  ;;  %v10945_v13 = vcombine.high %v505_v4, %v521_v5  ;;  %v650_v62 = vld [vmem:[#allocation2 + $0x11f8] sm:$0xff]  ;;  %v681_v4 = vld [vmem:[#allocation2 + $0x12f0] sm:$0xff] }
 0x3ed   :  { %7565 = vmatprep.subr.bf16.mxu0 %v10785_v17  ;;  %7647 = vmatprep.subr.bf16.mxu1 %v10787_v21  ;;  %v10947_v17 = vcombine.high %v506_v6, %v522_v7  ;;  %v537_v21 = vld [vmem:[#allocation2 + $0xe70] sm:$0xff]  ;;  %v666_v5 = vld [vmem:[#allocation2 + $0x1278] sm:$0xff] }
 0x3ee   :  { %v10976_v34 = vcombine.low %v537_v21, %v553_v22 }
 0x3f0   :  { %7566 = vmatpush1.bf16.msra.mxu0 %v10784_v28  ;;  %7648 = vmatpush1.bf16.msra.mxu1 %v10786_v29  ;;  %v10946_v28 = vcombine.low %v506_v6, %v522_v7  ;;  %v10977_v29 = vcombine.high %v537_v21, %v553_v22  ;;  %v682_v6 = vld [vmem:[#allocation2 + $0x12f8] sm:$0xff]  ;;  %v713_v21 = vld [vmem:[#allocation2 + $0x13f0] sm:$0xff] }
 0x3f1   :  { %7567 = vmatprep.subr.bf16.mxu0 %v10817_v30  ;;  %7649 = vmatprep.subr.bf16.mxu1 %v10819_v31  ;;  %v10979_v30 = vcombine.high %v538_v25, %v554_v26  ;;  %v569_v31 = vld [vmem:[#allocation2 + $0xf70] sm:$0xff]  ;;  %v698_v22 = vld [vmem:[#allocation2 + $0x1378] sm:$0xff] }
 0x3f2   :  { %v11008_v54 = vcombine.low %v569_v31, %v585_v57 }
 0x3f4   :  { %7568 = vmatpush1.bf16.msra.mxu0 %v10816_v37  ;;  %7650 = vmatpush1.bf16.msra.mxu1 %v10818_v40  ;;  %v10978_v37 = vcombine.low %v538_v25, %v554_v26  ;;  %v11009_v40 = vcombine.high %v569_v31, %v585_v57  ;;  %v714_v25 = vld [vmem:[#allocation2 + $0x13f8] sm:$0xff] }
 0x3f5   :  { %7569 = vmatprep.subr.bf16.mxu0 %v10849_v41  ;;  %7651 = vmatprep.subr.bf16.mxu1 %v10851_v42  ;;  %v11011_v41 = vcombine.high %v570_v33, %v586_v15  ;;  %v601_v42 = vld [vmem:[#allocation2 + $0x1070] sm:$0xff]  ;;  %v730_v31 = vld [vmem:[#allocation2 + $0x1478] sm:$0xff] }
 0x3f6   :  { %v11040_v63 = vcombine.low %v601_v42, %v617_v46  ;;  %v746_v57 = vld [vmem:[#allocation2 + $0x14f8] sm:$0xff] }
 0x3f8   :  { %7570 = vmatpush1.bf16.msra.mxu0 %v10848_v55  ;;  %7652 = vmatpush1.bf16.msra.mxu1 %v10850_v56  ;;  %v11010_v55 = vcombine.low %v570_v33, %v586_v15  ;;  %v11041_v56 = vcombine.high %v601_v42, %v617_v46  ;;  %v11138_v15 = vcombine.low %v698_v22, %v714_v25  ;;  %v778_v42 = vld [vmem:[#allocation2 + $0x15f8] sm:$0xff] }
 0x3f9   :  { %7571 = vmatprep.subr.bf16.mxu0 %v10881_v58  ;;  %7653 = vmatprep.subr.bf16.mxu1 %v10883_v59  ;;  %v11043_v58 = vcombine.high %v602_v49, %v618_v52  ;;  %v633_v59 = vld [vmem:[#allocation2 + $0x1170] sm:$0xff] }
 0x3fa   :  { %v11072_v7 = vcombine.low %v633_v59, %v649_v60 }
 0x3fc   :  { %7572 = vmatpush1.bf16.msra.mxu0 %v10880_v0  ;;  %7654 = vmatpush1.bf16.msra.mxu1 %v10882_v1  ;;  %v11042_v0 = vcombine.low %v602_v49, %v618_v52  ;;  %v11073_v1 = vcombine.high %v633_v59, %v649_v60  ;;  %v11170_v49 = vcombine.low %v730_v31, %v746_v57  ;;  %v810_v59 = vld [vmem:[#allocation2 + $0x16f8] sm:$0xff] }
 0x3fd   :  { %7573 = vmatprep.subr.bf16.mxu0 %v10913_v2  ;;  %7655 = vmatprep.subr.bf16.mxu1 %v10915_v3  ;;  %v11075_v2 = vcombine.high %v634_v61, %v650_v62  ;;  %v665_v3 = vld [vmem:[#allocation2 + $0x1270] sm:$0xff] }
 0x3fe   :  { %v11104_v26 = vcombine.low %v665_v3, %v681_v4 }
 0x400   :  { %7574 = vmatpush1.bf16.msra.mxu0 %v10912_v8  ;;  %7656 = vmatpush1.bf16.msra.mxu1 %v10914_v11  ;;  %v11074_v8 = vcombine.low %v634_v61, %v650_v62  ;;  %v11105_v11 = vcombine.high %v665_v3, %v681_v4 }
 0x401   :  { %7575 = vmatprep.subr.bf16.mxu0 %v10945_v13  ;;  %7657 = vmatprep.subr.bf16.mxu1 %v10947_v17  ;;  %v11107_v13 = vcombine.high %v666_v5, %v682_v6  ;;  %v697_v17 = vld [vmem:[#allocation2 + $0x1370] sm:$0xff] }
 0x402   :  { %v11136_v33 = vcombine.low %v697_v17, %v713_v21 }
 0x404   :  { %7576 = vmatpush1.bf16.msra.mxu0 %v10944_v27  ;;  %7658 = vmatpush1.bf16.msra.mxu1 %v10946_v28  ;;  %v11137_v27 = vcombine.high %v697_v17, %v713_v21  ;;  %v11139_v28 = vcombine.high %v698_v22, %v714_v25 }
 0x405   :  { %7577 = vmatprep.subr.bf16.mxu0 %v10977_v29  ;;  %7659 = vmatprep.subr.bf16.mxu1 %v10979_v30  ;;  %v729_v29 = vld [vmem:[#allocation2 + $0x1470] sm:$0xff] }
 0x406   :  { %v745_v30 = vld [vmem:[#allocation2 + $0x14f0] sm:$0xff] }
 0x407   :  { %v11168_v46 = vcombine.low %v729_v29, %v745_v30 }
 0x408   :  { %7578 = vmatpush1.bf16.msra.mxu0 %v10976_v34  ;;  %7660 = vmatpush1.bf16.msra.mxu1 %v10978_v37  ;;  %v11169_v34 = vcombine.high %v729_v29, %v745_v30  ;;  %v761_v37 = vld [vmem:[#allocation2 + $0x1570] sm:$0xff]  ;;  %v874_v29 = vld [vmem:[#allocation2 + $0x18f8] sm:$0xff] }
 0x409   :  { %7579 = vmatprep.subr.bf16.mxu0 %v11009_v40  ;;  %7661 = vmatprep.subr.bf16.mxu1 %v11011_v41  ;;  %v777_v40 = vld [vmem:[#allocation2 + $0x15f0] sm:$0xff]  ;;  %v762_v41 = vld [vmem:[#allocation2 + $0x1578] sm:$0xff] }
 0x40a   :  { %v11201_v52 = vcombine.high %v761_v37, %v777_v40  ;;  %v11200_v60 = vcombine.low %v761_v37, %v777_v40  ;;  %v11202_v61 = vcombine.low %v762_v41, %v778_v42  ;;  %v906_v37 = vld [vmem:[#allocation2 + $0x19f8] sm:$0xff] }
 0x40c   :  { %7580 = vmatpush1.bf16.msra.mxu0 %v11008_v54  ;;  %7662 = vmatpush1.bf16.msra.mxu1 %v11010_v55  ;;  %v11203_v54 = vcombine.high %v762_v41, %v778_v42  ;;  %v793_v55 = vld [vmem:[#allocation2 + $0x1670] sm:$0xff] }
 0x40d   :  { %7590 = vmatprep.subr.bf16.mxu0 %v11041_v56  ;;  %7672 = vmatprep.subr.bf16.mxu1 %v11043_v58  ;;  %v809_v56 = vld [vmem:[#allocation2 + $0x16f0] sm:$0xff]  ;;  %v794_v58 = vld [vmem:[#allocation2 + $0x1678] sm:$0xff] }
 0x40e   :  { %v11233_v62 = vcombine.high %v793_v55, %v809_v56  ;;  %v11234_v21 = vcombine.low %v794_v58, %v810_v59 }
 0x40f   :  { %7582 = vmatmul.mubr.bf16.vlgmr.msra.gmra.mrb[28].mxu0 %v12728_v12  ;;  %7664 = vmatmul.mubr.bf16.vlgmr.msra.gmra.mrb[28].mxu1 %v12728_v12  ;;  %v11106_v12 = vcombine.low %v666_v5, %v682_v6  ;;  %v826_v5 = vld [vmem:[#allocation2 + $0x1778] sm:$0xff] }
 0x410   :  { %7591 = vmatpush1.bf16.msra.mxu0 %v11040_v63  ;;  %7673 = vmatpush1.bf16.msra.mxu1 %v11042_v0  ;;  %v11235_v0 = vcombine.high %v794_v58, %v810_v59  ;;  %v842_v6 = vld [vmem:[#allocation2 + $0x17f8] sm:$0xff] }
 0x411   :  { %7592 = vmatprep.subr.bf16.mxu0 %v11073_v1  ;;  %7674 = vmatprep.subr.bf16.mxu1 %v11075_v2  ;;  %v825_v1 = vld [vmem:[#allocation2 + $0x1770] sm:$0xff] }
 0x412   :  { %7622 = vmatprep.mubr.bf16.mxu0 %v12737_v23  ;;  %7704 = vmatprep.mubr.bf16.mxu1 %v12737_v23  ;;  %v11171_v23 = vcombine.high %v730_v31, %v746_v57  ;;  %v841_v2 = vld [vmem:[#allocation2 + $0x17f0] sm:$0xff]  ;;  %v11266_v31 = vcombine.low %v826_v5, %v842_v6 }
 0x413   :  { %v11265_v22 = vcombine.high %v825_v1, %v841_v2  ;;  %v11264_v30 = vcombine.low %v825_v1, %v841_v2  ;;  %v970_v1 = vld [vmem:[#allocation2 + $0x1bf8] sm:$0xff] }
 0x414   :  { %7593 = vmatpush1.bf16.msra.mxu0 %v11072_v7  ;;  %7675 = vmatpush1.bf16.msra.mxu1 %v11074_v8 }
 0x415   :  { %7594 = vmatprep.subr.bf16.mxu0 %v11105_v11  ;;  %7676 = vmatprep.subr.bf16.mxu1 %v11107_v13  ;;  %v11232_v11 = vcombine.low %v793_v55, %v809_v56  ;;  %v938_v55 = vld [vmem:[#allocation2 + $0x1af8] sm:$0xff] }
 0x418   :  { %7595 = vmatpush1.bf16.msra.mxu0 %v11104_v26  ;;  %7677 = vmatpush1.bf16.msra.mxu1 %v11106_v12  ;;  %v11267_v26 = vcombine.high %v826_v5, %v842_v6  ;;  %v857_v12 = vld [vmem:[#allocation2 + $0x1870] sm:$0xff] }
 0x419   :  { %7596 = vmatprep.subr.bf16.mxu0 %v11137_v27  ;;  %7678 = vmatprep.subr.bf16.mxu1 %v11139_v28  ;;  %v873_v27 = vld [vmem:[#allocation2 + $0x18f0] sm:$0xff]  ;;  %v858_v28 = vld [vmem:[#allocation2 + $0x1878] sm:$0xff] }
 0x41a   :  { %v11297_v57 = vcombine.high %v857_v12, %v873_v27  ;;  %v11296_v40 = vcombine.low %v857_v12, %v873_v27  ;;  %v11298_v41 = vcombine.low %v858_v28, %v874_v29 }
 0x41c   :  { %7597 = vmatpush1.bf16.msra.mxu0 %v11136_v33  ;;  %7679 = vmatpush1.bf16.msra.mxu1 %v11138_v15  ;;  %v11299_v33 = vcombine.high %v858_v28, %v874_v29  ;;  %v889_v15 = vld [vmem:[#allocation2 + $0x1970] sm:$0xff] }
 0x41d   :  { %7598 = vmatprep.subr.bf16.mxu0 %v11169_v34  ;;  %7680 = vmatprep.subr.bf16.mxu1 %v11171_v23  ;;  %v905_v34 = vld [vmem:[#allocation2 + $0x19f0] sm:$0xff]  ;;  %v890_v23 = vld [vmem:[#allocation2 + $0x1978] sm:$0xff] }
 0x41e   :  { %v11329_v42 = vcombine.high %v889_v15, %v905_v34  ;;  %v11328_v56 = vcombine.low %v889_v15, %v905_v34  ;;  %v11330_v58 = vcombine.low %v890_v23, %v906_v37  ;;  %v1017_v28 = vld [vmem:[#allocation2 + $0x1d70] sm:$0xff] }
 0x41f   :  { %v1033_v29 = vld [vmem:[#allocation2 + $0x1df0] sm:$0xff] }
 0x420   :  { %7599 = vmatpush1.bf16.msra.mxu0 %v11168_v46  ;;  %7681 = vmatpush1.bf16.msra.mxu1 %v11170_v49  ;;  %v11331_v46 = vcombine.high %v890_v23, %v906_v37  ;;  %v921_v49 = vld [vmem:[#allocation2 + $0x1a70] sm:$0xff]  ;;  %v11457_v34 = vcombine.high %v1017_v28, %v1033_v29 }
 0x421   :  { %7600 = vmatprep.subr.bf16.mxu0 %v11201_v52  ;;  %7682 = vmatprep.subr.bf16.mxu1 %v11203_v54  ;;  %v937_v52 = vld [vmem:[#allocation2 + $0x1af0] sm:$0xff]  ;;  %v922_v54 = vld [vmem:[#allocation2 + $0x1a78] sm:$0xff] }
 0x422   :  { %v12843_v63 = vpop.f32.mrb[20].mxu0  ;;  %v12845_v3 = vpop.f32.mrb[20].mxu1  ;;  %v11361_v59 = vcombine.high %v921_v49, %v937_v52  ;;  %v11360_v2 = vcombine.low %v921_v49, %v937_v52  ;;  %v11362_v5 = vcombine.low %v922_v54, %v938_v55  ;;  %v1049_v37 = vld [vmem:[#allocation2 + $0x1e70] sm:$0xff]  ;;  %v12856_v49 = vld [vmem:[#allocation5] sm:$0xff] }
 0x423   :  { %v12847_v4 = vpop.f32.mrb[21].mxu0  ;;  %v12849_v7 = vpop.f32.mrb[21].mxu1 }
 0x424   :  { %v7300_v8 = vpop.f32.mrb[22].mxu0  ;;  %7601 = vmatpush1.bf16.msra.mxu0 %v11200_v60  ;;  %v7382_v13 = vpop.f32.mrb[22].mxu1  ;;  %7683 = vmatpush1.bf16.msra.mxu1 %v11202_v61  ;;  %v11363_v60 = vcombine.high %v922_v54, %v938_v55  ;;  %v953_v61 = vld [vmem:[#allocation2 + $0x1b70] sm:$0xff]  ;;  %v11456_v54 = vcombine.low %v1017_v28, %v1033_v29  ;;  %v12246_v28 = vld [vmem:[#allocation7 + $0x80] sm:$0xff]   ;;  %v12247_v29 = vld [vmem:[#allocation7 + $0x48] sm:$0xff]  }
 0x425   :  { %v7301_v17 = vpop.f32.mrb[23].mxu0  ;;  %7602 = vmatprep.subr.bf16.mxu0 %v11233_v62  ;;  %v7383_v25 = vpop.f32.mrb[23].mxu1  ;;  %7684 = vmatprep.subr.bf16.mxu1 %v11235_v0  ;;  %v969_v62 = vld [vmem:[#allocation2 + $0x1bf0] sm:$0xff]  ;;  %v954_v0 = vld [vmem:[#allocation2 + $0x1b78] sm:$0xff] }
 0x426   :  { %v11393_v6 = vcombine.high %v953_v61, %v969_v62  ;;  %v11395_v8 = vcombine.high %v954_v0, %v970_v1  ;;  %v1001_v13 = vld [vmem:[#allocation2 + $0x1cf0] sm:$0xff]  ;;  %v1107_v17 = vlaneseq  ;;  %v11392_v25 = vcombine.low %v953_v61, %v969_v62  ;;  %v1082_v62 = vld [vmem:[#allocation2 + $0x1f78] sm:$0xff] }
 0x428   :  { %7603 = vmatpush1.bf16.msra.mxu0 %v11232_v11  ;;  %7685 = vmatpush1.bf16.msra.mxu1 %v11234_v21  ;;  %v985_v11 = vld [vmem:[#allocation2 + $0x1c70] sm:$0xff]  ;;  %v986_v21 = vld [vmem:[#allocation2 + $0x1c78] sm:$0xff] }
 0x429   :  { %7604 = vmatprep.subr.bf16.mxu0 %v11265_v22  ;;  %7686 = vmatprep.subr.bf16.mxu1 %v11267_v26  ;;  %v1002_v22 = vld [vmem:[#allocation2 + $0x1cf8] sm:$0xff]  ;;  %v11394_v26 = vcombine.low %v954_v0, %v970_v1  ;;  %v11425_v12 = vcombine.high %v985_v11, %v1001_v13 }
 0x42a   :  { %v11427_v27 = vcombine.high %v986_v21, %v1002_v22  ;;  %v11426_v15 = vcombine.low %v986_v21, %v1002_v22  ;;  %v1098_v0 = vld [vmem:[#allocation2 + $0x1ff8] sm:$0xff]  ;;  %v12243_v22 = vld [vmem:[#allocation7 + $0x40] sm:$0xff]  }
 0x42b   :  { %v11522_v21 = vcombine.low %v1082_v62, %v1098_v0 }
 0x42c   :  { %7605 = vmatpush1.bf16.msra.mxu0 %v11264_v30  ;;  %7687 = vmatpush1.bf16.msra.mxu1 %v11266_v31  ;;  %v12851_v30 = vshrl.u32 %v1107_v17, 7  ;;  %v1018_v31 = vld [vmem:[#allocation2 + $0x1d78] sm:$0xff] }
 0x42d   :  { %7606 = vmatprep.subr.bf16.mxu0 %v11297_v57  ;;  %7688 = vmatprep.subr.bf16.mxu1 %v11299_v33  ;;  %v1034_v57 = vld [vmem:[#allocation2 + $0x1df8] sm:$0xff]  ;;  %v11424_v33 = vcombine.low %v985_v11, %v1001_v13 }
 0x42e   :  { %v11459_v23 = vcombine.high %v1018_v31, %v1034_v57  ;;  %v12859_v52 = vsub.s32 3, %v12851_v30  ;;  %v11458_v55 = vcombine.low %v1018_v31, %v1034_v57  ;;  %v12249_v57 = vld [vmem:[#allocation7 + $0x8] sm:$0xff]  }
 0x430   :  { %7607 = vmatpush1.bf16.msra.mxu0 %v11296_v40  ;;  %7689 = vmatpush1.bf16.msra.mxu1 %v11298_v41  ;;  %v1065_v40 = vld [vmem:[#allocation2 + $0x1ef0] sm:$0xff]  ;;  %v12854_v41 = vsub.s32 1, %v12851_v30  ;;  %v1122_v1 = vrot.slane %v12856_v49, %v12859_v52 }
 0x431   :  { %7608 = vmatprep.subr.bf16.mxu0 %v11329_v42  ;;  %7690 = vmatprep.subr.bf16.mxu1 %v11331_v46  ;;  %v1050_v42 = vld [vmem:[#allocation2 + $0x1e78] sm:$0xff] }
 0x432   :  { %v1066_v46 = vld [vmem:[#allocation2 + $0x1ef8] sm:$0xff]  ;;  %v1114_v61 = vrot.slane %v12856_v49, %v12854_v41  ;;  %v12137_v13 = vadd.f32 %v12769_v39, %v1122_v1  ;;  %v12248_v39 = vld [vmem:[#allocation7 + $0xc8] sm:$0xff]   ;;  %v12879_v1 = vsub.s32 7, %v12851_v30 }
 0x434   :  { %7609 = vmatpush1.bf16.msra.mxu0 %v11328_v56  ;;  %7691 = vmatpush1.bf16.msra.mxu1 %v11330_v58  ;;  %v11489_v56 = vcombine.high %v1049_v37, %v1065_v40  ;;  %v11491_v58 = vcombine.high %v1050_v42, %v1066_v46  ;;  %v12135_v11 = vadd.f32 %v12767_v36, %v1114_v61  ;;  %v12873_v61 = vsub.s32 2, %v12851_v30 }
 0x435   :  { %7610 = vmatprep.subr.bf16.mxu0 %v11361_v59  ;;  %7692 = vmatprep.subr.bf16.mxu1 %v11363_v60  ;;  %v1081_v59 = vld [vmem:[#allocation2 + $0x1f70] sm:$0xff] }
 0x436   :  { %v1097_v60 = vld [vmem:[#allocation2 + $0x1ff0] sm:$0xff] }
 0x437   :  { %v11520_v17 = vcombine.low %v1081_v59, %v1097_v60 }
 0x438   :  { %7611 = vmatpush1.bf16.msra.mxu0 %v11360_v2  ;;  %7693 = vmatpush1.bf16.msra.mxu1 %v11362_v5  ;;  %v11488_v2 = vcombine.low %v1049_v37, %v1065_v40  ;;  %v11490_v5 = vcombine.low %v1050_v42, %v1066_v46  ;;  %v12254_v37 = vld [vmem:[#allocation7 + $0x90] sm:$0xff]   ;;  %v12255_v40 = vld [vmem:[#allocation7 + $0x58] sm:$0xff]  }
 0x439   :  { %7612 = vmatprep.subr.bf16.mxu0 %v11393_v6  ;;  %7694 = vmatprep.subr.bf16.mxu1 %v11395_v8  ;;  %v11521_v6 = vcombine.high %v1081_v59, %v1097_v60  ;;  %v11523_v8 = vcombine.high %v1082_v62, %v1098_v0  ;;  %v12256_v42 = vld [vmem:[#allocation7 + $0xd8] sm:$0xff]   ;;  %v12262_v59 = vld [vmem:[#allocation7 + $0xa0] sm:$0xff]   ;;  %v12263_v60 = vld [vmem:[#allocation7 + $0x68] sm:$0xff]   ;;  %v12876_v0 = vsub.s32 5, %v12851_v30 }
 0x43a   :  { %v12258_v46 = vld [vmem:[#allocation7 + $0x98] sm:$0xff]   ;;  %v12264_v62 = vld [vmem:[#allocation7 + $0xe8] sm:$0xff]  }
 0x43c   :  { %7613 = vmatpush1.bf16.msra.mxu0 %v11392_v25  ;;  %7695 = vmatpush1.bf16.msra.mxu1 %v11394_v26  ;;  %v12244_v25 = vld [vmem:[#allocation7 + $0xc0] sm:$0xff]   ;;  %v7714_v26 = vmax.f32 %v12135_v11, 0.0  ;;  %v1118_v11 = vrot.slane %v12856_v49, %v12873_v61 }
 0x43d   :  { %7614 = vmatprep.subr.bf16.mxu0 %v11425_v12  ;;  %7696 = vmatprep.subr.bf16.mxu1 %v11427_v27  ;;  %v7716_v12 = vmax.f32 %v12137_v13, 0.0  ;;  %v12245_v27 = vld [vmem:[#allocation7] sm:$0xff]   ;;  %v12268_v13 = vld [vmem:[#allocation7 + $0xf0] sm:$0xff]  }
 0x43e   :  { %v7746_v36 = vpack.c.bf16 %v7714_v26, %v7714_v26  ;;  %v12270_v26 = vld [vmem:[#allocation7 + $0xb0] sm:$0xff]  }
 0x43f   :  { %v7748_v31 = vpack.c.bf16 %v7716_v12, %v7716_v12  ;;  %v12271_v12 = vld [vmem:[#allocation7 + $0x78] sm:$0xff]  }
 0x440   :  { %7615 = vmatpush1.bf16.msra.mxu0 %v11424_v33  ;;  %7697 = vmatpush1.bf16.msra.mxu1 %v11426_v15  ;;  %v12250_v33 = vld [vmem:[#allocation7 + $0x88] sm:$0xff]   ;;  %v12251_v15 = vld [vmem:[#allocation7 + $0x50] sm:$0xff]  }
 0x441   :  { %7616 = vmatprep.subr.bf16.mxu0 %v11457_v34  ;;  %7698 = vmatprep.subr.bf16.mxu1 %v11459_v23  ;;  %v12252_v34 = vld [vmem:[#allocation7 + $0xd0] sm:$0xff]  }
 0x442   :  { %v12253_v23 = vld [vmem:[#allocation7 + $0x10] sm:$0xff]  }
 0x444   :  { %7617 = vmatpush1.bf16.msra.mxu0 %v11456_v54  ;;  %7699 = vmatpush1.bf16.msra.mxu1 %v11458_v55  ;;  %v12259_v54 = vld [vmem:[#allocation7 + $0x60] sm:$0xff]  }
 0x445   :  { %7618 = vmatprep.subr.bf16.mxu0 %v11489_v56  ;;  %7700 = vmatprep.subr.bf16.mxu1 %v11491_v58  ;;  %v12260_v55 = vld [vmem:[#allocation7 + $0xe0] sm:$0xff]   ;;  %v12870_v58 = vsub.s32 0, %v12851_v30 }
 0x446   :  { %v12261_v56 = vld [vmem:[#allocation7 + $0x20] sm:$0xff]  }
 0x448   :  { %7619 = vmatpush1.bf16.msra.mxu0 %v11488_v2  ;;  %7701 = vmatpush1.bf16.msra.mxu1 %v11490_v5  ;;  %v12265_v2 = vld [vmem:[#allocation7 + $0x28] sm:$0xff]   ;;  %v1110_v5 = vrot.slane %v12856_v49, %v12870_v58 }
 0x449   :  { %7620 = vmatprep.subr.bf16.mxu0 %v11521_v6  ;;  %7702 = vmatprep.subr.bf16.mxu1 %v11523_v8  ;;  %v12266_v6 = vld [vmem:[#allocation7 + $0xa8] sm:$0xff]   ;;  %v12267_v8 = vld [vmem:[#allocation7 + $0x70] sm:$0xff]  }
 0x44c   :  { %7621 = vmatpush1.bf16.msra.mxu0 %v11520_v17  ;;  %7703 = vmatpush1.bf16.msra.mxu1 %v11522_v21  ;;  %v1130_v17 = vrot.slane %v12856_v49, %v12876_v0  ;;  %v1138_v21 = vrot.slane %v12856_v49, %v12879_v1 }
 0x44d   :  { %11782 = vmatprep.subr.bf16.mxu0 %v12243_v22  ;;  %11804 = vmatprep.subr.bf16.mxu1 %v12244_v25  ;;  %v12269_v22 = vld [vmem:[#allocation7 + $0x30] sm:$0xff]   ;;  %v12134_v25 = vadd.f32 %v12763_v32, %v1110_v5  ;;  %v12288_v5 = vld [vmem:[#allocation7 + $0x1d8] sm:$0xff]  }
 0x44f   :  { %7623 = vmatmul.mubr.bf16.vlgmr.msra.gmra.mrb[28].mxu0 %v12745_v24  ;;  %7705 = vmatmul.mubr.bf16.vlgmr.msra.gmra.mrb[28].mxu1 %v12745_v24  ;;  %v12257_v24 = vld [vmem:[#allocation7 + $0x18] sm:$0xff]  }
 0x450   :  { %11783 = vmatpush3.bf16.msra.mxu0 %v12245_v27  ;;  %9864 = vmatprep.mubr.bf16.mxu0 %v7746_v36  ;;  %v12136_v27 = vadd.f32 %v12765_v35, %v1118_v11  ;;  %v12141_v36 = vadd.f32 %v12785_v19, %v1138_v21  ;;  %v12277_v35 = vld [vmem:[#allocation7 + $0x100] sm:$0xff]   ;;  %v12279_v19 = vld [vmem:[#allocation7 + $0x148] sm:$0xff]   ;;  %v12894_v21 = vsub.s32 4, %v12851_v30 }
 0x451   :  { %11805 = vmatpush3.bf16.msra.mxu1 %v12246_v28  ;;  %9904 = vmatprep.mubr.bf16.mxu1 %v7748_v31  ;;  %v12272_v28 = vld [vmem:[#allocation7 + $0xf8] sm:$0xff]   ;;  %v7713_v31 = vmax.f32 %v12134_v25, 0.0  ;;  %v12291_v11 = vld [vmem:[#allocation7 + $0x160] sm:$0xff]   ;;  %v12295_v25 = vld [vmem:[#allocation7 + $0x168] sm:$0xff]  }
 0x452   :  { %11784 = vmatprep.subr.bf16.mxu0 %v12247_v29  ;;  %11806 = vmatprep.subr.bf16.mxu1 %v12248_v39  ;;  %v12139_v29 = vadd.f32 %v12783_v16, %v1130_v17  ;;  %v12273_v39 = vld [vmem:[#allocation7 + $0x38] sm:$0xff]   ;;  %v7715_v32 = vmax.f32 %v12136_v27, 0.0  ;;  %v12278_v16 = vld [vmem:[#allocation7 + $0x180] sm:$0xff]   ;;  %v12899_v27 = vld [vmem:[#allocation5 + $0x8] sm:$0xff] }
 0x453   :  { %v12293_v17 = vld [vmem:[#allocation7 + $0x120] sm:$0xff]  }
 0x454   :  { %11785 = vmatpush3.bf16.msra.mxu0 %v12249_v57  ;;  %v12274_v57 = vld [vmem:[#allocation7 + $0xb8] sm:$0xff]  }
 0x455   :  { %11807 = vmatpush3.bf16.msra.mxu1 %v12250_v33  ;;  %11786 = vmatprep.subr.bf16.mxu0 %v12251_v15  ;;  %v12275_v33 = vld [vmem:[#allocation7 + $0x140] sm:$0xff]  }
 0x456   :  { %11808 = vmatprep.subr.bf16.mxu1 %v12252_v34  ;;  %v12276_v15 = vld [vmem:[#allocation7 + $0x1c0] sm:$0xff]   ;;  %v7718_v34 = vmax.f32 %v12139_v29, 0.0  ;;  %v1126_v29 = vrot.slane %v12856_v49, %v12894_v21 }
 0x458   :  { %11787 = vmatpush3.bf16.msra.mxu0 %v12253_v23  ;;  %v7720_v23 = vmax.f32 %v12141_v36, 0.0  ;;  %v12298_v36 = vld [vmem:[#allocation7 + $0x1a8] sm:$0xff]  }
 0x459   :  { %11809 = vmatpush3.bf16.msra.mxu1 %v12254_v37  ;;  %11788 = vmatprep.subr.bf16.mxu0 %v12255_v40  ;;  %v7745_v37 = vpack.c.bf16 %v7713_v31, %v7713_v31  ;;  %v7747_v40 = vpack.c.bf16 %v7715_v32, %v7715_v32  ;;  %v12301_v32 = vld [vmem:[#allocation7 + $0x130] sm:$0xff]  }
 0x45a   :  { %11810 = vmatprep.subr.bf16.mxu1 %v12256_v42  ;;  %v7750_v42 = vpack.c.bf16 %v7718_v34, %v7718_v34  ;;  %v12302_v34 = vld [vmem:[#allocation7 + $0x1b0] sm:$0xff]  }
 0x45c   :  { %11789 = vmatpush3.bf16.msra.mxu0 %v12257_v24  ;;  %v12280_v24 = vld [vmem:[#allocation7 + $0x1c8] sm:$0xff]  }
 0x45d   :  { %11811 = vmatpush3.bf16.msra.mxu1 %v12258_v46  ;;  %11790 = vmatprep.subr.bf16.mxu0 %v12259_v54  ;;  %v7752_v46 = vpack.c.bf16 %v7720_v23, %v7720_v23  ;;  %v12281_v54 = vld [vmem:[#allocation7 + $0x108] sm:$0xff]   ;;  %v12303_v23 = vld [vmem:[#allocation7 + $0x178] sm:$0xff]  }
 0x45e   :  { %11812 = vmatprep.subr.bf16.mxu1 %v12260_v55  ;;  %v12282_v55 = vld [vmem:[#allocation7 + $0x188] sm:$0xff]  }
 0x460   :  { %11791 = vmatpush3.bf16.msra.mxu0 %v12261_v56  ;;  %v12283_v56 = vld [vmem:[#allocation7 + $0x150] sm:$0xff]  }
 0x461   :  { %11813 = vmatpush3.bf16.msra.mxu1 %v12262_v59  ;;  %11792 = vmatprep.subr.bf16.mxu0 %v12263_v60  ;;  %v12284_v59 = vld [vmem:[#allocation7 + $0x1d0] sm:$0xff]  }
 0x462   :  { %11814 = vmatprep.subr.bf16.mxu1 %v12264_v62  ;;  %v12285_v60 = vld [vmem:[#allocation7 + $0x110] sm:$0xff]  }
 0x463   :  { %v12286_v62 = vld [vmem:[#allocation7 + $0x190] sm:$0xff]  }
 0x464   :  { %11793 = vmatpush3.bf16.msra.mxu0 %v12265_v2  ;;  %v12287_v2 = vld [vmem:[#allocation7 + $0x158] sm:$0xff]  }
 0x465   :  { %11815 = vmatpush3.bf16.msra.mxu1 %v12266_v6  ;;  %11794 = vmatprep.subr.bf16.mxu0 %v12267_v8  ;;  %v12289_v6 = vld [vmem:[#allocation7 + $0x118] sm:$0xff]  }
 0x466   :  { %11816 = vmatprep.subr.bf16.mxu1 %v12268_v13  ;;  %v12290_v8 = vld [vmem:[#allocation7 + $0x198] sm:$0xff]   ;;  %v12292_v13 = vld [vmem:[#allocation7 + $0x1e0] sm:$0xff]  }
 0x468   :  { %11795 = vmatpush3.bf16.msra.mxu0 %v12269_v22  ;;  %v12294_v22 = vld [vmem:[#allocation7 + $0x1a0] sm:$0xff]  }
 0x469   :  { %11817 = vmatpush3.bf16.msra.mxu1 %v12270_v26  ;;  %11796 = vmatprep.subr.bf16.mxu0 %v12271_v12  ;;  %v12897_v26 = vsub.s32 6, %v12851_v30  ;;  %v12296_v12 = vld [vmem:[#allocation7 + $0x1e8] sm:$0xff]   ;;  %v1146_v30 = vrot.slane %v12899_v27, %v12854_v41 }
 0x46a   :  { %11818 = vmatprep.subr.bf16.mxu1 %v12272_v28  ;;  %v12297_v28 = vld [vmem:[#allocation7 + $0x128] sm:$0xff]  }
 0x46b   :  { %v1134_v31 = vrot.slane %v12856_v49, %v12897_v26  ;;  %v12304_v49 = vld [vmem:[#allocation7 + $0x1f8] sm:$0xff]  }
 0x46c   :  { %11797 = vmatpush3.bf16.msra.mxu0 %v12273_v39  ;;  %v12299_v39 = vld [vmem:[#allocation7 + $0x170] sm:$0xff]  }
 0x46d   :  { %11819 = vmatpush3.bf16.msra.mxu1 %v12274_v57  ;;  %11826 = vmatprep.subr.bf16.mxu0 %v12275_v33  ;;  %v12300_v57 = vld [vmem:[#allocation7 + $0x1f0] sm:$0xff]   ;;  %v1154_v33 = vrot.slane %v12899_v27, %v12859_v52 }
 0x46e   :  { %11848 = vmatprep.subr.bf16.mxu1 %v12276_v15  ;;  %v12138_v15 = vadd.f32 %v12779_v9, %v1126_v29  ;;  %v12323_v29 = vld [vmem:[#allocation7 + $0x260] sm:$0xff]  }
 0x46f   :  { %9865 = vmatmul.mubr.bf16.vlgmr.msra.gmra.mrb[32].mxu0 %v7745_v37  ;;  %v12143_v37 = vadd.f32 %v12799_v20, %v1146_v30  ;;  %v12310_v20 = vld [vmem:[#allocation7 + $0x280] sm:$0xff]   ;;  %v12328_v30 = vld [vmem:[#allocation7 + $0x2e8] sm:$0xff]  }
 0x470   :  { %9905 = vmatmul.mubr.bf16.vlgmr.msra.gmra.mrb[32].mxu1 %v7747_v40  ;;  %11827 = vmatpush3.bf16.msra.mxu0 %v12277_v35  ;;  %v12140_v35 = vadd.f32 %v12781_v14, %v1134_v31  ;;  %v12305_v40 = vld [vmem:[#allocation7 + $0x138] sm:$0xff]   ;;  %v12309_v14 = vld [vmem:[#allocation7 + $0x200] sm:$0xff]  }
 0x471   :  { %9944 = vmatprep.mubr.bf16.mxu0 %v7750_v42  ;;  %11849 = vmatpush3.bf16.msra.mxu1 %v12278_v16  ;;  %v12145_v16 = vadd.f32 %v12801_v53, %v1154_v33  ;;  %v12306_v42 = vld [vmem:[#allocation7 + $0x1b8] sm:$0xff]   ;;  %v12311_v53 = vld [vmem:[#allocation7 + $0x248] sm:$0xff]   ;;  %v12326_v31 = vld [vmem:[#allocation7 + $0x2a0] sm:$0xff]  }
 0x472   :  { %9984 = vmatprep.mubr.bf16.mxu1 %v7752_v46  ;;  %11828 = vmatprep.subr.bf16.mxu0 %v12279_v19  ;;  %v7717_v19 = vmax.f32 %v12138_v15, 0.0  ;;  %v7719_v9 = vmax.f32 %v12140_v35, 0.0  ;;  %v12308_v46 = vld [vmem:[#allocation7 + $0x2c0] sm:$0xff]   ;;  %v12329_v33 = vld [vmem:[#allocation7 + $0x228] sm:$0xff]  }
 0x473   :  { %11850 = vmatprep.subr.bf16.mxu1 %v12280_v24  ;;  %v12307_v24 = vld [vmem:[#allocation7 + $0x240] sm:$0xff]   ;;  %v12330_v15 = vld [vmem:[#allocation7 + $0x2a8] sm:$0xff]  }
 0x474   :  { %11829 = vmatpush3.bf16.msra.mxu0 %v12281_v54  ;;  %v7722_v54 = vmax.f32 %v12143_v37, 0.0  ;;  %v1162_v37 = vrot.slane %v12899_v27, %v12876_v0 }
 0x475   :  { %11851 = vmatpush3.bf16.msra.mxu1 %v12282_v55  ;;  %11830 = vmatprep.subr.bf16.mxu0 %v12283_v56  ;;  %v7724_v55 = vmax.f32 %v12145_v16, 0.0  ;;  %v7749_v56 = vpack.c.bf16 %v7717_v19, %v7717_v19  ;;  %v1170_v19 = vrot.slane %v12899_v27, %v12879_v1 }
 0x476   :  { %11852 = vmatprep.subr.bf16.mxu1 %v12284_v59  ;;  %v7751_v59 = vpack.c.bf16 %v7719_v9, %v7719_v9  ;;  %v12333_v9 = vld [vmem:[#allocation7 + $0x230] sm:$0xff]  }
 0x478   :  { %11831 = vmatpush3.bf16.msra.mxu0 %v12285_v60  ;;  %v7754_v60 = vpack.c.bf16 %v7722_v54, %v7722_v54 }
 0x479   :  { %11853 = vmatpush3.bf16.msra.mxu1 %v12286_v62  ;;  %11832 = vmatprep.subr.bf16.mxu0 %v12287_v2  ;;  %v12312_v62 = vld [vmem:[#allocation7 + $0x2c8] sm:$0xff]   ;;  %v7756_v2 = vpack.c.bf16 %v7724_v55, %v7724_v55 }
 0x47a   :  { %11854 = vmatprep.subr.bf16.mxu1 %v12288_v5  ;;  %v12313_v5 = vld [vmem:[#allocation7 + $0x208] sm:$0xff]  }
 0x47c   :  { %11833 = vmatpush3.bf16.msra.mxu0 %v12289_v6  ;;  %v12314_v6 = vld [vmem:[#allocation7 + $0x288] sm:$0xff]  }
 0x47d   :  { %11855 = vmatpush3.bf16.msra.mxu1 %v12290_v8  ;;  %11834 = vmatprep.subr.bf16.mxu0 %v12291_v11  ;;  %v12315_v8 = vld [vmem:[#allocation7 + $0x250] sm:$0xff]  }
 0x47e   :  { %11856 = vmatprep.subr.bf16.mxu1 %v12292_v13  ;;  %v12316_v11 = vld [vmem:[#allocation7 + $0x2d0] sm:$0xff]  }
 0x47f   :  { %v12317_v13 = vld [vmem:[#allocation7 + $0x210] sm:$0xff]  }
 0x480   :  { %11835 = vmatpush3.bf16.msra.mxu0 %v12293_v17  ;;  %v12318_v17 = vld [vmem:[#allocation7 + $0x290] sm:$0xff]  }
 0x481   :  { %11857 = vmatpush3.bf16.msra.mxu1 %v12294_v22  ;;  %11836 = vmatprep.subr.bf16.mxu0 %v12295_v25  ;;  %v12319_v22 = vld [vmem:[#allocation7 + $0x258] sm:$0xff]  }
 0x482   :  { %11858 = vmatprep.subr.bf16.mxu1 %v12296_v12  ;;  %v12320_v25 = vld [vmem:[#allocation7 + $0x2d8] sm:$0xff]  }
 0x483   :  { %v12321_v12 = vld [vmem:[#allocation7 + $0x218] sm:$0xff]  }
 0x484   :  { %11837 = vmatpush3.bf16.msra.mxu0 %v12297_v28  ;;  %v12322_v28 = vld [vmem:[#allocation7 + $0x298] sm:$0xff]  }
 0x485   :  { %11859 = vmatpush3.bf16.msra.mxu1 %v12298_v36  ;;  %11838 = vmatprep.subr.bf16.mxu0 %v12299_v39  ;;  %v12324_v36 = vld [vmem:[#allocation7 + $0x2e0] sm:$0xff]  }
 0x486   :  { %11860 = vmatprep.subr.bf16.mxu1 %v12300_v57  ;;  %v12325_v39 = vld [vmem:[#allocation7 + $0x220] sm:$0xff]   ;;  %v12327_v57 = vld [vmem:[#allocation7 + $0x268] sm:$0xff]  }
 0x488   :  { %11839 = vmatpush3.bf16.msra.mxu0 %v12301_v32  ;;  %v1142_v32 = vrot.slane %v12899_v27, %v12870_v58 }
 0x489   :  { %11861 = vmatpush3.bf16.msra.mxu1 %v12302_v34  ;;  %11840 = vmatprep.subr.bf16.mxu0 %v12303_v23  ;;  %v12331_v34 = vld [vmem:[#allocation7 + $0x270] sm:$0xff]   ;;  %v1150_v23 = vrot.slane %v12899_v27, %v12873_v61 }
 0x48a   :  { %11862 = vmatprep.subr.bf16.mxu1 %v12304_v49  ;;  %v12332_v49 = vld [vmem:[#allocation7 + $0x2f0] sm:$0xff]  }
 0x48c   :  { %11841 = vmatpush3.bf16.msra.mxu0 %v12305_v40 }
 0x48d   :  { %11863 = vmatpush3.bf16.msra.mxu1 %v12306_v42  ;;  %11870 = vmatprep.subr.bf16.mxu0 %v12307_v24 }
 0x48e   :  { %11892 = vmatprep.subr.bf16.mxu1 %v12308_v46  ;;  %v12142_v46 = vadd.f32 %v12795_v10, %v1142_v32  ;;  %v12338_v10 = vld [vmem:[#allocation7 + $0x2b8] sm:$0xff]  }
 0x48f   :  { %9945 = vmatmul.mubr.bf16.vlgmr.msra.gmra.mrb[36].mxu0 %v7749_v56  ;;  %v12335_v56 = vld [vmem:[#allocation7 + $0x278] sm:$0xff]  }
 0x490   :  { %9985 = vmatmul.mubr.bf16.vlgmr.msra.gmra.mrb[36].mxu1 %v7751_v59  ;;  %11871 = vmatpush3.bf16.msra.mxu0 %v12309_v14  ;;  %v12334_v14 = vld [vmem:[#allocation7 + $0x2b0] sm:$0xff]   ;;  %v12351_v32 = vld [vmem:[#allocation7 + $0x358] sm:$0xff]  }
 0x491   :  { %10024 = vmatprep.mubr.bf16.mxu0 %v7754_v60  ;;  %11893 = vmatpush3.bf16.msra.mxu1 %v12310_v20  ;;  %v12144_v20 = vadd.f32 %v12797_v18, %v1150_v23  ;;  %v12147_v60 = vadd.f32 %v12815_v48, %v1162_v37  ;;  %v12341_v18 = vld [vmem:[#allocation7 + $0x300] sm:$0xff]   ;;  %v12354_v23 = vld [vmem:[#allocation7 + $0x398] sm:$0xff]  }
 0x492   :  { %10064 = vmatprep.mubr.bf16.mxu1 %v7756_v2  ;;  %11872 = vmatprep.subr.bf16.mxu0 %v12311_v53  ;;  %v12336_v53 = vld [vmem:[#allocation7 + $0x2f8] sm:$0xff]   ;;  %v12342_v48 = vld [vmem:[#allocation7 + $0x380] sm:$0xff]  }
 0x493   :  { %11894 = vmatprep.subr.bf16.mxu1 %v12312_v62  ;;  %v12149_v62 = vadd.f32 %v12817_v51, %v1170_v19  ;;  %v12337_v2 = vld [vmem:[#allocation7 + $0x238] sm:$0xff]   ;;  %v12343_v51 = vld [vmem:[#allocation7 + $0x348] sm:$0xff]   ;;  %v12356_v37 = vld [vmem:[#allocation7 + $0x3e0] sm:$0xff]  }
 0x494   :  { %11873 = vmatpush3.bf16.msra.mxu0 %v12313_v5  ;;  %v7721_v5 = vmax.f32 %v12142_v46, 0.0  ;;  %v12357_v19 = vld [vmem:[#allocation7 + $0x320] sm:$0xff]   ;;  %v12360_v46 = vld [vmem:[#allocation7 + $0x3e8] sm:$0xff]  }
 0x495   :  { %11895 = vmatpush3.bf16.msra.mxu1 %v12314_v6  ;;  %11874 = vmatprep.subr.bf16.mxu0 %v12315_v8  ;;  %v12339_v6 = vld [vmem:[#allocation7 + $0x340] sm:$0xff]   ;;  %v7723_v8 = vmax.f32 %v12144_v20, 0.0  ;;  %v12363_v20 = vld [vmem:[#allocation7 + $0x370] sm:$0xff]  }
 0x496   :  { %11896 = vmatprep.subr.bf16.mxu1 %v12316_v11  ;;  %v12340_v11 = vld [vmem:[#allocation7 + $0x3c0] sm:$0xff]  }
 0x498   :  { %11875 = vmatpush3.bf16.msra.mxu0 %v12317_v13  ;;  %v7726_v13 = vmax.f32 %v12147_v60, 0.0 }
 0x499   :  { %11897 = vmatpush3.bf16.msra.mxu1 %v12318_v17  ;;  %11876 = vmatprep.subr.bf16.mxu0 %v12319_v22  ;;  %v7728_v17 = vmax.f32 %v12149_v62, 0.0  ;;  %v7753_v22 = vpack.c.bf16 %v7721_v5, %v7721_v5 }
 0x49a   :  { %11898 = vmatprep.subr.bf16.mxu1 %v12320_v25  ;;  %v7755_v25 = vpack.c.bf16 %v7723_v8, %v7723_v8 }
 0x49c   :  { %11877 = vmatpush3.bf16.msra.mxu0 %v12321_v12  ;;  %v7758_v12 = vpack.c.bf16 %v7726_v13, %v7726_v13 }
 0x49d   :  { %11899 = vmatpush3.bf16.msra.mxu1 %v12322_v28  ;;  %11878 = vmatprep.subr.bf16.mxu0 %v12323_v29  ;;  %v12344_v28 = vld [vmem:[#allocation7 + $0x3c8] sm:$0xff]   ;;  %v7760_v29 = vpack.c.bf16 %v7728_v17, %v7728_v17  ;;  %v12369_v17 = vld [vmem:[#allocation7 + $0x338] sm:$0xff]  }
 0x49e   :  { %11900 = vmatprep.subr.bf16.mxu1 %v12324_v36  ;;  %v12345_v36 = vld [vmem:[#allocation7 + $0x308] sm:$0xff]  }
 0x4a0   :  { %11879 = vmatpush3.bf16.msra.mxu0 %v12325_v39  ;;  %v12346_v39 = vld [vmem:[#allocation7 + $0x388] sm:$0xff]  }
 0x4a1   :  { %11901 = vmatpush3.bf16.msra.mxu1 %v12326_v31  ;;  %11880 = vmatprep.subr.bf16.mxu0 %v12327_v57  ;;  %v12347_v31 = vld [vmem:[#allocation7 + $0x350] sm:$0xff]  }
 0x4a2   :  { %v12917_v35 = vpop.f32.mrb[24].mxu0  ;;  %11902 = vmatprep.subr.bf16.mxu1 %v12328_v30  ;;  %v12921_v16 = vpop.f32.mrb[24].mxu1  ;;  %v12348_v57 = vld [vmem:[#allocation7 + $0x3d0] sm:$0xff]  }
 0x4a3   :  { %v12923_v40 = vpop.f32.mrb[25].mxu0  ;;  %v12927_v42 = vpop.f32.mrb[25].mxu1  ;;  %v12349_v30 = vld [vmem:[#allocation7 + $0x310] sm:$0xff]  }
 0x4a4   :  { %v7464_v24 = vpop.f32.mrb[26].mxu0  ;;  %11881 = vmatpush3.bf16.msra.mxu0 %v12329_v33  ;;  %v7546_v54 = vpop.f32.mrb[26].mxu1  ;;  %v12350_v33 = vld [vmem:[#allocation7 + $0x390] sm:$0xff]  }
 0x4a5   :  { %11903 = vmatpush3.bf16.msra.mxu1 %v12330_v15  ;;  %v7465_v55 = vpop.f32.mrb[27].mxu0  ;;  %11882 = vmatprep.subr.bf16.mxu0 %v12331_v34  ;;  %v7547_v59 = vpop.f32.mrb[27].mxu1  ;;  %v12352_v15 = vld [vmem:[#allocation7 + $0x3d8] sm:$0xff]   ;;  %v12358_v24 = vld [vmem:[#allocation7 + $0x3a0] sm:$0xff]   ;;  %v12933_v54 = vld [vmem:[#allocation5 + $0x10] sm:$0xff] }
 0x4a6   :  { %11904 = vmatprep.subr.bf16.mxu1 %v12332_v49  ;;  %v12353_v34 = vld [vmem:[#allocation7 + $0x318] sm:$0xff]   ;;  %v12355_v49 = vld [vmem:[#allocation7 + $0x360] sm:$0xff]   ;;  %v12361_v55 = vld [vmem:[#allocation7 + $0x328] sm:$0xff]   ;;  %v1166_v59 = vrot.slane %v12899_v27, %v12897_v26  ;;  %v1178_v60 = vrot.slane %v12933_v54, %v12854_v41  ;;  %v1186_v62 = vrot.slane %v12933_v54, %v12859_v52 }
 0x4a8   :  { %11883 = vmatpush3.bf16.msra.mxu0 %v12333_v9  ;;  %v12359_v9 = vld [vmem:[#allocation7 + $0x368] sm:$0xff]   ;;  %v12148_v8 = vadd.f32 %v12813_v47, %v1166_v59  ;;  %v12153_v13 = vadd.f32 %v12833_v50, %v1186_v62  ;;  %v12373_v47 = vld [vmem:[#allocation7 + $0x400] sm:$0xff]   ;;  %v1174_v59 = vrot.slane %v12933_v54, %v12870_v58  ;;  %v1182_v62 = vrot.slane %v12933_v54, %v12873_v61 }
 0x4a9   :  { %11905 = vmatpush3.bf16.msra.mxu1 %v12334_v14  ;;  %11884 = vmatprep.subr.bf16.mxu0 %v12335_v56  ;;  %v1158_v14 = vrot.slane %v12899_v27, %v12894_v21  ;;  %v12362_v56 = vld [vmem:[#allocation7 + $0x3a8] sm:$0xff]   ;;  %v12368_v27 = vld [vmem:[#allocation7 + $0x3f8] sm:$0xff]  }
 0x4aa   :  { %11906 = vmatprep.subr.bf16.mxu1 %v12336_v53  ;;  %v12364_v53 = vld [vmem:[#allocation7 + $0x3f0] sm:$0xff]   ;;  %v12375_v50 = vld [vmem:[#allocation7 + $0x448] sm:$0xff]  }
 0x4ab   :  { %v12146_v5 = vadd.f32 %v12811_v43, %v1158_v14  ;;  %v7727_v43 = vmax.f32 %v12148_v8, 0.0  ;;  %v12391_v14 = vld [vmem:[#allocation7 + $0x468] sm:$0xff]   ;;  %v12150_v8 = vadd.f32 %v12827_v38, %v1174_v59  ;;  %v1190_v59 = vrot.slane %v12933_v54, %v12894_v21 }
 0x4ac   :  { %11885 = vmatpush3.bf16.msra.mxu0 %v12337_v2  ;;  %v12365_v2 = vld [vmem:[#allocation7 + $0x330] sm:$0xff]  }
 0x4ad   :  { %11907 = vmatpush3.bf16.msra.mxu1 %v12338_v10  ;;  %11914 = vmatprep.subr.bf16.mxu0 %v12339_v6  ;;  %v12366_v10 = vld [vmem:[#allocation7 + $0x3b0] sm:$0xff]   ;;  %v12367_v6 = vld [vmem:[#allocation7 + $0x378] sm:$0xff]  }
 0x4ae   :  { %11936 = vmatprep.subr.bf16.mxu1 %v12340_v11  ;;  %v12151_v11 = vadd.f32 %v12831_v45, %v1178_v60  ;;  %v12374_v45 = vld [vmem:[#allocation7 + $0x480] sm:$0xff]   ;;  %v12395_v60 = vld [vmem:[#allocation7 + $0x470] sm:$0xff]  }
 0x4af   :  { %10025 = vmatmul.mubr.bf16.vlgmr.msra.gmra.mrb[40].mxu0 %v7753_v22  ;;  %v12370_v22 = vld [vmem:[#allocation7 + $0x3b8] sm:$0xff]  }
 0x4b0   :  { %10065 = vmatmul.mubr.bf16.vlgmr.msra.gmra.mrb[40].mxu1 %v7755_v25  ;;  %11915 = vmatpush3.bf16.msra.mxu0 %v12341_v18  ;;  %v7725_v18 = vmax.f32 %v12146_v5, 0.0  ;;  %v12372_v25 = vld [vmem:[#allocation7 + $0x4c0] sm:$0xff]   ;;  %v1194_v5 = vrot.slane %v12933_v54, %v12876_v0 }
 0x4b1   :  { %10104 = vmatprep.mubr.bf16.mxu0 %v7758_v12  ;;  %11937 = vmatpush3.bf16.msra.mxu1 %v12342_v48  ;;  %v12371_v48 = vld [vmem:[#allocation7 + $0x440] sm:$0xff]   ;;  %v7732_v12 = vmax.f32 %v12153_v13, 0.0  ;;  %v12152_v13 = vadd.f32 %v12829_v44, %v1182_v62  ;;  %v1198_v62 = vrot.slane %v12933_v54, %v12897_v26 }
 0x4b2   :  { %10144 = vmatprep.mubr.bf16.mxu1 %v7760_v29  ;;  %11916 = vmatprep.subr.bf16.mxu0 %v12343_v51  ;;  %v7730_v51 = vmax.f32 %v12151_v11, 0.0  ;;  %v7759_v29 = vpack.c.bf16 %v7727_v43, %v7727_v43  ;;  %v12399_v11 = vld [vmem:[#allocation7 + $0x478] sm:$0xff]   ;;  %v7729_v43 = vmax.f32 %v12150_v8, 0.0  ;;  %v12405_v44 = vld [vmem:[#allocation7 + $0x500] sm:$0xff]   ;;  %v12154_v8 = vadd.f32 %v12843_v63, %v1190_v59 }
 0x4b3   :  { %11938 = vmatprep.subr.bf16.mxu1 %v12344_v28  ;;  %v7757_v28 = vpack.c.bf16 %v7725_v18, %v7725_v18  ;;  %v12155_v18 = vadd.f32 %v12847_v4, %v1194_v5  ;;  %v7731_v38 = vmax.f32 %v12152_v13, 0.0  ;;  %v12406_v4 = vld [vmem:[#allocation7 + $0x580] sm:$0xff]   ;;  %v12156_v13 = vadd.f32 %v12845_v3, %v1198_v62 }
 0x4b4   :  { %11917 = vmatpush3.bf16.msra.mxu0 %v12345_v36  ;;  %v7762_v36 = vpack.c.bf16 %v7730_v51, %v7730_v51  ;;  %v12403_v51 = vld [vmem:[#allocation7 + $0x540] sm:$0xff]  }
 0x4b5   :  { %11939 = vmatpush3.bf16.msra.mxu1 %v12346_v39  ;;  %11918 = vmatprep.subr.bf16.mxu0 %v12347_v31  ;;  %v12376_v39 = vld [vmem:[#allocation7 + $0x4c8] sm:$0xff]   ;;  %v7764_v31 = vpack.c.bf16 %v7732_v12, %v7732_v12  ;;  %v12404_v12 = vld [vmem:[#allocation7 + $0x5c0] sm:$0xff]   ;;  %v7735_v63 = vmax.f32 %v12156_v13, 0.0 }
 0x4b6   :  { %11940 = vmatprep.subr.bf16.mxu1 %v12348_v57  ;;  %v12377_v57 = vld [vmem:[#allocation7 + $0x408] sm:$0xff]   ;;  %v12437_v3 = vld [vmem:[#allocation7 + $0x600] sm:$0xff]  }
 0x4b8   :  { %11919 = vmatpush3.bf16.msra.mxu0 %v12349_v30  ;;  %v12378_v30 = vld [vmem:[#allocation7 + $0x488] sm:$0xff]  }
 0x4b9   :  { %11941 = vmatpush3.bf16.msra.mxu1 %v12350_v33  ;;  %11920 = vmatprep.subr.bf16.mxu0 %v12351_v32  ;;  %v12379_v33 = vld [vmem:[#allocation7 + $0x450] sm:$0xff]  }
 0x4ba   :  { %11942 = vmatprep.subr.bf16.mxu1 %v12352_v15  ;;  %v12380_v32 = vld [vmem:[#allocation7 + $0x4d0] sm:$0xff]  }
 0x4bb   :  { %v12381_v15 = vld [vmem:[#allocation7 + $0x410] sm:$0xff]  }
 0x4bc   :  { %11921 = vmatpush3.bf16.msra.mxu0 %v12353_v34  ;;  %v12382_v34 = vld [vmem:[#allocation7 + $0x490] sm:$0xff]  }
 0x4bd   :  { %11943 = vmatpush3.bf16.msra.mxu1 %v12354_v23  ;;  %11922 = vmatprep.subr.bf16.mxu0 %v12355_v49  ;;  %v12383_v23 = vld [vmem:[#allocation7 + $0x458] sm:$0xff]  }
 0x4be   :  { %11944 = vmatprep.subr.bf16.mxu1 %v12356_v37  ;;  %v12384_v49 = vld [vmem:[#allocation7 + $0x4d8] sm:$0xff]  }
 0x4bf   :  { %v12385_v37 = vld [vmem:[#allocation7 + $0x418] sm:$0xff]  }
 0x4c0   :  { %11923 = vmatpush3.bf16.msra.mxu0 %v12357_v19  ;;  %v12386_v19 = vld [vmem:[#allocation7 + $0x498] sm:$0xff]  }
 0x4c1   :  { %11945 = vmatpush3.bf16.msra.mxu1 %v12358_v24  ;;  %11924 = vmatprep.subr.bf16.mxu0 %v12359_v9  ;;  %v12387_v24 = vld [vmem:[#allocation7 + $0x460] sm:$0xff]  }
 0x4c2   :  { %11946 = vmatprep.subr.bf16.mxu1 %v12360_v46  ;;  %v12388_v9 = vld [vmem:[#allocation7 + $0x4e0] sm:$0xff]  }
 0x4c3   :  { %v12389_v46 = vld [vmem:[#allocation7 + $0x420] sm:$0xff]  }
 0x4c4   :  { %11925 = vmatpush3.bf16.msra.mxu0 %v12361_v55  ;;  %v12390_v55 = vld [vmem:[#allocation7 + $0x4a0] sm:$0xff]  }
 0x4c5   :  { %11947 = vmatpush3.bf16.msra.mxu1 %v12362_v56  ;;  %11926 = vmatprep.subr.bf16.mxu0 %v12363_v20  ;;  %v12392_v56 = vld [vmem:[#allocation7 + $0x4e8] sm:$0xff]  }
 0x4c6   :  { %11948 = vmatprep.subr.bf16.mxu1 %v12364_v53  ;;  %v12393_v20 = vld [vmem:[#allocation7 + $0x428] sm:$0xff]  }
 0x4c7   :  { %v12394_v53 = vld [vmem:[#allocation7 + $0x4a8] sm:$0xff]  }
 0x4c8   :  { %11927 = vmatpush3.bf16.msra.mxu0 %v12365_v2  ;;  %v12396_v2 = vld [vmem:[#allocation7 + $0x4f0] sm:$0xff]  }
 0x4c9   :  { %11949 = vmatpush3.bf16.msra.mxu1 %v12366_v10  ;;  %11928 = vmatprep.subr.bf16.mxu0 %v12367_v6  ;;  %v1202_v10 = vrot.slane %v12933_v54, %v12879_v1  ;;  %v12397_v6 = vld [vmem:[#allocation7 + $0x430] sm:$0xff]   ;;  %v12432_v54 = vld [vmem:[#allocation7 + $0x5f8] sm:$0xff]  }
 0x4ca   :  { %11950 = vmatprep.subr.bf16.mxu1 %v12368_v27  ;;  %v12398_v27 = vld [vmem:[#allocation7 + $0x4b0] sm:$0xff]  }
 0x4cc   :  { %11929 = vmatpush3.bf16.msra.mxu0 %v12369_v17  ;;  %v12400_v17 = vld [vmem:[#allocation7 + $0x4f8] sm:$0xff]  }
 0x4cd   :  { %11951 = vmatpush3.bf16.msra.mxu1 %v12370_v22  ;;  %11958 = vmatprep.subr.bf16.mxu0 %v12371_v48  ;;  %v12157_v22 = vadd.f32 %v12849_v7, %v1202_v10  ;;  %v12401_v48 = vld [vmem:[#allocation7 + $0x438] sm:$0xff]   ;;  %v12407_v7 = vld [vmem:[#allocation7 + $0x548] sm:$0xff]  }
 0x4ce   :  { %11980 = vmatprep.subr.bf16.mxu1 %v12372_v25  ;;  %v12402_v25 = vld [vmem:[#allocation7 + $0x4b8] sm:$0xff]  }
 0x4cf   :  { %10105 = vmatmul.mubr.bf16.vlgmr.msra.gmra.mrb[44].mxu0 %v7757_v28  ;;  %v7736_v28 = vmax.f32 %v12157_v22, 0.0  ;;  %v7733_v22 = vmax.f32 %v12154_v8, 0.0  ;;  %v12463_v8 = vld [vmem:[#allocation7 + $0x678] sm:$0xff]  }
 0x4d0   :  { %10145 = vmatmul.mubr.bf16.vlgmr.msra.gmra.mrb[44].mxu1 %v7759_v29  ;;  %11959 = vmatpush3.bf16.msra.mxu0 %v12373_v47  ;;  %v7734_v47 = vmax.f32 %v12155_v18, 0.0  ;;  %v7763_v29 = vpack.c.bf16 %v7731_v38, %v7731_v38 }
 0x4d1   :  { %10184 = vmatprep.mubr.bf16.mxu0 %v7762_v36  ;;  %11981 = vmatpush3.bf16.msra.mxu1 %v12374_v45  ;;  %v7761_v45 = vpack.c.bf16 %v7729_v43, %v7729_v43  ;;  %v12408_v36 = vld [vmem:[#allocation7 + $0x5c8] sm:$0xff]   ;;  %v12436_v43 = vld [vmem:[#allocation7 + $0x6c0] sm:$0xff]   ;;  %v7765_v38 = vpack.c.bf16 %v7733_v22, %v7733_v22 }
 0x4d2   :  { %10224 = vmatprep.mubr.bf16.mxu1 %v7764_v31  ;;  %11960 = vmatprep.subr.bf16.mxu0 %v12375_v50  ;;  %v7766_v50 = vpack.c.bf16 %v7734_v47, %v7734_v47  ;;  %v12409_v31 = vld [vmem:[#allocation7 + $0x508] sm:$0xff]   ;;  %v12468_v22 = vld [vmem:[#allocation7 + $0x7c0] sm:$0xff]  }
 0x4d3   :  { %11982 = vmatprep.subr.bf16.mxu1 %v12376_v39  ;;  %v7768_v39 = vpack.c.bf16 %v7736_v28, %v7736_v28  ;;  %v12440_v28 = vld [vmem:[#allocation7 + $0x6c8] sm:$0xff]  }
 0x4d4   :  { %11961 = vmatpush3.bf16.msra.mxu0 %v12377_v57  ;;  %v12410_v57 = vld [vmem:[#allocation7 + $0x588] sm:$0xff]  }
 0x4d5   :  { %11983 = vmatpush3.bf16.msra.mxu1 %v12378_v30  ;;  %11962 = vmatprep.subr.bf16.mxu0 %v12379_v33  ;;  %v12411_v30 = vld [vmem:[#allocation7 + $0x550] sm:$0xff]  }
 0x4d6   :  { %11984 = vmatprep.subr.bf16.mxu1 %v12380_v32  ;;  %v12412_v33 = vld [vmem:[#allocation7 + $0x5d0] sm:$0xff]  }
 0x4d7   :  { %v12413_v32 = vld [vmem:[#allocation7 + $0x510] sm:$0xff]  }
 0x4d8   :  { %11963 = vmatpush3.bf16.msra.mxu0 %v12381_v15  ;;  %v12414_v15 = vld [vmem:[#allocation7 + $0x590] sm:$0xff]  }
 0x4d9   :  { %11985 = vmatpush3.bf16.msra.mxu1 %v12382_v34  ;;  %11964 = vmatprep.subr.bf16.mxu0 %v12383_v23  ;;  %v12415_v34 = vld [vmem:[#allocation7 + $0x558] sm:$0xff]  }
 0x4da   :  { %11986 = vmatprep.subr.bf16.mxu1 %v12384_v49  ;;  %v12416_v23 = vld [vmem:[#allocation7 + $0x5d8] sm:$0xff]  }
 0x4db   :  { %v12417_v49 = vld [vmem:[#allocation7 + $0x518] sm:$0xff]  }
 0x4dc   :  { %11965 = vmatpush3.bf16.msra.mxu0 %v12385_v37  ;;  %v12418_v37 = vld [vmem:[#allocation7 + $0x598] sm:$0xff]  }
 0x4dd   :  { %11987 = vmatpush3.bf16.msra.mxu1 %v12386_v19  ;;  %11966 = vmatprep.subr.bf16.mxu0 %v12387_v24  ;;  %v12419_v19 = vld [vmem:[#allocation7 + $0x560] sm:$0xff]  }
 0x4de   :  { %11988 = vmatprep.subr.bf16.mxu1 %v12388_v9  ;;  %v12420_v24 = vld [vmem:[#allocation7 + $0x5e0] sm:$0xff]  }
 0x4df   :  { %v12421_v9 = vld [vmem:[#allocation7 + $0x520] sm:$0xff]  }
 0x4e0   :  { %11967 = vmatpush3.bf16.msra.mxu0 %v12389_v46  ;;  %v12422_v46 = vld [vmem:[#allocation7 + $0x5a0] sm:$0xff]  }
 0x4e1   :  { %11989 = vmatpush3.bf16.msra.mxu1 %v12390_v55  ;;  %11968 = vmatprep.subr.bf16.mxu0 %v12391_v14  ;;  %v12423_v55 = vld [vmem:[#allocation7 + $0x568] sm:$0xff]  }
 0x4e2   :  { %11990 = vmatprep.subr.bf16.mxu1 %v12392_v56  ;;  %v12424_v14 = vld [vmem:[#allocation7 + $0x5e8] sm:$0xff]   ;;  %v12959_v56 = vld [vmem:[#allocation5 + $0x18] sm:$0xff] }
 0x4e3   :  { %v1210_v5 = vrot.slane %v12959_v56, %v12854_v41  ;;  %v1218_v10 = vrot.slane %v12959_v56, %v12859_v52  ;;  %v12433_v41 = vld [vmem:[#allocation7 + $0x538] sm:$0xff]   ;;  %v1226_v59 = vrot.slane %v12959_v56, %v12876_v0 }
 0x4e4   :  { %11969 = vmatpush3.bf16.msra.mxu0 %v12393_v20  ;;  %v12425_v20 = vld [vmem:[#allocation7 + $0x528] sm:$0xff]   ;;  %v12434_v52 = vld [vmem:[#allocation7 + $0x5b8] sm:$0xff]  }
 0x4e5   :  { %11991 = vmatpush3.bf16.msra.mxu1 %v12394_v53  ;;  %11970 = vmatprep.subr.bf16.mxu0 %v12395_v60  ;;  %v12426_v53 = vld [vmem:[#allocation7 + $0x5a8] sm:$0xff]   ;;  %v12427_v60 = vld [vmem:[#allocation7 + $0x570] sm:$0xff]   ;;  %v12161_v18 = vadd.f32 %v12927_v42, %v1218_v10  ;;  %v12464_v0 = vld [vmem:[#allocation7 + $0x6f8] sm:$0xff]  }
 0x4e6   :  { %11992 = vmatprep.subr.bf16.mxu1 %v12396_v2  ;;  %v12428_v2 = vld [vmem:[#allocation7 + $0x5f0] sm:$0xff]   ;;  %v12439_v42 = vld [vmem:[#allocation7 + $0x648] sm:$0xff]  }
 0x4e8   :  { %11971 = vmatpush3.bf16.msra.mxu0 %v12397_v6  ;;  %v12429_v6 = vld [vmem:[#allocation7 + $0x530] sm:$0xff]  }
 0x4e9   :  { %11993 = vmatpush3.bf16.msra.mxu1 %v12398_v27  ;;  %11972 = vmatprep.subr.bf16.mxu0 %v12399_v11  ;;  %v12430_v27 = vld [vmem:[#allocation7 + $0x5b0] sm:$0xff]   ;;  %v12431_v11 = vld [vmem:[#allocation7 + $0x578] sm:$0xff]  }
 0x4ea   :  { %11994 = vmatprep.subr.bf16.mxu1 %v12400_v17  ;;  %v12159_v17 = vadd.f32 %v12923_v40, %v1210_v5  ;;  %v12438_v40 = vld [vmem:[#allocation7 + $0x680] sm:$0xff]  }
 0x4ec   :  { %11973 = vmatpush3.bf16.msra.mxu0 %v12401_v48  ;;  %v12435_v48 = vld [vmem:[#allocation7 + $0x640] sm:$0xff]  }
 0x4ed   :  { %11995 = vmatpush3.bf16.msra.mxu1 %v12402_v25  ;;  %12002 = vmatprep.subr.bf16.mxu0 %v12403_v51  ;;  %v7738_v25 = vmax.f32 %v12159_v17, 0.0  ;;  %v7740_v51 = vmax.f32 %v12161_v18, 0.0  ;;  %v12466_v18 = vld [vmem:[#allocation7 + $0x6b8] sm:$0xff]  }
 0x4ee   :  { %12024 = vmatprep.subr.bf16.mxu1 %v12404_v12  ;;  %v7767_v12 = vpack.c.bf16 %v7735_v63, %v7735_v63  ;;  %v12469_v63 = vld [vmem:[#allocation7 + $0x700] sm:$0xff]  }
 0x4ef   :  { %10185 = vmatmul.mubr.bf16.vlgmr.msra.gmra.mrb[48].mxu0 %v7761_v45  ;;  %v7770_v47 = vpack.c.bf16 %v7738_v25, %v7738_v25  ;;  %v12441_v45 = vld [vmem:[#allocation7 + $0x608] sm:$0xff]  }
 0x4f0   :  { %10225 = vmatmul.mubr.bf16.vlgmr.msra.gmra.mrb[48].mxu1 %v7763_v29  ;;  %12003 = vmatpush3.bf16.msra.mxu0 %v12405_v44  ;;  %v7772_v44 = vpack.c.bf16 %v7740_v51, %v7740_v51  ;;  %v12443_v29 = vld [vmem:[#allocation7 + $0x650] sm:$0xff]   ;;  %v12471_v51 = vld [vmem:[#allocation7 + $0x748] sm:$0xff]  }
 0x4f1   :  { %10264 = vmatprep.mubr.bf16.mxu0 %v7766_v50  ;;  %12025 = vmatpush3.bf16.msra.mxu1 %v12406_v4  ;;  %v12442_v4 = vld [vmem:[#allocation7 + $0x688] sm:$0xff]   ;;  %v12445_v50 = vld [vmem:[#allocation7 + $0x610] sm:$0xff]  }
 0x4f2   :  { %10304 = vmatprep.mubr.bf16.mxu1 %v7768_v39  ;;  %12004 = vmatprep.subr.bf16.mxu0 %v12407_v7  ;;  %v12444_v7 = vld [vmem:[#allocation7 + $0x6d0] sm:$0xff]   ;;  %v12447_v39 = vld [vmem:[#allocation7 + $0x658] sm:$0xff]  }
 0x4f3   :  { %12026 = vmatprep.subr.bf16.mxu1 %v12408_v36  ;;  %v12446_v36 = vld [vmem:[#allocation7 + $0x690] sm:$0xff]  }
 0x4f4   :  { %12005 = vmatpush3.bf16.msra.mxu0 %v12409_v31  ;;  %v12448_v31 = vld [vmem:[#allocation7 + $0x6d8] sm:$0xff]  }
 0x4f5   :  { %12027 = vmatpush3.bf16.msra.mxu1 %v12410_v57  ;;  %12006 = vmatprep.subr.bf16.mxu0 %v12411_v30  ;;  %v12449_v57 = vld [vmem:[#allocation7 + $0x618] sm:$0xff]  }
 0x4f6   :  { %12028 = vmatprep.subr.bf16.mxu1 %v12412_v33  ;;  %v12450_v30 = vld [vmem:[#allocation7 + $0x698] sm:$0xff]   ;;  %v12451_v33 = vld [vmem:[#allocation7 + $0x660] sm:$0xff]  }
 0x4f8   :  { %12007 = vmatpush3.bf16.msra.mxu0 %v12413_v32  ;;  %v12452_v32 = vld [vmem:[#allocation7 + $0x6e0] sm:$0xff]  }
 0x4f9   :  { %12029 = vmatpush3.bf16.msra.mxu1 %v12414_v15  ;;  %12008 = vmatprep.subr.bf16.mxu0 %v12415_v34  ;;  %v12453_v15 = vld [vmem:[#allocation7 + $0x620] sm:$0xff]  }
 0x4fa   :  { %12030 = vmatprep.subr.bf16.mxu1 %v12416_v23  ;;  %v12454_v34 = vld [vmem:[#allocation7 + $0x6a0] sm:$0xff]   ;;  %v12455_v23 = vld [vmem:[#allocation7 + $0x668] sm:$0xff]  }
 0x4fc   :  { %12009 = vmatpush3.bf16.msra.mxu0 %v12417_v49  ;;  %v12456_v49 = vld [vmem:[#allocation7 + $0x6e8] sm:$0xff]  }
 0x4fd   :  { %12031 = vmatpush3.bf16.msra.mxu1 %v12418_v37  ;;  %12010 = vmatprep.subr.bf16.mxu0 %v12419_v19  ;;  %v12457_v37 = vld [vmem:[#allocation7 + $0x628] sm:$0xff]   ;;  %v1206_v19 = vrot.slane %v12959_v56, %v12870_v58  ;;  %v1234_v58 = vrot.slane %v12959_v56, %v12879_v1  ;;  %v12465_v1 = vld [vmem:[#allocation7 + $0x638] sm:$0xff]  }
 0x4fe   :  { %12032 = vmatprep.subr.bf16.mxu1 %v12420_v24  ;;  %v12458_v24 = vld [vmem:[#allocation7 + $0x6a8] sm:$0xff]  }
 0x4ff   :  { %v12158_v5 = vadd.f32 %v12917_v35, %v1206_v19  ;;  %v12467_v35 = vld [vmem:[#allocation7 + $0x740] sm:$0xff]   ;;  %v12492_v19 = vld [vmem:[#allocation7 + $0x7f0] sm:$0xff]  }
 0x500   :  { %12011 = vmatpush3.bf16.msra.mxu0 %v12421_v9  ;;  %v12459_v9 = vld [vmem:[#allocation7 + $0x670] sm:$0xff]  }
 0x501   :  { %12033 = vmatpush3.bf16.msra.mxu1 %v12422_v46  ;;  %12012 = vmatprep.subr.bf16.mxu0 %v12423_v55  ;;  %v1214_v46 = vrot.slane %v12959_v56, %v12873_v61  ;;  %v7737_v17 = vmax.f32 %v12158_v5, 0.0  ;;  %v12494_v5 = vld [vmem:[#allocation7 + $0x7b0] sm:$0xff]  }
 0x502   :  { %12034 = vmatprep.subr.bf16.mxu1 %v12424_v14  ;;  %v12460_v14 = vld [vmem:[#allocation7 + $0x6f0] sm:$0xff]  }
 0x504   :  { %12013 = vmatpush3.bf16.msra.mxu0 %v12425_v20 }
 0x505   :  { %12035 = vmatpush3.bf16.msra.mxu1 %v12426_v53  ;;  %12014 = vmatprep.subr.bf16.mxu0 %v12427_v60 }
 0x506   :  { %12036 = vmatprep.subr.bf16.mxu1 %v12428_v2  ;;  %v12461_v2 = vld [vmem:[#allocation7 + $0x630] sm:$0xff]  }
 0x508   :  { %12015 = vmatpush3.bf16.msra.mxu0 %v12429_v6  ;;  %v12462_v6 = vld [vmem:[#allocation7 + $0x6b0] sm:$0xff]  }
 0x509   :  { %12037 = vmatpush3.bf16.msra.mxu1 %v12430_v27  ;;  %12016 = vmatprep.subr.bf16.mxu0 %v12431_v11  ;;  %v12160_v27 = vadd.f32 %v12921_v16, %v1214_v46  ;;  %v7769_v16 = vpack.c.bf16 %v7737_v17, %v7737_v17 }
 0x50a   :  { %12038 = vmatprep.subr.bf16.mxu1 %v12432_v54 }
 0x50c   :  { %12017 = vmatpush3.bf16.msra.mxu0 %v12433_v41  ;;  %v7739_v41 = vmax.f32 %v12160_v27, 0.0  ;;  %v12497_v27 = vld [vmem:[#allocation7 + $0x738] sm:$0xff]  }
 0x50d   :  { %12039 = vmatpush3.bf16.msra.mxu1 %v12434_v52  ;;  %12046 = vmatprep.subr.bf16.mxu0 %v12435_v48 }
 0x50e   :  { %12068 = vmatprep.subr.bf16.mxu1 %v12436_v43  ;;  %v12470_v43 = vld [vmem:[#allocation7 + $0x780] sm:$0xff]   ;;  %v7771_v25 = vpack.c.bf16 %v7739_v41, %v7739_v41 }
 0x50f   :  { %10265 = vmatmul.mubr.bf16.vlgmr.msra.gmra.mrb[52].mxu0 %v7765_v38  ;;  %v12472_v38 = vld [vmem:[#allocation7 + $0x7c8] sm:$0xff]  }
 0x510   :  { %10305 = vmatmul.mubr.bf16.vlgmr.msra.gmra.mrb[52].mxu1 %v7767_v12  ;;  %12047 = vmatpush3.bf16.msra.mxu0 %v12437_v3  ;;  %v12473_v12 = vld [vmem:[#allocation7 + $0x708] sm:$0xff]  }
 0x511   :  { %10344 = vmatprep.mubr.bf16.mxu0 %v7770_v47  ;;  %12069 = vmatpush3.bf16.msra.mxu1 %v12438_v40  ;;  %v12475_v47 = vld [vmem:[#allocation7 + $0x750] sm:$0xff]  }
 0x512   :  { %10384 = vmatprep.mubr.bf16.mxu1 %v7772_v44  ;;  %12048 = vmatprep.subr.bf16.mxu0 %v12439_v42  ;;  %v12474_v42 = vld [vmem:[#allocation7 + $0x788] sm:$0xff]   ;;  %v12477_v44 = vld [vmem:[#allocation7 + $0x710] sm:$0xff]  }
 0x513   :  { %12070 = vmatprep.subr.bf16.mxu1 %v12440_v28  ;;  %v12476_v28 = vld [vmem:[#allocation7 + $0x7d0] sm:$0xff]  }
 0x514   :  { %12049 = vmatpush3.bf16.msra.mxu0 %v12441_v45  ;;  %v12478_v45 = vld [vmem:[#allocation7 + $0x790] sm:$0xff]  }
 0x515   :  { %12071 = vmatpush3.bf16.msra.mxu1 %v12442_v4  ;;  %12050 = vmatprep.subr.bf16.mxu0 %v12443_v29  ;;  %v12479_v4 = vld [vmem:[#allocation7 + $0x758] sm:$0xff]  }
 0x516   :  { %12072 = vmatprep.subr.bf16.mxu1 %v12444_v7  ;;  %v12480_v29 = vld [vmem:[#allocation7 + $0x7d8] sm:$0xff]  }
 0x517   :  { %v12481_v7 = vld [vmem:[#allocation7 + $0x718] sm:$0xff]  }
 0x518   :  { %12051 = vmatpush3.bf16.msra.mxu0 %v12445_v50  ;;  %v12482_v50 = vld [vmem:[#allocation7 + $0x798] sm:$0xff]  }
 0x519   :  { %12073 = vmatpush3.bf16.msra.mxu1 %v12446_v36  ;;  %12052 = vmatprep.subr.bf16.mxu0 %v12447_v39  ;;  %v12483_v36 = vld [vmem:[#allocation7 + $0x760] sm:$0xff]  }
 0x51a   :  { %12074 = vmatprep.subr.bf16.mxu1 %v12448_v31  ;;  %v12484_v39 = vld [vmem:[#allocation7 + $0x7e0] sm:$0xff]  }
 0x51b   :  { %v12485_v31 = vld [vmem:[#allocation7 + $0x720] sm:$0xff]  }
 0x51c   :  { %12053 = vmatpush3.bf16.msra.mxu0 %v12449_v57  ;;  %v12486_v57 = vld [vmem:[#allocation7 + $0x7a0] sm:$0xff]  }
 0x51d   :  { %12075 = vmatpush3.bf16.msra.mxu1 %v12450_v30  ;;  %12054 = vmatprep.subr.bf16.mxu0 %v12451_v33  ;;  %v12487_v30 = vld [vmem:[#allocation7 + $0x768] sm:$0xff]  }
 0x51e   :  { %12076 = vmatprep.subr.bf16.mxu1 %v12452_v32  ;;  %v12488_v33 = vld [vmem:[#allocation7 + $0x7e8] sm:$0xff]  }
 0x51f   :  { %v12489_v32 = vld [vmem:[#allocation7 + $0x728] sm:$0xff]  }
 0x520   :  { %12055 = vmatpush3.bf16.msra.mxu0 %v12453_v15  ;;  %v1222_v15 = vrot.slane %v12959_v56, %v12894_v21 }
 0x521   :  { %12077 = vmatpush3.bf16.msra.mxu1 %v12454_v34  ;;  %12056 = vmatprep.subr.bf16.mxu0 %v12455_v23  ;;  %v12490_v34 = vld [vmem:[#allocation7 + $0x7a8] sm:$0xff]   ;;  %v12491_v23 = vld [vmem:[#allocation7 + $0x770] sm:$0xff]  }
 0x522   :  { %v12977_v55 = vpop.f32.mrb[28].mxu0  ;;  %12078 = vmatprep.subr.bf16.mxu1 %v12456_v49  ;;  %v12979_v20 = vpop.f32.mrb[28].mxu1  ;;  %v1230_v49 = vrot.slane %v12959_v56, %v12897_v26  ;;  %v12495_v26 = vld [vmem:[#allocation7 + $0x778] sm:$0xff]  }
 0x523   :  { %v7626_v53 = vpop.f32.mrb[29].mxu0  ;;  %v7708_v60 = vpop.f32.mrb[29].mxu1  ;;  %v12162_v21 = vadd.f32 %v12977_v55, %v1222_v15  ;;  %v12498_v55 = vld [vmem:[#allocation7 + $0x7b8] sm:$0xff]  }
 0x524   :  { %v7628_v62 = vpop.f32.mrb[30].mxu0  ;;  %12057 = vmatpush3.bf16.msra.mxu0 %v12457_v37  ;;  %v7710_v61 = vpop.f32.mrb[30].mxu1  ;;  %v12163_v13 = vadd.f32 %v7626_v53, %v1226_v59  ;;  %v12165_v54 = vadd.f32 %v7708_v60, %v1234_v58  ;;  %v12493_v58 = vld [vmem:[#allocation7 + $0x730] sm:$0xff]   ;;  %v12164_v56 = vadd.f32 %v12979_v20, %v1230_v49 }
 0x525   :  { %12079 = vmatpush3.bf16.msra.mxu1 %v12458_v24  ;;  %v7629_v10 = vpop.f32.mrb[31].mxu0  ;;  %12058 = vmatprep.subr.bf16.mxu0 %v12459_v9  ;;  %v7711_v11 = vpop.f32.mrb[31].mxu1  ;;  %v11524_v9 = vld [vmem:[#allocation8] ss:$0 sm:$0xff] }
 0x526   :  { %12080 = vmatprep.subr.bf16.mxu1 %v12460_v14  ;;  %v7742_v52 = vmax.f32 %v12163_v13, 0.0  ;;  %v7744_v48 = vmax.f32 %v12165_v54, 0.0  ;;  %v7741_v11 = vmax.f32 %v12162_v21, 0.0 }
 0x528   :  { %12059 = vmatpush3.bf16.msra.mxu0 %v12461_v2  ;;  %v7774_v3 = vpack.c.bf16 %v7742_v52, %v7742_v52  ;;  %v7776_v40 = vpack.c.bf16 %v7744_v48, %v7744_v48  ;;  %v7773_v13 = vpack.c.bf16 %v7741_v11, %v7741_v11 }
 0x529   :  { %12081 = vmatpush3.bf16.msra.mxu1 %v12462_v6  ;;  %12060 = vmatprep.subr.bf16.mxu0 %v12463_v8  ;;  %v12496_v6 = vld [vmem:[#allocation7 + $0x7f8] sm:$0xff]  }
 0x52a   :  { %12082 = vmatprep.subr.bf16.mxu1 %v12464_v0  ;;  %v7743_v0 = vmax.f32 %v12164_v56, 0.0 }
 0x52c   :  { %12061 = vmatpush3.bf16.msra.mxu0 %v12465_v1  ;;  %v7775_v54 = vpack.c.bf16 %v7743_v0, %v7743_v0 }
 0x52d   :  { %12083 = vmatpush3.bf16.msra.mxu1 %v12466_v18  ;;  %12090 = vmatprep.subr.bf16.mxu0 %v12467_v35 }
 0x52e   :  { %12112 = vmatprep.subr.bf16.mxu1 %v12468_v22 }
 0x52f   :  { %10345 = vmatmul.mubr.bf16.vlgmr.msra.gmra.mrb[56].mxu0 %v7769_v16 }
 0x530   :  { %10385 = vmatmul.mubr.bf16.vlgmr.msra.gmra.mrb[56].mxu1 %v7771_v25  ;;  %12091 = vmatpush3.bf16.msra.mxu0 %v12469_v63 }
 0x531   :  { %10424 = vmatprep.mubr.bf16.mxu0 %v7774_v3  ;;  %12113 = vmatpush3.bf16.msra.mxu1 %v12470_v43 }
 0x532   :  { %10464 = vmatprep.mubr.bf16.mxu1 %v7776_v40  ;;  %12092 = vmatprep.subr.bf16.mxu0 %v12471_v51 }
 0x533   :  { %12114 = vmatprep.subr.bf16.mxu1 %v12472_v38 }
 0x534   :  { %12093 = vmatpush3.bf16.msra.mxu0 %v12473_v12 }
 0x535   :  { %12115 = vmatpush3.bf16.msra.mxu1 %v12474_v42  ;;  %12094 = vmatprep.subr.bf16.mxu0 %v12475_v47 }
 0x536   :  { %12116 = vmatprep.subr.bf16.mxu1 %v12476_v28 }
 0x538   :  { %12095 = vmatpush3.bf16.msra.mxu0 %v12477_v44 }
 0x539   :  { %12117 = vmatpush3.bf16.msra.mxu1 %v12478_v45  ;;  %12096 = vmatprep.subr.bf16.mxu0 %v12479_v4 }
 0x53a   :  { %12118 = vmatprep.subr.bf16.mxu1 %v12480_v29 }
 0x53c   :  { %12097 = vmatpush3.bf16.msra.mxu0 %v12481_v7 }
 0x53d   :  { %12119 = vmatpush3.bf16.msra.mxu1 %v12482_v50  ;;  %12098 = vmatprep.subr.bf16.mxu0 %v12483_v36 }
 0x53e   :  { %12120 = vmatprep.subr.bf16.mxu1 %v12484_v39 }
 0x540   :  { %12099 = vmatpush3.bf16.msra.mxu0 %v12485_v31 }
 0x541   :  { %12121 = vmatpush3.bf16.msra.mxu1 %v12486_v57  ;;  %12100 = vmatprep.subr.bf16.mxu0 %v12487_v30 }
 0x542   :  { %v11798_v37 = vpop.f32.mrb[32].mxu0  ;;  %12122 = vmatprep.subr.bf16.mxu1 %v12488_v33 }
 0x543   :  { %v11820_v24 = vpop.f32.mrb[32].mxu1  ;;  %v11799_v46 = vpop.f32.mrb[33].mxu0 }
 0x544   :  { %v11800_v14 = vadd.f32 %v11799_v46, %v11798_v37  ;;  %v11821_v59 = vpop.f32.mrb[33].mxu1  ;;  %v11801_v53 = vpop.f32.mrb[34].mxu0  ;;  %12101 = vmatpush3.bf16.msra.mxu0 %v12489_v32 }
 0x545   :  { %v11822_v60 = vadd.f32 %v11821_v59, %v11820_v24  ;;  %v11823_v62 = vpop.f32.mrb[34].mxu1  ;;  %12123 = vmatpush3.bf16.msra.mxu1 %v12490_v34  ;;  %v11802_v2 = vpop.f32.mrb[35].mxu0  ;;  %12102 = vmatprep.subr.bf16.mxu0 %v12491_v23 }
 0x546   :  { %v9867_v61 = vadd.f32 %v11800_v14, %v11524_v9  ;;  %v11824_v10 = vpop.f32.mrb[35].mxu1  ;;  %12124 = vmatprep.subr.bf16.mxu1 %v12492_v19 }
 0x548   :  { %v9907_v8 = vadd.f32 %v11822_v60, %v9867_v61  ;;  %12103 = vmatpush3.bf16.msra.mxu0 %v12493_v58 }
 0x549   :  { %12125 = vmatpush3.bf16.msra.mxu1 %v12494_v5  ;;  %12104 = vmatprep.subr.bf16.mxu0 %v12495_v26 }
 0x54a   :  { %12126 = vmatprep.subr.bf16.mxu1 %v12496_v6 }
 0x54c   :  { %12105 = vmatpush3.bf16.msra.mxu0 %v12497_v27 }
 0x54d   :  { %12127 = vmatpush3.bf16.msra.mxu1 %v12498_v55 }
 0x54f   :  { %10425 = vmatmul.mubr.bf16.vlgmr.msra.gmra.mrb[60].mxu0 %v7773_v13 }
 0x550   :  { %10465 = vmatmul.mubr.bf16.vlgmr.msra.gmra.mrb[60].mxu1 %v7775_v54 }
 0x562   :  { %v11842_v20 = vpop.f32.mrb[36].mxu0 }
 0x563   :  { %v11864_v1 = vpop.f32.mrb[36].mxu1  ;;  %v11843_v17 = vpop.f32.mrb[37].mxu0 }
 0x564   :  { %v11844_v18 = vadd.f32 %v11843_v17, %v11842_v20  ;;  %v11865_v35 = vpop.f32.mrb[37].mxu1  ;;  %v11845_v41 = vpop.f32.mrb[38].mxu0 }
 0x565   :  { %v11866_v22 = vadd.f32 %v11865_v35, %v11864_v1  ;;  %v11867_v52 = vpop.f32.mrb[38].mxu1  ;;  %v11846_v48 = vpop.f32.mrb[39].mxu0 }
 0x566   :  { %v9947_v63 = vadd.f32 %v11844_v18, %v9907_v8  ;;  %v11868_v16 = vpop.f32.mrb[39].mxu1 }
 0x568   :  { %v9987_v43 = vadd.f32 %v11866_v22, %v9947_v63 }
 0x582   :  { %v11886_v25 = vpop.f32.mrb[40].mxu0 }
 0x583   :  { %v11908_v51 = vpop.f32.mrb[40].mxu1  ;;  %v11887_v3 = vpop.f32.mrb[41].mxu0 }
 0x584   :  { %v11888_v38 = vadd.f32 %v11887_v3, %v11886_v25  ;;  %v11909_v40 = vpop.f32.mrb[41].mxu1  ;;  %v11889_v12 = vpop.f32.mrb[42].mxu0 }
 0x585   :  { %v11910_v42 = vadd.f32 %v11909_v40, %v11908_v51  ;;  %v11911_v47 = vpop.f32.mrb[42].mxu1  ;;  %v11890_v28 = vpop.f32.mrb[43].mxu0 }
 0x586   :  { %v10027_v44 = vadd.f32 %v11888_v38, %v9987_v43  ;;  %v11912_v45 = vpop.f32.mrb[43].mxu1 }
 0x588   :  { %v10067_v4 = vadd.f32 %v11910_v42, %v10027_v44 }
 0x5a2   :  { %v11930_v29 = vpop.f32.mrb[44].mxu0 }
 0x5a3   :  { %v11952_v7 = vpop.f32.mrb[44].mxu1  ;;  %v11931_v50 = vpop.f32.mrb[45].mxu0 }
 0x5a4   :  { %v11932_v36 = vadd.f32 %v11931_v50, %v11930_v29  ;;  %v11953_v39 = vpop.f32.mrb[45].mxu1  ;;  %v11933_v31 = vpop.f32.mrb[46].mxu0 }
 0x5a5   :  { %v11954_v57 = vadd.f32 %v11953_v39, %v11952_v7  ;;  %v11955_v30 = vpop.f32.mrb[46].mxu1  ;;  %v11934_v33 = vpop.f32.mrb[47].mxu0 }
 0x5a6   :  { %v10107_v32 = vadd.f32 %v11932_v36, %v10067_v4  ;;  %v11956_v15 = vpop.f32.mrb[47].mxu1 }
 0x5a8   :  { %v10147_v34 = vadd.f32 %v11954_v57, %v10107_v32 }
 0x5c2   :  { %v11974_v23 = vpop.f32.mrb[48].mxu0 }
 0x5c3   :  { %v11996_v49 = vpop.f32.mrb[48].mxu1  ;;  %v11975_v37 = vpop.f32.mrb[49].mxu0 }
 0x5c4   :  { %v11976_v19 = vadd.f32 %v11975_v37, %v11974_v23  ;;  %v11997_v24 = vpop.f32.mrb[49].mxu1  ;;  %v11977_v9 = vpop.f32.mrb[50].mxu0 }
 0x5c5   :  { %v11998_v46 = vadd.f32 %v11997_v24, %v11996_v49  ;;  %v11999_v14 = vpop.f32.mrb[50].mxu1  ;;  %v11978_v59 = vpop.f32.mrb[51].mxu0 }
 0x5c6   :  { %v10187_v53 = vadd.f32 %v11976_v19, %v10147_v34  ;;  %v12000_v58 = vpop.f32.mrb[51].mxu1 }
 0x5c8   :  { %v10227_v21 = vadd.f32 %v11998_v46, %v10187_v53 }
 0x5e2   :  { %v12018_v60 = vpop.f32.mrb[52].mxu0 }
 0x5e3   :  { %v12040_v62 = vpop.f32.mrb[52].mxu1  ;;  %v12019_v2 = vpop.f32.mrb[53].mxu0 }
 0x5e4   :  { %v12020_v5 = vadd.f32 %v12019_v2, %v12018_v60  ;;  %v12041_v26 = vpop.f32.mrb[53].mxu1  ;;  %v12021_v56 = vpop.f32.mrb[54].mxu0 }
 0x5e5   :  { %v12042_v61 = vadd.f32 %v12041_v26, %v12040_v62  ;;  %v12043_v10 = vpop.f32.mrb[54].mxu1  ;;  %v12022_v6 = vpop.f32.mrb[55].mxu0 }
 0x5e6   :  { %v10267_v8 = vadd.f32 %v12020_v5, %v10227_v21  ;;  %v12044_v27 = vpop.f32.mrb[55].mxu1 }
 0x5e8   :  { %v10307_v11 = vadd.f32 %v12042_v61, %v10267_v8 }
 0x602   :  { %v12062_v55 = vpop.f32.mrb[56].mxu0 }
 0x603   :  { %v12084_v0 = vpop.f32.mrb[56].mxu1  ;;  %v12063_v13 = vpop.f32.mrb[57].mxu0 }
 0x604   :  { %v12064_v54 = vadd.f32 %v12063_v13, %v12062_v55  ;;  %v12085_v20 = vpop.f32.mrb[57].mxu1  ;;  %v12065_v1 = vpop.f32.mrb[58].mxu0 }
 0x605   :  { %v12086_v17 = vadd.f32 %v12085_v20, %v12084_v0  ;;  %v12087_v18 = vpop.f32.mrb[58].mxu1  ;;  %v12066_v35 = vpop.f32.mrb[59].mxu0 }
 0x606   :  { %v10347_v41 = vadd.f32 %v12064_v54, %v10307_v11  ;;  %v12088_v22 = vpop.f32.mrb[59].mxu1 }
 0x608   :  { %v10387_v52 = vadd.f32 %v12086_v17, %v10347_v41 }
 0x622   :  { %v12106_v48 = vpop.f32.mrb[60].mxu0 }
 0x623   :  { %v12128_v63 = vpop.f32.mrb[60].mxu1  ;;  %v12107_v16 = vpop.f32.mrb[61].mxu0 }
 0x624   :  { %v12108_v43 = vadd.f32 %v12107_v16, %v12106_v48  ;;  %v12129_v25 = vpop.f32.mrb[61].mxu1  ;;  %v12109_v51 = vpop.f32.mrb[62].mxu0 }
 0x625   :  { %v12130_v3 = vadd.f32 %v12129_v25, %v12128_v63  ;;  %v12131_v38 = vpop.f32.mrb[62].mxu1  ;;  %v12110_v40 = vpop.f32.mrb[63].mxu0 }
 0x626   :  { %v10427_v12 = vadd.f32 %v12108_v43, %v10387_v52  ;;  %v12132_v42 = vpop.f32.mrb[63].mxu1 }
 0x628   :  { %v10467_v47 = vadd.f32 %v12130_v3, %v10427_v12 }
 0x62a   :  { %v11781_v28 = vmul.f32 -1.442695, %v10467_v47 }
 0x62c   :  { %12499 = vpow2.f32 %v11781_v28 }
 0x636   :  { %v12500_v44 = vpop.eup %12499 }
 0x637   :  { %v10475_v45 = vadd.f32 1.0, %v12500_v44 }
 0x639   :  { %12501 = vrcp.f32 %v10475_v45 }
 0x643   :  { %v12502_v4 = vpop.eup %12501 }
 0x644   :  { %10478 = vst [vmem:[#allocation10] sm:$0xff] %v12502_v4 }
 0x645   :  { %12602 = shalt.err (!%p12599_p8)
}
 0x646   :  { %s12603_s25 = scalar_lea.hbm %s13010_s5, 128 }
 0x647   :  { %p12604_p9 = scmp.ne.s32.totalorder %s13010_s5, %s12603_s25  ;;  %p12607_p10 = scmp.lt.u32.totalorder %s12603_s25, %s13010_s5 }
 0x649   :  { %p12609_p11 = pnand %p12607_p10, %p12604_p9 }
 0x64b   :  { %12612 = shalt.err (!%p12609_p11)
}
 0x64c   :  { %10488 = dma.vmem_to_hbm [thread:$0]  %s10486_s20, 128, %s13010_s5, [#allocation4]  }
 0x64d   :  { %12619 = dma.done.wait [#allocation4], 128  }
 0x64e   :  { %12620 = vsyncadd [#allocation4], 4294967168 }
 0x64f   :  { %10492 = vsyncpa [#allocation3], 1 }
 0x650   :  { %10493 = vsyncpa [#allocation6], 1 }
 0x651   :  { %10494 = vsyncpa [#allocation9], 1 }
 0x652   :  { %10495 = vsyncpa [#allocation4], 1 }

</bundles_post_ra>
